<compile_context>
chip_gen: v7x
topology: tpu7x:2x2x1
jax: 0.10.0
libtpu: 0.0.40
codegen_flags: <defaults>
</compile_context>

<pallas_src>
import functools

import jax
import jax.numpy as jnp
from jax.experimental import pallas as pl
from jax.experimental.pallas import tpu as pltpu

NEG_SLOPE = 0.2
BN_EPS = 1e-5
LANE = 128


def _round_up(x, m):
    return (x + m - 1) // m * m


def _cdiv(a, b):
    return (a + b - 1) // b


def _pick_batch_block(n):
    """Largest batch block in {8,4,2,1} that divides n and leaves >=2 grid steps."""
    for bb in (8, 4, 2):
        if n % bb == 0 and n // bb >= 2:
            return bb
    return 1


def _vmem_limit(total_block_bytes):
    """Right-sized VMEM request: ~2x (double buffering) + margin, clamped."""
    lim = int(2.5 * total_block_bytes) + 4 * 1024 * 1024
    return max(8 * 1024 * 1024, min(lim, 64 * 1024 * 1024))


# ------------------------------ Pallas kernels ------------------------------ #
def _stem_gemm_kernel(x_ref, w_ref, b_ref, o_ref, *, tm, n_sub):
    """Layer-1 stem: im2col GEMM (K = 16*nc) + bias + LeakyReLU(0.2).

    x_ref : (n_sub*tm, K)  bf16 patch rows
    w_ref : (K, Cp)        bf16 (BN scale folded; here scale = 1)
    b_ref : (1, Cp)        f32
    o_ref : (n_sub*tm, Cp) bf16
    Static inner loop over n_sub row tiles keeps the f32 epilogue tile small
    while amortizing per-grid-step overhead.
    """
    w = w_ref[...]
    b = b_ref[...]
    for t in range(n_sub):
        off = t * tm
        y = jnp.dot(x_ref[pl.ds(off, tm), :], w,
                    preferred_element_type=jnp.float32)
        y = y + b
        o_ref[pl.ds(off, tm), :] = jnp.where(
            y >= 0.0, y, NEG_SLOPE * y).astype(o_ref.dtype)


def _s2d_conv2x2_kernel(x_ref, w_ref, b_ref, m_ref, o_ref, *,
                        rows_per_img, m_pad, tm, tap_off, bb):
    """4x4/stride-2 conv (+folded eval-BN +LeakyReLU) on space-to-depth input.

    After the wrapper's space-to-depth, the conv is a 2x2/stride-1 conv over
    4*Cin channels: 4 shifted MXU matmuls of depth K = 4*Cin.  The M axis is
    tiled; one tile's f32 accumulator is kept register-resident across the 4
    taps and stored exactly once.

    x_ref : (bb*rows_per_img, 4*Cin) bf16  flattened s2d planes of bb images
                                           (rows_per_img includes zero slack
                                           rows; all slab reads stay in-bounds)
    w_ref : (4, 4*Cin, Cp) bf16            per-tap stacked weights (BN folded)
    b_ref : (1, Cp) f32                    folded BN bias
    m_ref : (m_pad, 1) f32                 1 for real output rows, 0 for the
                                           junk column / padded tail rows
    o_ref : (bb*m_pad, Cp) bf16            junk column stored as exact zeros
                                           (becomes next layer's right pad)
    """
    n_tiles = m_pad // tm
    cp = o_ref.shape[-1]
    b = b_ref[...]
    for img in range(bb):
        x0 = img * rows_per_img
        o0 = img * m_pad
        for t in range(n_tiles):
            off = t * tm
            acc = jnp.zeros((tm, cp), jnp.float32)
            for k in range(4):
                slab = x_ref[pl.ds(x0 + tap_off[k] + off, tm), :]
                acc = acc + jnp.dot(slab, w_ref[k],
                                    preferred_element_type=jnp.float32)
            y = acc + b
            y = jnp.where(y >= 0.0, y, NEG_SLOPE * y)
            y = y * m_ref[pl.ds(off, tm), :]
            o_ref[pl.ds(o0 + off, tm), :] = y.astype(o_ref.dtype)


# --------------------------------- wrappers --------------------------------- #
def stem_conv4x4_s2_lrelu(x, w_oihw, scale, bias):
    """Layer 1: Conv2d(nc, ndf, 4, 2, 1, bias=False) + LeakyReLU(0.2).

    Returns (N, H/2, W/2, round_up(ndf, 128)) bf16 (extra channels are zero).
    """
    N, H, W, C = x.shape
    Cout, Cin_w, kh, kw = w_oihw.shape
    assert (kh, kw) == (4, 4) and Cin_w == C and H % 2 == 0 and W % 2 == 0
    Ho, Wo = H // 2, W // 2
    Coutp = _round_up(Cout, LANE)
    K1 = 16 * C

    # im2col patch matrix: row = output pixel, K = (di, dj, c)
    xp = jnp.pad(x, ((0, 0), (1, 1), (1, 1), (0, 0)))
    cols = [xp[:, di:di + 2 * Ho:2, dj:dj + 2 * Wo:2, :]
            for di in range(4) for dj in range(4)]
    pm = jnp.concatenate(cols, axis=-1).reshape(N * Ho * Wo, K1)
    pm = pm.astype(jnp.bfloat16)

    m_tot = N * Ho * Wo
    tm = 256
    n_sub = max(1, min(4, _round_up(m_tot, tm) // (2 * tm)))
    m_blk = tm * n_sub
    m_pad = _round_up(m_tot, m_blk)
    if m_pad != m_tot:
        pm = jnp.pad(pm, ((0, m_pad - m_tot), (0, 0)))

    # weights: (Cout, Cin, 4, 4) -> (K1, Coutp), row = di*4*Cin + dj*Cin + c
    wt = jnp.transpose(w_oihw, (2, 3, 1, 0)).astype(jnp.float32)
    wt = wt * scale.astype(jnp.float32)[None, None, None, :]
    wt = jnp.pad(wt, ((0, 0), (0, 0), (0, 0), (0, Coutp - Cout)))
    w_all = wt.reshape(K1, Coutp).astype(jnp.bfloat16)
    b_all = jnp.pad(bias.astype(jnp.float32), (0, Coutp - Cout)).reshape(1, Coutp)

    blk_bytes = (m_blk * K1 + m_blk * Coutp + K1 * Coutp) * 2 + Coutp * 4
    flops = 2 * m_pad * K1 * Coutp
    bytes_acc = pm.size * 2 + w_all.size * 2 + b_all.size * 4 + m_pad * Coutp * 2

    out = pl.pallas_call(
        functools.partial(_stem_gemm_kernel, tm=tm, n_sub=n_sub),
        out_shape=jax.ShapeDtypeStruct((m_pad, Coutp), jnp.bfloat16),
        grid=(m_pad // m_blk,),
        in_specs=[
            pl.BlockSpec((m_blk, K1), lambda i: (i, 0)),
            pl.BlockSpec((K1, Coutp), lambda i: (0, 0)),
            pl.BlockSpec((1, Coutp), lambda i: (0, 0)),
        ],
        out_specs=pl.BlockSpec((m_blk, Coutp), lambda i: (i, 0)),
        compiler_params=pltpu.CompilerParams(
            dimension_semantics=("parallel",),
            vmem_limit_bytes=_vmem_limit(blk_bytes)),
        cost_estimate=pl.CostEstimate(flops=int(flops), transcendentals=0,
                                      bytes_accessed=int(bytes_acc)),
    )(pm, w_all, b_all)

    if m_pad != m_tot:
        out = out[:m_tot]
    return out.reshape(N, Ho, Wo, Coutp)


def conv4x4_s2_bn_lrelu(y, w_oihw, scale, bias, *, junk_col):
    """Conv2d(Cin, Cout, 4, 2, 1, bias=False) + folded eval-BN + LeakyReLU(0.2).

    y: (N, H, W', Cinp) bf16; if junk_col, W' = W + 1 and the last column is
    the zero junk column written by the previous layer's kernel (it doubles as
    the right zero padding here, so no slice/copy between layers).
    Returns (N, H/2, W/2 + 1, Coutp) bf16 with a zero junk column.
    """
    N, Hp, Wp, Cinp = y.shape
    Cout, Cin_w, kh, kw = w_oihw.shape
    assert (kh, kw) == (4, 4) and Cin_w <= Cinp and Cinp % LANE == 0
    W_real = Wp - 1 if junk_col else Wp
    Ho, Wo = Hp // 2, W_real // 2
    Hh, Wh = Ho + 1, Wo + 1
    Coutp = _round_up(Cout, LANE)
    K4 = 4 * Cinp

    # M (output rows incl. junk column) tiling: keep one tile's f32 accumulator
    # register-resident (~<= 64 KiB) across the 4 taps.
    m_real = Ho * Wh
    tm_target = max(8, min(256, _round_up(16384 // Coutp, 8)))
    n_tiles = _cdiv(m_real, tm_target)
    tm = _round_up(_cdiv(m_real, n_tiles), 8)
    m_pad = n_tiles * tm
    rows = _round_up(Wh + 1 + m_pad, 8)          # per-image s2d rows incl. slack
    bb = _pick_batch_block(N)
    while bb > 1 and bb * n_tiles > 32:          # keep the unrolled kernel small
        bb //= 2

    # space-to-depth by 2 of the zero-padded activation:
    #   xs[n, hh*Wh + ww, p*2C + q*C + c] = xpad[n, 2hh+p, 2ww+q, c]
    pad_r = 0 if junk_col else 1
    xp = jnp.pad(y, ((0, 0), (1, 1), (1, pad_r), (0, 0)))
    xs = xp.reshape(N, Hh, 2, Wh, 2, Cinp).transpose(0, 1, 3, 2, 4, 5)
    xs = xs.reshape(N, Hh * Wh, K4)
    xs = jnp.pad(xs, ((0, 0), (0, rows - Hh * Wh), (0, 0)))
    xs = xs.reshape(N * rows, K4).astype(jnp.bfloat16)

    # weights: fold BN scale, pad channels, regroup into 4 taps of K = 4*Cin
    #   tap index = 2*oh + ow, K row = p*2*Cinp + q*Cinp + c  (di=2oh+p, dj=2ow+q)
    wt = jnp.transpose(w_oihw, (2, 3, 1, 0)).astype(jnp.float32)
    wt = wt * scale.astype(jnp.float32)[None, None, None, :]
    wt = jnp.pad(wt, ((0, 0), (0, 0), (0, Cinp - Cin_w), (0, Coutp - Cout)))
    wt = wt.reshape(2, 2, 2, 2, Cinp, Coutp).transpose(0, 2, 1, 3, 4, 5)
    w_all = wt.reshape(4, K4, Coutp).astype(jnp.bfloat16)
    b_all = jnp.pad(bias.astype(jnp.float32), (0, Coutp - Cout)).reshape(1, Coutp)

    # mask: 1 for real output rows, 0 for junk column / padded tail rows
    ridx = jnp.arange(m_pad, dtype=jnp.int32)
    mask = ((ridx < m_real) & (ridx % Wh != Wh - 1))
    mask = mask.astype(jnp.float32).reshape(m_pad, 1)

    tap_off = (0, 1, Wh, Wh + 1)
    blk_bytes = ((bb * rows * K4 + bb * m_pad * Coutp + 4 * K4 * Coutp) * 2
                 + (Coutp + m_pad) * 4)
    flops = 2 * N * m_pad * 4 * K4 * Coutp
    bytes_acc = (xs.size * 2 + w_all.size * 2 + b_all.size * 4 + mask.size * 4
                 + N * m_pad * Coutp * 2)

    out = pl.pallas_call(
        functools.partial(_s2d_conv2x2_kernel, rows_per_img=rows, m_pad=m_pad,
                          tm=tm, tap_off=tap_off, bb=bb),
        out_shape=jax.ShapeDtypeStruct((N * m_pad, Coutp), jnp.bfloat16),
        grid=(N // bb,),
        in_specs=[
            pl.BlockSpec((bb * rows, K4), lambda i: (i, 0)),
            pl.BlockSpec((4, K4, Coutp), lambda i: (0, 0, 0)),   # grid-invariant
            pl.BlockSpec((1, Coutp), lambda i: (0, 0)),
            pl.BlockSpec((m_pad, 1), lambda i: (0, 0)),
        ],
        out_specs=pl.BlockSpec((bb * m_pad, Coutp), lambda i: (i, 0)),
        compiler_params=pltpu.CompilerParams(
            dimension_semantics=("parallel",),
            vmem_limit_bytes=_vmem_limit(blk_bytes)),
        cost_estimate=pl.CostEstimate(flops=int(flops), transcendentals=0,
                                      bytes_accessed=int(bytes_acc)),
    )(xs, w_all, b_all, mask)

    out = out.reshape(N, m_pad, Coutp)
    if m_pad != m_real:
        out = out[:, :m_real, :]
    return out.reshape(N, Ho, Wh, Coutp)


def head_conv2x2_sigmoid(y, w_oihw, *, junk_col):
    """Final Conv2d(ndf*8, 1, 2, 1, 0, bias=False) + Sigmoid.

    Kept in plain JAX per the performance review: Cout=1 would waste 127/128
    MXU lanes and force masked partial stores in a Pallas kernel.
    """
    Cout, Cin, kh, kw = w_oihw.shape
    N, Hp, Wp, _ = y.shape
    W_real = Wp - 1 if junk_col else Wp
    x = y[:, :, :W_real, :Cin].astype(jnp.float32)
    Ho, Wo = Hp - kh + 1, W_real - kw + 1
    w = w_oihw.astype(jnp.float32)
    out = jnp.zeros((N, Ho, Wo, Cout), jnp.float32)
    for di in range(kh):
        for dj in range(kw):
            out = out + jnp.einsum("nhwc,oc->nhwo",
                                   x[:, di:di + Ho, dj:dj + Wo, :],
                                   w[:, :, di, dj])
    return jax.nn.sigmoid(out)


# --------------------------- parameter initialization ----------------------- #
def init_params(key, nc=3, ndf=64):
    """Deterministic synthetic parameters matching DCGAN_Discriminator shapes.

    BatchNorm uses eval-mode (running-stat) semantics, folded into a
    per-channel scale (applied to the weights) and a bias vector.
    """
    specs = [  # (Cout, Cin, k, has_bn)
        (ndf, nc, 4, False),
        (ndf * 2, ndf, 4, True),
        (ndf * 4, ndf * 2, 4, True),
        (ndf * 8, ndf * 4, 4, True),
        (1, ndf * 8, 2, False),
    ]
    params = []
    for co, ci, k, has_bn in specs:
        key, wk, gk, bk, mk, vk = jax.random.split(key, 6)
        w = 0.02 * jax.random.normal(wk, (co, ci, k, k), jnp.float32)
        if has_bn:
            gamma = 1.0 + 0.1 * jax.random.normal(gk, (co,), jnp.float32)
            beta = 0.1 * jax.random.normal(bk, (co,), jnp.float32)
            rmean = 0.1 * jax.random.normal(mk, (co,), jnp.float32)
            rvar = 1.0 + 0.1 * jax.random.uniform(vk, (co,), jnp.float32)
            scale = gamma / jnp.sqrt(rvar + BN_EPS)
            bias = beta - rmean * scale
        else:
            scale = jnp.ones((co,), jnp.float32)
            bias = jnp.zeros((co,), jnp.float32)
        params.append(dict(w=w, scale=scale, bias=bias))
    return params


# ---------------------------------- forward ---------------------------------- #
@jax.jit
def dcgan_discriminator(x_nchw, params):
    """Forward pass of DCGAN_Discriminator. Input NCHW, output NCHW (N,1,1,1)."""
    x = jnp.transpose(x_nchw, (0, 2, 3, 1)).astype(jnp.bfloat16)   # NCHW -> NHWC
    p0 = params[0]
    y = stem_conv4x4_s2_lrelu(x, p0["w"], p0["scale"], p0["bias"])
    junk = False
    for p in params[1:4]:
        y = conv4x4_s2_bn_lrelu(y, p["w"], p["scale"], p["bias"], junk_col=junk)
        junk = True
    out = head_conv2x2_sigmoid(y, params[4]["w"], junk_col=junk)   # (N,1,1,1)
    return jnp.transpose(out, (0, 3, 1, 2)).astype(jnp.float32)    # NHWC -> NCHW


# ----------------------------- pure-JAX reference ---------------------------- #
@jax.jit
def _ref_forward(x_nchw, params):
    """f32 reference (same eval-mode folded BN) for a tolerance check."""
    x = jnp.transpose(x_nchw, (0, 2, 3, 1)).astype(jnp.float32)
    for p in params[:4]:
        w = p["w"].astype(jnp.float32)
        N, H, W, _ = x.shape
        Ho, Wo = H // 2, W // 2
        xp = jnp.pad(x, ((0, 0), (1, 1), (1, 1), (0, 0)))
        yy = jnp.zeros((N, Ho, Wo, w.shape[0]), jnp.float32)
        for di in range(4):
            for dj in range(4):
                yy = yy + jnp.einsum("nhwc,oc->nhwo",
                                     xp[:, di:di + 2 * Ho:2, dj:dj + 2 * Wo:2, :],
                                     w[:, :, di, dj])
        yy = yy * p["scale"][None, None, None, :] + p["bias"][None, None, None, :]
        x = jnp.where(yy >= 0.0, yy, NEG_SLOPE * yy)
    w = params[4]["w"].astype(jnp.float32)
    N, H, W, _ = x.shape
    yy = jnp.zeros((N, H - 1, W - 1, 1), jnp.float32)
    for di in range(2):
        for dj in range(2):
            yy = yy + jnp.einsum("nhwc,oc->nhwo",
                                 x[:, di:di + H - 1, dj:dj + W - 1, :],
                                 w[:, :, di, dj])
    yy = jax.nn.sigmoid(yy)
    return jnp.transpose(yy, (0, 3, 1, 2))


if __name__ == "__main__":
    key = jax.random.PRNGKey(0)
    nc, ndf = 3, 8            # small ndf for a quick synthetic run
    N, H, W = 2, 32, 32       # 32x32 is the smallest input the 5-conv stack maps to 1x1

    key, xk, pk = jax.random.split(key, 3)
    x = jax.random.normal(xk, (N, nc, H, W), jnp.float32)
    params = init_params(pk, nc=nc, ndf=ndf)

    out = jax.block_until_ready(dcgan_discriminator(x, params))

    assert out.shape == (N, 1, 1, 1), out.shape
    assert bool(jnp.all(jnp.isfinite(out)))
    assert bool(jnp.all((out >= 0.0) & (out <= 1.0)))   # sigmoid output range

    ref = jax.block_until_ready(_ref_forward(x, params))
    err = float(jnp.max(jnp.abs(out - ref)))
    assert err < 5e-2, f"mismatch vs f32 reference: {err}"

    print("KERNEL_OK")
</pallas_src>

<mosaic_0001>
module attributes {stable_mosaic.version = 11 : i64} {
  func.func @_stem_gemm_kernel(%arg0: i32, %arg1: memref<256x48xbf16, #tpu.memory_space<vmem>>, %arg2: memref<48x128xbf16, #tpu.memory_space<vmem>>, %arg3: memref<1x128xf32, #tpu.memory_space<vmem>>, %arg4: memref<256x128xbf16, #tpu.memory_space<vmem>>) attributes {dimension_semantics = [#tpu.dimension_semantics<parallel>], iteration_bounds = array<i64: 2>, scalar_prefetch = 0 : i64, scratch_operands = 0 : i64, tpu.core_type = #tpu.core_type<tc>, window_params = [{transform_indices = @transform_0, window_bounds = array<i64: 256, 48>}, {pipeline_mode = #tpu.pipeline_mode<synchronous>, transform_indices = @transform_1, window_bounds = array<i64: 48, 128>}, {pipeline_mode = #tpu.pipeline_mode<synchronous>, transform_indices = @transform_2, window_bounds = array<i64: 1, 128>}, {transform_indices = @transform_3, window_bounds = array<i64: 256, 128>}]} {
    %c0 = arith.constant 0 : index
    %c0_0 = arith.constant 0 : index
    %0 = vector.load %arg2[%c0, %c0_0] : memref<48x128xbf16, #tpu.memory_space<vmem>>, vector<48x128xbf16>
    %c0_1 = arith.constant 0 : index
    %c0_2 = arith.constant 0 : index
    %1 = vector.load %arg3[%c0_1, %c0_2] : memref<1x128xf32, #tpu.memory_space<vmem>>, vector<1x128xf32>
    %c0_3 = arith.constant 0 : index
    %c0_4 = arith.constant 0 : index
    %2 = vector.load %arg1[%c0_3, %c0_4] : memref<256x48xbf16, #tpu.memory_space<vmem>>, vector<256x48xbf16>
    %cst = arith.constant dense<0.000000e+00> : vector<256x128xf32>
    %3 = tpu.matmul %2, %0, %cst {dimension_numbers = #tpu.dot_dimension_numbers<[1], [0], [0], [1], [0, 0, 1, 1], [], []>} : vector<256x48xbf16>, vector<48x128xbf16>, vector<256x128xf32> -> vector<256x128xf32>
    %4 = vector.broadcast %1 : vector<1x128xf32> to vector<256x128xf32>
    %5 = arith.addf %3, %4 : vector<256x128xf32>
    %cst_5 = arith.constant 0.000000e+00 : f32
    %6 = vector.broadcast %cst_5 : f32 to vector<256x128xf32>
    %7 = arith.cmpf oge, %5, %6 : vector<256x128xf32>
    %cst_6 = arith.constant 2.000000e-01 : f32
    %8 = vector.broadcast %cst_6 : f32 to vector<256x128xf32>
    %9 = arith.mulf %8, %5 : vector<256x128xf32>
    %10 = arith.select %7, %5, %9 : vector<256x128xi1>, vector<256x128xf32>
    %11 = arith.truncf %10 : vector<256x128xf32> to vector<256x128xbf16>
    %c0_7 = arith.constant 0 : index
    %c0_8 = arith.constant 0 : index
    %12 = vector.load %arg4[%c0_7, %c0_8] : memref<256x128xbf16, #tpu.memory_space<vmem>>, vector<256x128xbf16>
    tpu.vector_store %arg4[%c0_7, %c0_8], %11 {strides = array<i32>} : memref<256x128xbf16, #tpu.memory_space<vmem>>, vector<256x128xbf16>,
    return
  }
  func.func @transform_0(%arg0: i32) -> (i32, i32) {
    %c0_i32 = arith.constant 0 : i32
    %c0_i32_0 = arith.constant 0 : i32
    return %arg0, %c0_i32 : i32, i32
  }
  func.func @transform_1(%arg0: i32) -> (i32, i32) {
    %c0_i32 = arith.constant 0 : i32
    %c0_i32_0 = arith.constant 0 : i32
    %c0_i32_1 = arith.constant 0 : i32
    return %c0_i32, %c0_i32_0 : i32, i32
  }
  func.func @transform_2(%arg0: i32) -> (i32, i32) {
    %c0_i32 = arith.constant 0 : i32
    %c0_i32_0 = arith.constant 0 : i32
    %c0_i32_1 = arith.constant 0 : i32
    return %c0_i32, %c0_i32_0 : i32, i32
  }
  func.func @transform_3(%arg0: i32) -> (i32, i32) {
    %c0_i32 = arith.constant 0 : i32
    %c0_i32_0 = arith.constant 0 : i32
    return %arg0, %c0_i32 : i32, i32
  }
}

module attributes {stable_mosaic.version = 11 : i64} {
  func.func @_s2d_conv2x2_kernel(%arg0: i32, %arg1: memref<88x512xbf16, #tpu.memory_space<vmem>>, %arg2: memref<4x512x128xbf16, #tpu.memory_space<vmem>>, %arg3: memref<1x128xf32, #tpu.memory_space<vmem>>, %arg4: memref<72x1xf32, #tpu.memory_space<vmem>>, %arg5: memref<72x128xbf16, #tpu.memory_space<vmem>>) attributes {dimension_semantics = [#tpu.dimension_semantics<parallel>], iteration_bounds = array<i64: 2>, scalar_prefetch = 0 : i64, scratch_operands = 0 : i64, tpu.core_type = #tpu.core_type<tc>, window_params = [{transform_indices = @transform_0, window_bounds = array<i64: 88, 512>}, {pipeline_mode = #tpu.pipeline_mode<synchronous>, transform_indices = @transform_1, window_bounds = array<i64: 4, 512, 128>}, {pipeline_mode = #tpu.pipeline_mode<synchronous>, transform_indices = @transform_2, window_bounds = array<i64: 1, 128>}, {pipeline_mode = #tpu.pipeline_mode<synchronous>, transform_indices = @transform_3, window_bounds = array<i64: 72, 1>}, {transform_indices = @transform_4, window_bounds = array<i64: 72, 128>}]} {
    %c0 = arith.constant 0 : index
    %c0_0 = arith.constant 0 : index
    %0 = vector.load %arg3[%c0, %c0_0] : memref<1x128xf32, #tpu.memory_space<vmem>>, vector<1x128xf32>
    %cst = arith.constant 0.000000e+00 : f32
    %1 = vector.broadcast %cst : f32 to vector<72x128xf32>
    %c0_1 = arith.constant 0 : index
    %c0_2 = arith.constant 0 : index
    %2 = vector.load %arg1[%c0_1, %c0_2] : memref<88x512xbf16, #tpu.memory_space<vmem>>, vector<72x512xbf16>
    %c0_3 = arith.constant 0 : index
    %c0_4 = arith.constant 0 : index
    %c0_5 = arith.constant 0 : index
    %3 = vector.load %arg2[%c0_3, %c0_4, %c0_5] : memref<4x512x128xbf16, #tpu.memory_space<vmem>>, vector<1x512x128xbf16>
    %4 = vector.shape_cast %3 : vector<1x512x128xbf16> to vector<512x128xbf16>
    %cst_6 = arith.constant dense<0.000000e+00> : vector<72x128xf32>
    %5 = tpu.matmul %2, %4, %cst_6 {dimension_numbers = #tpu.dot_dimension_numbers<[1], [0], [0], [1], [0, 0, 1, 1], [], []>} : vector<72x512xbf16>, vector<512x128xbf16>, vector<72x128xf32> -> vector<72x128xf32>
    %6 = arith.addf %1, %5 : vector<72x128xf32>
    %c1 = arith.constant 1 : index
    %c0_7 = arith.constant 0 : index
    %7 = vector.load %arg1[%c1, %c0_7] : memref<88x512xbf16, #tpu.memory_space<vmem>>, vector<72x512xbf16>
    %c1_8 = arith.constant 1 : index
    %c0_9 = arith.constant 0 : index
    %c0_10 = arith.constant 0 : index
    %8 = vector.load %arg2[%c1_8, %c0_9, %c0_10] : memref<4x512x128xbf16, #tpu.memory_space<vmem>>, vector<1x512x128xbf16>
    %9 = vector.shape_cast %8 : vector<1x512x128xbf16> to vector<512x128xbf16>
    %cst_11 = arith.constant dense<0.000000e+00> : vector<72x128xf32>
    %10 = tpu.matmul %7, %9, %cst_11 {dimension_numbers = #tpu.dot_dimension_numbers<[1], [0], [0], [1], [0, 0, 1, 1], [], []>} : vector<72x512xbf16>, vector<512x128xbf16>, vector<72x128xf32> -> vector<72x128xf32>
    %11 = arith.addf %6, %10 : vector<72x128xf32>
    %c9 = arith.constant 9 : index
    %c0_12 = arith.constant 0 : index
    %12 = vector.load %arg1[%c9, %c0_12] : memref<88x512xbf16, #tpu.memory_space<vmem>>, vector<72x512xbf16>
    %c2 = arith.constant 2 : index
    %c0_13 = arith.constant 0 : index
    %c0_14 = arith.constant 0 : index
    %13 = vector.load %arg2[%c2, %c0_13, %c0_14] : memref<4x512x128xbf16, #tpu.memory_space<vmem>>, vector<1x512x128xbf16>
    %14 = vector.shape_cast %13 : vector<1x512x128xbf16> to vector<512x128xbf16>
    %cst_15 = arith.constant dense<0.000000e+00> : vector<72x128xf32>
    %15 = tpu.matmul %12, %14, %cst_15 {dimension_numbers = #tpu.dot_dimension_numbers<[1], [0], [0], [1], [0, 0, 1, 1], [], []>} : vector<72x512xbf16>, vector<512x128xbf16>, vector<72x128xf32> -> vector<72x128xf32>
    %16 = arith.addf %11, %15 : vector<72x128xf32>
    %c10 = arith.constant 10 : index
    %c0_16 = arith.constant 0 : index
    %17 = vector.load %arg1[%c10, %c0_16] : memref<88x512xbf16, #tpu.memory_space<vmem>>, vector<72x512xbf16>
    %c3 = arith.constant 3 : index
    %c0_17 = arith.constant 0 : index
    %c0_18 = arith.constant 0 : index
    %18 = vector.load %arg2[%c3, %c0_17, %c0_18] : memref<4x512x128xbf16, #tpu.memory_space<vmem>>, vector<1x512x128xbf16>
    %19 = vector.shape_cast %18 : vector<1x512x128xbf16> to vector<512x128xbf16>
    %cst_19 = arith.constant dense<0.000000e+00> : vector<72x128xf32>
    %20 = tpu.matmul %17, %19, %cst_19 {dimension_numbers = #tpu.dot_dimension_numbers<[1], [0], [0], [1], [0, 0, 1, 1], [], []>} : vector<72x512xbf16>, vector<512x128xbf16>, vector<72x128xf32> -> vector<72x128xf32>
    %21 = arith.addf %16, %20 : vector<72x128xf32>
    %22 = vector.broadcast %0 : vector<1x128xf32> to vector<72x128xf32>
    %23 = arith.addf %21, %22 : vector<72x128xf32>
    %cst_20 = arith.constant 0.000000e+00 : f32
    %24 = vector.broadcast %cst_20 : f32 to vector<72x128xf32>
    %25 = arith.cmpf oge, %23, %24 : vector<72x128xf32>
    %cst_21 = arith.constant 2.000000e-01 : f32
    %26 = vector.broadcast %cst_21 : f32 to vector<72x128xf32>
    %27 = arith.mulf %26, %23 : vector<72x128xf32>
    %28 = arith.select %25, %23, %27 : vector<72x128xi1>, vector<72x128xf32>
    %c0_22 = arith.constant 0 : index
    %c0_23 = arith.constant 0 : index
    %29 = vector.load %arg4[%c0_22, %c0_23] : memref<72x1xf32, #tpu.memory_space<vmem>>, vector<72x1xf32>
    %30 = vector.broadcast %29 : vector<72x1xf32> to vector<72x128xf32>
    %31 = arith.mulf %28, %30 : vector<72x128xf32>
    %32 = arith.truncf %31 : vector<72x128xf32> to vector<72x128xbf16>
    %c0_24 = arith.constant 0 : index
    %c0_25 = arith.constant 0 : index
    %33 = vector.load %arg5[%c0_24, %c0_25] : memref<72x128xbf16, #tpu.memory_space<vmem>>, vector<72x128xbf16>
    tpu.vector_store %arg5[%c0_24, %c0_25], %32 {strides = array<i32>} : memref<72x128xbf16, #tpu.memory_space<vmem>>, vector<72x128xbf16>,
    return
  }
  func.func @transform_0(%arg0: i32) -> (i32, i32) {
    %c0_i32 = arith.constant 0 : i32
    %c0_i32_0 = arith.constant 0 : i32
    return %arg0, %c0_i32 : i32, i32
  }
  func.func @transform_1(%arg0: i32) -> (i32, i32, i32) {
    %c0_i32 = arith.constant 0 : i32
    %c0_i32_0 = arith.constant 0 : i32
    %c0_i32_1 = arith.constant 0 : i32
    %c0_i32_2 = arith.constant 0 : i32
    return %c0_i32, %c0_i32_0, %c0_i32_1 : i32, i32, i32
  }
  func.func @transform_2(%arg0: i32) -> (i32, i32) {
    %c0_i32 = arith.constant 0 : i32
    %c0_i32_0 = arith.constant 0 : i32
    %c0_i32_1 = arith.constant 0 : i32
    return %c0_i32, %c0_i32_0 : i32, i32
  }
  func.func @transform_3(%arg0: i32) -> (i32, i32) {
    %c0_i32 = arith.constant 0 : i32
    %c0_i32_0 = arith.constant 0 : i32
    %c0_i32_1 = arith.constant 0 : i32
    return %c0_i32, %c0_i32_0 : i32, i32
  }
  func.func @transform_4(%arg0: i32) -> (i32, i32) {
    %c0_i32 = arith.constant 0 : i32
    %c0_i32_0 = arith.constant 0 : i32
    return %arg0, %c0_i32 : i32, i32
  }
}

module attributes {stable_mosaic.version = 11 : i64} {
  func.func @_s2d_conv2x2_kernel(%arg0: i32, %arg1: memref<32x512xbf16, #tpu.memory_space<vmem>>, %arg2: memref<4x512x128xbf16, #tpu.memory_space<vmem>>, %arg3: memref<1x128xf32, #tpu.memory_space<vmem>>, %arg4: memref<24x1xf32, #tpu.memory_space<vmem>>, %arg5: memref<24x128xbf16, #tpu.memory_space<vmem>>) attributes {dimension_semantics = [#tpu.dimension_semantics<parallel>], iteration_bounds = array<i64: 2>, scalar_prefetch = 0 : i64, scratch_operands = 0 : i64, tpu.core_type = #tpu.core_type<tc>, window_params = [{transform_indices = @transform_0, window_bounds = array<i64: 32, 512>}, {pipeline_mode = #tpu.pipeline_mode<synchronous>, transform_indices = @transform_1, window_bounds = array<i64: 4, 512, 128>}, {pipeline_mode = #tpu.pipeline_mode<synchronous>, transform_indices = @transform_2, window_bounds = array<i64: 1, 128>}, {pipeline_mode = #tpu.pipeline_mode<synchronous>, transform_indices = @transform_3, window_bounds = array<i64: 24, 1>}, {transform_indices = @transform_4, window_bounds = array<i64: 24, 128>}]} {
    %c0 = arith.constant 0 : index
    %c0_0 = arith.constant 0 : index
    %0 = vector.load %arg3[%c0, %c0_0] : memref<1x128xf32, #tpu.memory_space<vmem>>, vector<1x128xf32>
    %cst = arith.constant 0.000000e+00 : f32
    %1 = vector.broadcast %cst : f32 to vector<24x128xf32>
    %c0_1 = arith.constant 0 : index
    %c0_2 = arith.constant 0 : index
    %2 = vector.load %arg1[%c0_1, %c0_2] : memref<32x512xbf16, #tpu.memory_space<vmem>>, vector<24x512xbf16>
    %c0_3 = arith.constant 0 : index
    %c0_4 = arith.constant 0 : index
    %c0_5 = arith.constant 0 : index
    %3 = vector.load %arg2[%c0_3, %c0_4, %c0_5] : memref<4x512x128xbf16, #tpu.memory_space<vmem>>, vector<1x512x128xbf16>
    %4 = vector.shape_cast %3 : vector<1x512x128xbf16> to vector<512x128xbf16>
    %cst_6 = arith.constant dense<0.000000e+00> : vector<24x128xf32>
    %5 = tpu.matmul %2, %4, %cst_6 {dimension_numbers = #tpu.dot_dimension_numbers<[1], [0], [0], [1], [0, 0, 1, 1], [], []>} : vector<24x512xbf16>, vector<512x128xbf16>, vector<24x128xf32> -> vector<24x128xf32>
    %6 = arith.addf %1, %5 : vector<24x128xf32>
    %c1 = arith.constant 1 : index
    %c0_7 = arith.constant 0 : index
    %7 = vector.load %arg1[%c1, %c0_7] : memref<32x512xbf16, #tpu.memory_space<vmem>>, vector<24x512xbf16>
    %c1_8 = arith.constant 1 : index
    %c0_9 = arith.constant 0 : index
    %c0_10 = arith.constant 0 : index
    %8 = vector.load %arg2[%c1_8, %c0_9, %c0_10] : memref<4x512x128xbf16, #tpu.memory_space<vmem>>, vector<1x512x128xbf16>
    %9 = vector.shape_cast %8 : vector<1x512x128xbf16> to vector<512x128xbf16>
    %cst_11 = arith.constant dense<0.000000e+00> : vector<24x128xf32>
    %10 = tpu.matmul %7, %9, %cst_11 {dimension_numbers = #tpu.dot_dimension_numbers<[1], [0], [0], [1], [0, 0, 1, 1], [], []>} : vector<24x512xbf16>, vector<512x128xbf16>, vector<24x128xf32> -> vector<24x128xf32>
    %11 = arith.addf %6, %10 : vector<24x128xf32>
    %c5 = arith.constant 5 : index
    %c0_12 = arith.constant 0 : index
    %12 = vector.load %arg1[%c5, %c0_12] : memref<32x512xbf16, #tpu.memory_space<vmem>>, vector<24x512xbf16>
    %c2 = arith.constant 2 : index
    %c0_13 = arith.constant 0 : index
    %c0_14 = arith.constant 0 : index
    %13 = vector.load %arg2[%c2, %c0_13, %c0_14] : memref<4x512x128xbf16, #tpu.memory_space<vmem>>, vector<1x512x128xbf16>
    %14 = vector.shape_cast %13 : vector<1x512x128xbf16> to vector<512x128xbf16>
    %cst_15 = arith.constant dense<0.000000e+00> : vector<24x128xf32>
    %15 = tpu.matmul %12, %14, %cst_15 {dimension_numbers = #tpu.dot_dimension_numbers<[1], [0], [0], [1], [0, 0, 1, 1], [], []>} : vector<24x512xbf16>, vector<512x128xbf16>, vector<24x128xf32> -> vector<24x128xf32>
    %16 = arith.addf %11, %15 : vector<24x128xf32>
    %c6 = arith.constant 6 : index
    %c0_16 = arith.constant 0 : index
    %17 = vector.load %arg1[%c6, %c0_16] : memref<32x512xbf16, #tpu.memory_space<vmem>>, vector<24x512xbf16>
    %c3 = arith.constant 3 : index
    %c0_17 = arith.constant 0 : index
    %c0_18 = arith.constant 0 : index
    %18 = vector.load %arg2[%c3, %c0_17, %c0_18] : memref<4x512x128xbf16, #tpu.memory_space<vmem>>, vector<1x512x128xbf16>
    %19 = vector.shape_cast %18 : vector<1x512x128xbf16> to vector<512x128xbf16>
    %cst_19 = arith.constant dense<0.000000e+00> : vector<24x128xf32>
    %20 = tpu.matmul %17, %19, %cst_19 {dimension_numbers = #tpu.dot_dimension_numbers<[1], [0], [0], [1], [0, 0, 1, 1], [], []>} : vector<24x512xbf16>, vector<512x128xbf16>, vector<24x128xf32> -> vector<24x128xf32>
    %21 = arith.addf %16, %20 : vector<24x128xf32>
    %22 = vector.broadcast %0 : vector<1x128xf32> to vector<24x128xf32>
    %23 = arith.addf %21, %22 : vector<24x128xf32>
    %cst_20 = arith.constant 0.000000e+00 : f32
    %24 = vector.broadcast %cst_20 : f32 to vector<24x128xf32>
    %25 = arith.cmpf oge, %23, %24 : vector<24x128xf32>
    %cst_21 = arith.constant 2.000000e-01 : f32
    %26 = vector.broadcast %cst_21 : f32 to vector<24x128xf32>
    %27 = arith.mulf %26, %23 : vector<24x128xf32>
    %28 = arith.select %25, %23, %27 : vector<24x128xi1>, vector<24x128xf32>
    %c0_22 = arith.constant 0 : index
    %c0_23 = arith.constant 0 : index
    %29 = vector.load %arg4[%c0_22, %c0_23] : memref<24x1xf32, #tpu.memory_space<vmem>>, vector<24x1xf32>
    %30 = vector.broadcast %29 : vector<24x1xf32> to vector<24x128xf32>
    %31 = arith.mulf %28, %30 : vector<24x128xf32>
    %32 = arith.truncf %31 : vector<24x128xf32> to vector<24x128xbf16>
    %c0_24 = arith.constant 0 : index
    %c0_25 = arith.constant 0 : index
    %33 = vector.load %arg5[%c0_24, %c0_25] : memref<24x128xbf16, #tpu.memory_space<vmem>>, vector<24x128xbf16>
    tpu.vector_store %arg5[%c0_24, %c0_25], %32 {strides = array<i32>} : memref<24x128xbf16, #tpu.memory_space<vmem>>, vector<24x128xbf16>,
    return
  }
  func.func @transform_0(%arg0: i32) -> (i32, i32) {
    %c0_i32 = arith.constant 0 : i32
    %c0_i32_0 = arith.constant 0 : i32
    return %arg0, %c0_i32 : i32, i32
  }
  func.func @transform_1(%arg0: i32) -> (i32, i32, i32) {
    %c0_i32 = arith.constant 0 : i32
    %c0_i32_0 = arith.constant 0 : i32
    %c0_i32_1 = arith.constant 0 : i32
    %c0_i32_2 = arith.constant 0 : i32
    return %c0_i32, %c0_i32_0, %c0_i32_1 : i32, i32, i32
  }
  func.func @transform_2(%arg0: i32) -> (i32, i32) {
    %c0_i32 = arith.constant 0 : i32
    %c0_i32_0 = arith.constant 0 : i32
    %c0_i32_1 = arith.constant 0 : i32
    return %c0_i32, %c0_i32_0 : i32, i32
  }
  func.func @transform_3(%arg0: i32) -> (i32, i32) {
    %c0_i32 = arith.constant 0 : i32
    %c0_i32_0 = arith.constant 0 : i32
    %c0_i32_1 = arith.constant 0 : i32
    return %c0_i32, %c0_i32_0 : i32, i32
  }
  func.func @transform_4(%arg0: i32) -> (i32, i32) {
    %c0_i32 = arith.constant 0 : i32
    %c0_i32_0 = arith.constant 0 : i32
    return %arg0, %c0_i32 : i32, i32
  }
}

module attributes {stable_mosaic.version = 11 : i64} {
  func.func @_s2d_conv2x2_kernel(%arg0: i32, %arg1: memref<16x512xbf16, #tpu.memory_space<vmem>>, %arg2: memref<4x512x128xbf16, #tpu.memory_space<vmem>>, %arg3: memref<1x128xf32, #tpu.memory_space<vmem>>, %arg4: memref<8x1xf32, #tpu.memory_space<vmem>>, %arg5: memref<8x128xbf16, #tpu.memory_space<vmem>>) attributes {dimension_semantics = [#tpu.dimension_semantics<parallel>], iteration_bounds = array<i64: 2>, scalar_prefetch = 0 : i64, scratch_operands = 0 : i64, tpu.core_type = #tpu.core_type<tc>, window_params = [{transform_indices = @transform_0, window_bounds = array<i64: 16, 512>}, {pipeline_mode = #tpu.pipeline_mode<synchronous>, transform_indices = @transform_1, window_bounds = array<i64: 4, 512, 128>}, {pipeline_mode = #tpu.pipeline_mode<synchronous>, transform_indices = @transform_2, window_bounds = array<i64: 1, 128>}, {pipeline_mode = #tpu.pipeline_mode<synchronous>, transform_indices = @transform_3, window_bounds = array<i64: 8, 1>}, {transform_indices = @transform_4, window_bounds = array<i64: 8, 128>}]} {
    %c0 = arith.constant 0 : index
    %c0_0 = arith.constant 0 : index
    %0 = vector.load %arg3[%c0, %c0_0] : memref<1x128xf32, #tpu.memory_space<vmem>>, vector<1x128xf32>
    %cst = arith.constant 0.000000e+00 : f32
    %1 = vector.broadcast %cst : f32 to vector<8x128xf32>
    %c0_1 = arith.constant 0 : index
    %c0_2 = arith.constant 0 : index
    %2 = vector.load %arg1[%c0_1, %c0_2] : memref<16x512xbf16, #tpu.memory_space<vmem>>, vector<8x512xbf16>
    %c0_3 = arith.constant 0 : index
    %c0_4 = arith.constant 0 : index
    %c0_5 = arith.constant 0 : index
    %3 = vector.load %arg2[%c0_3, %c0_4, %c0_5] : memref<4x512x128xbf16, #tpu.memory_space<vmem>>, vector<1x512x128xbf16>
    %4 = vector.shape_cast %3 : vector<1x512x128xbf16> to vector<512x128xbf16>
    %cst_6 = arith.constant dense<0.000000e+00> : vector<8x128xf32>
    %5 = tpu.matmul %2, %4, %cst_6 {dimension_numbers = #tpu.dot_dimension_numbers<[1], [0], [0], [1], [0, 0, 1, 1], [], []>} : vector<8x512xbf16>, vector<512x128xbf16>, vector<8x128xf32> -> vector<8x128xf32>
    %6 = arith.addf %1, %5 : vector<8x128xf32>
    %c1 = arith.constant 1 : index
    %c0_7 = arith.constant 0 : index
    %7 = vector.load %arg1[%c1, %c0_7] : memref<16x512xbf16, #tpu.memory_space<vmem>>, vector<8x512xbf16>
    %c1_8 = arith.constant 1 : index
    %c0_9 = arith.constant 0 : index
    %c0_10 = arith.constant 0 : index
    %8 = vector.load %arg2[%c1_8, %c0_9, %c0_10] : memref<4x512x128xbf16, #tpu.memory_space<vmem>>, vector<1x512x128xbf16>
    %9 = vector.shape_cast %8 : vector<1x512x128xbf16> to vector<512x128xbf16>
    %cst_11 = arith.constant dense<0.000000e+00> : vector<8x128xf32>
    %10 = tpu.matmul %7, %9, %cst_11 {dimension_numbers = #tpu.dot_dimension_numbers<[1], [0], [0], [1], [0, 0, 1, 1], [], []>} : vector<8x512xbf16>, vector<512x128xbf16>, vector<8x128xf32> -> vector<8x128xf32>
    %11 = arith.addf %6, %10 : vector<8x128xf32>
    %c3 = arith.constant 3 : index
    %c0_12 = arith.constant 0 : index
    %12 = vector.load %arg1[%c3, %c0_12] : memref<16x512xbf16, #tpu.memory_space<vmem>>, vector<8x512xbf16>
    %c2 = arith.constant 2 : index
    %c0_13 = arith.constant 0 : index
    %c0_14 = arith.constant 0 : index
    %13 = vector.load %arg2[%c2, %c0_13, %c0_14] : memref<4x512x128xbf16, #tpu.memory_space<vmem>>, vector<1x512x128xbf16>
    %14 = vector.shape_cast %13 : vector<1x512x128xbf16> to vector<512x128xbf16>
    %cst_15 = arith.constant dense<0.000000e+00> : vector<8x128xf32>
    %15 = tpu.matmul %12, %14, %cst_15 {dimension_numbers = #tpu.dot_dimension_numbers<[1], [0], [0], [1], [0, 0, 1, 1], [], []>} : vector<8x512xbf16>, vector<512x128xbf16>, vector<8x128xf32> -> vector<8x128xf32>
    %16 = arith.addf %11, %15 : vector<8x128xf32>
    %c4 = arith.constant 4 : index
    %c0_16 = arith.constant 0 : index
    %17 = vector.load %arg1[%c4, %c0_16] : memref<16x512xbf16, #tpu.memory_space<vmem>>, vector<8x512xbf16>
    %c3_17 = arith.constant 3 : index
    %c0_18 = arith.constant 0 : index
    %c0_19 = arith.constant 0 : index
    %18 = vector.load %arg2[%c3_17, %c0_18, %c0_19] : memref<4x512x128xbf16, #tpu.memory_space<vmem>>, vector<1x512x128xbf16>
    %19 = vector.shape_cast %18 : vector<1x512x128xbf16> to vector<512x128xbf16>
    %cst_20 = arith.constant dense<0.000000e+00> : vector<8x128xf32>
    %20 = tpu.matmul %17, %19, %cst_20 {dimension_numbers = #tpu.dot_dimension_numbers<[1], [0], [0], [1], [0, 0, 1, 1], [], []>} : vector<8x512xbf16>, vector<512x128xbf16>, vector<8x128xf32> -> vector<8x128xf32>
    %21 = arith.addf %16, %20 : vector<8x128xf32>
    %22 = vector.broadcast %0 : vector<1x128xf32> to vector<8x128xf32>
    %23 = arith.addf %21, %22 : vector<8x128xf32>
    %cst_21 = arith.constant 0.000000e+00 : f32
    %24 = vector.broadcast %cst_21 : f32 to vector<8x128xf32>
    %25 = arith.cmpf oge, %23, %24 : vector<8x128xf32>
    %cst_22 = arith.constant 2.000000e-01 : f32
    %26 = vector.broadcast %cst_22 : f32 to vector<8x128xf32>
    %27 = arith.mulf %26, %23 : vector<8x128xf32>
    %28 = arith.select %25, %23, %27 : vector<8x128xi1>, vector<8x128xf32>
    %c0_23 = arith.constant 0 : index
    %c0_24 = arith.constant 0 : index
    %29 = vector.load %arg4[%c0_23, %c0_24] : memref<8x1xf32, #tpu.memory_space<vmem>>, vector<8x1xf32>
    %30 = vector.broadcast %29 : vector<8x1xf32> to vector<8x128xf32>
    %31 = arith.mulf %28, %30 : vector<8x128xf32>
    %32 = arith.truncf %31 : vector<8x128xf32> to vector<8x128xbf16>
    %c0_25 = arith.constant 0 : index
    %c0_26 = arith.constant 0 : index
    %33 = vector.load %arg5[%c0_25, %c0_26] : memref<8x128xbf16, #tpu.memory_space<vmem>>, vector<8x128xbf16>
    tpu.vector_store %arg5[%c0_25, %c0_26], %32 {strides = array<i32>} : memref<8x128xbf16, #tpu.memory_space<vmem>>, vector<8x128xbf16>,
    return
  }
  func.func @transform_0(%arg0: i32) -> (i32, i32) {
    %c0_i32 = arith.constant 0 : i32
    %c0_i32_0 = arith.constant 0 : i32
    return %arg0, %c0_i32 : i32, i32
  }
  func.func @transform_1(%arg0: i32) -> (i32, i32, i32) {
    %c0_i32 = arith.constant 0 : i32
    %c0_i32_0 = arith.constant 0 : i32
    %c0_i32_1 = arith.constant 0 : i32
    %c0_i32_2 = arith.constant 0 : i32
    return %c0_i32, %c0_i32_0, %c0_i32_1 : i32, i32, i32
  }
  func.func @transform_2(%arg0: i32) -> (i32, i32) {
    %c0_i32 = arith.constant 0 : i32
    %c0_i32_0 = arith.constant 0 : i32
    %c0_i32_1 = arith.constant 0 : i32
    return %c0_i32, %c0_i32_0 : i32, i32
  }
  func.func @transform_3(%arg0: i32) -> (i32, i32) {
    %c0_i32 = arith.constant 0 : i32
    %c0_i32_0 = arith.constant 0 : i32
    %c0_i32_1 = arith.constant 0 : i32
    return %c0_i32, %c0_i32_0 : i32, i32
  }
  func.func @transform_4(%arg0: i32) -> (i32, i32) {
    %c0_i32 = arith.constant 0 : i32
    %c0_i32_0 = arith.constant 0 : i32
    return %arg0, %c0_i32 : i32, i32
  }
}

</mosaic_0001>

<bundles_post_ra>
// kernel: dcgan_discriminator.4
= control target key start
LH: loop header
LB: loop body
LE: loop exit
PB: predicated region body
PF: predicated region fallthrough
CT: control target
= control target key end

     0   :  { %s1164_s12 = smov 0   ;;  %s1292_s0 = inlined_call_operand.vmem [shape: bf16[512,48], index: 0, kind: input, shape index: {}]   ;;  %s1293_s1 = inlined_call_operand.vmem [shape: bf16[48,128], index: 1, kind: input, shape index: {}]   ;;  %s1294_s2 = inlined_call_operand.vmem [shape: f32[1,128], index: 2, kind: input, shape index: {}]   ;;  %s1295_s3 = inlined_call_operand.vmem [shape: bf16[512,128], index: 3, kind: output, shape index: {}]  }
   0x1 LB: > { %s840_s13 = sadd.s32 4294967295, %s1142_s12   ;;  %p844_p0 = scmp.ge.s32.totalorder %s1142_s12, 1  ;;  %s1142_s12 = sphi %s1164_s12, %s13_s12  }
   0x2   : > { %p138_p1 = scmp.lt.s32.totalorder %s1142_s12, 3 }
   0x4   : > { %p139_p2 = pnand %p844_p0, %p138_p1 }
   0x5   : > { %v1117_v0 = vld [vmem:[%s1293_s1] sm:$0xff] (!%p139_p2)   ;;  %s845_s16 = sshll.u32 (!%p139_p2), %s840_s13, 5  ;;  %v1118_v1 = vld [vmem:[%s1293_s1 + $0x8] sm:$0xff] (!%p139_p2)   ;;  %v1119_v2 = vld [vmem:[%s1293_s1 + $0x10] sm:$0xff] (!%p139_p2)   ;;  %vm318_vm0 = vcmask (!%p139_p2), 392192  }
   0x6   : > { %142 = sbr.rel (%p139_p2) target bundleno = 273 (0x111), region = 32  ;;  %p163_p3 = scmp.lt.s32.totalorder (!%p139_p2), %s845_s16, 63  ;;  %1065 = vmatprep.subr.bf16.mxu0 (!%p139_p2), %v1117_v0  ;;  %1103 = vmatprep.subr.bf16.mxu1 (!%p139_p2), %v1117_v0  ;;  %v1226_v19 = vld [vmem:[%s1294_s2] ss:$0 sm:$0xff] (!%p139_p2) }
   0x7   : > { %1066 = vmatpush3.bf16.msra.mxu0 (!%p139_p2), %v1117_v0  ;;  %1106 = vmatpush3.bf16.msra.mxu1 (!%p139_p2), %v1117_v0 }
   0x8   : > { %1067 = vmatprep.subr.bf16.mxu0 (!%p139_p2), %v1118_v1  ;;  %1104 = vmatprep.subr.bf16.mxu1 (!%p139_p2), %v1118_v1 }
   0xb   : > { %1068 = vmatpush3.bf16.msra.mxu0 (!%p139_p2), %v1118_v1  ;;  %1107 = vmatpush3.bf16.msra.mxu1 (!%p139_p2), %v1118_v1 }
   0xc   : > { %1069 = vmatprep.subr.bf16.mxu0 (!%p139_p2), %v1119_v2  ;;  %1105 = vmatprep.subr.bf16.mxu1 (!%p139_p2), %v1119_v2 }
   0xd   : > { %s1297_s16 = smov (!%p163_p3, %s845_s16), 63 }
   0xe   : > { %s846_s21 = sshll.u32 %s1297_s16, 2 }
   0xf   : > { %s1189_s24 = scalar_lea.vmem %s1292_s0, %s846_s21  ;;  %1070 = vmatpush3.bf16.msra.mxu0 %v1119_v2  ;;  %1108 = vmatpush3.bf16.msra.mxu1 %v1119_v2  ;;  %s1243_s29 = scalar_lea.vmem %s1295_s3, %s846_s21 }
  0x10   : > { %v1120_v3 = vld [vmem:[%s1189_s24] sm:$0xff]   ;;  %v1122_v5 = vld [vmem:[%s1189_s24 + $0x8] sm:$0xff]   ;;  %v1124_v7 = vld [vmem:[%s1189_s24 + $0x10] sm:$0xff]  }
  0x11   : > { %v1121_v4 = vld [vmem:[%s1189_s24 + $0x40] sm:$0xff]   ;;  %1071 = vmatprep.mubr.msk.bf16.mxu0 %vm318_vm0, %v1120_v3  ;;  %v1123_v6 = vld [vmem:[%s1189_s24 + $0x48] sm:$0xff]   ;;  %v1125_v8 = vld [vmem:[%s1189_s24 + $0x50] sm:$0xff]  }
  0x12   : > { %1087 = vmatprep.mubr.msk.bf16.mxu1 %vm318_vm0, %v1121_v4  ;;  %1072 = vmatmul.mubr.msk.bf16.vlgmr.msra.gmra.mrb[0].mxu0 %vm318_vm0, %v1122_v5  ;;  %v1126_v9 = vld [vmem:[%s1189_s24 + $0x18] sm:$0xff]   ;;  %v1128_v11 = vld [vmem:[%s1189_s24 + $0x20] sm:$0xff]   ;;  %v1130_v13 = vld [vmem:[%s1189_s24 + $0x28] sm:$0xff]  }
  0x13   : > { %1088 = vmatmul.mubr.msk.bf16.vlgmr.msra.gmra.mrb[0].mxu1 %vm318_vm0, %v1123_v6  ;;  %1075 = vmatprep.mubr.msk.bf16.mxu0 %vm318_vm0, %v1124_v7  ;;  %v1127_v10 = vld [vmem:[%s1189_s24 + $0x58] sm:$0xff]   ;;  %v1129_v12 = vld [vmem:[%s1189_s24 + $0x60] sm:$0xff]   ;;  %v1131_v14 = vld [vmem:[%s1189_s24 + $0x68] sm:$0xff]  }
  0x14   : > { %1091 = vmatprep.mubr.msk.bf16.mxu1 %vm318_vm0, %v1125_v8  ;;  %v1132_v15 = vld [vmem:[%s1189_s24 + $0x30] sm:$0xff]   ;;  %v1134_v17 = vld [vmem:[%s1189_s24 + $0x38] sm:$0xff]  }
  0x15   : > { %v1133_v16 = vld [vmem:[%s1189_s24 + $0x70] sm:$0xff]   ;;  %v1135_v18 = vld [vmem:[%s1189_s24 + $0x78] sm:$0xff]  }
  0x1a   : > { %1076 = vmatmul.mubr.msk.bf16.gmra.mrb[4].mxu0 %vm318_vm0, %v1126_v9 }
  0x1b   : > { %1092 = vmatmul.mubr.msk.bf16.gmra.mrb[4].mxu1 %vm318_vm0, %v1127_v10  ;;  %1079 = vmatprep.mubr.msk.bf16.mxu0 %vm318_vm0, %v1128_v11 }
  0x1c   : > { %1095 = vmatprep.mubr.msk.bf16.mxu1 %vm318_vm0, %v1129_v12 }
  0x22   : > { %1080 = vmatmul.mubr.msk.bf16.gmra.mrb[8].mxu0 %vm318_vm0, %v1130_v13 }
  0x23   : > { %1096 = vmatmul.mubr.msk.bf16.gmra.mrb[8].mxu1 %vm318_vm0, %v1131_v14  ;;  %1083 = vmatprep.mubr.msk.bf16.mxu0 %vm318_vm0, %v1132_v15 }
  0x24   : > { %1099 = vmatprep.mubr.msk.bf16.mxu1 %vm318_vm0, %v1133_v16 }
  0x2a   : > { %1084 = vmatmul.mubr.msk.bf16.gmra.mrb[12].mxu0 %vm318_vm0, %v1134_v17 }
  0x2b   : > { %1100 = vmatmul.mubr.msk.bf16.gmra.mrb[12].mxu1 %vm318_vm0, %v1135_v18 }
  0xe5   : > { %v1073_v20 = vpop.f32.mrb[0].mxu0 }
  0xe6   : > { %v1089_v21 = vpop.f32.mrb[0].mxu1  ;;  %v410_v22 = vadd.f32 %v1073_v20, %v1226_v19  ;;  %v401_v24 = vpop.f32.mrb[1].mxu0 }
  0xe7   : > { %v474_v23 = vadd.f32 %v1089_v21, %v1226_v19  ;;  %v465_v25 = vpop.f32.mrb[1].mxu1  ;;  %v402_v26 = vadd.f32 %v1226_v19, %v401_v24  ;;  %v1074_v28 = vpop.f32.mrb[2].mxu0 }
  0xe8   : > { %v466_v27 = vadd.f32 %v1226_v19, %v465_v25  ;;  %v1090_v29 = vpop.f32.mrb[2].mxu1  ;;  %vm530_vm1 = vcmp.ge.f32.partialorder %v410_v22, 0.0  ;;  %v562_v30 = vmul.f32 0.2, %v410_v22  ;;  %v413_v34 = vadd.f32 %v1074_v28, %v1226_v19  ;;  %v404_v36 = vpop.f32.mrb[3].mxu0 }
  0xe9   : > { %vm546_vm2 = vcmp.ge.f32.partialorder %v474_v23, 0.0  ;;  %v578_v31 = vmul.f32 0.2, %v474_v23  ;;  %vm528_vm3 = vcmp.ge.f32.partialorder %v402_v26, 0.0  ;;  %v560_v32 = vmul.f32 0.2, %v402_v26 }
  0xea   : > { %vm544_vm4 = vcmp.ge.f32.partialorder %v466_v27, 0.0  ;;  %v576_v33 = vmul.f32 0.2, %v466_v27  ;;  %v477_v35 = vadd.f32 %v1090_v29, %v1226_v19  ;;  %v468_v37 = vpop.f32.mrb[3].mxu1  ;;  %v594_v38 = vsel %vm530_vm1, %v410_v22, %v562_v30 }
  0xeb   : > { %v610_v39 = vsel %vm546_vm2, %v474_v23, %v578_v31  ;;  %v405_v40 = vadd.f32 %v1226_v19, %v404_v36  ;;  %v469_v41 = vadd.f32 %v1226_v19, %v468_v37  ;;  %vm531_vm5 = vcmp.ge.f32.partialorder %v413_v34, 0.0 }
  0xec   : > { %v563_v42 = vmul.f32 0.2, %v413_v34  ;;  %vm547_vm6 = vcmp.ge.f32.partialorder %v477_v35, 0.0  ;;  %v579_v43 = vmul.f32 0.2, %v477_v35  ;;  %v592_v46 = vsel %vm528_vm3, %v402_v26, %v560_v32 }
  0xed   : > { %vm529_vm7 = vcmp.ge.f32.partialorder %v405_v40, 0.0  ;;  %v561_v44 = vmul.f32 0.2, %v405_v40  ;;  %vm545_vm8 = vcmp.ge.f32.partialorder %v469_v41, 0.0  ;;  %v577_v45 = vmul.f32 0.2, %v469_v41 }
  0xee   : > { %v608_v47 = vsel %vm544_vm4, %v466_v27, %v576_v33  ;;  %v595_v48 = vsel %vm531_vm5, %v413_v34, %v563_v42  ;;  %v611_v49 = vsel %vm547_vm6, %v477_v35, %v579_v43  ;;  %v1077_v50 = vpop.f32.mrb[4].mxu0  ;;  %v1093_v51 = vpop.f32.mrb[4].mxu1 }
  0xef   : > { %v959_v52 = vpack.c.bf16 %v595_v48, %v594_v38  ;;  %v999_v53 = vpack.c.bf16 %v611_v49, %v610_v39  ;;  %v593_v54 = vsel %vm529_vm7, %v405_v40, %v561_v44  ;;  %v609_v55 = vsel %vm545_vm8, %v469_v41, %v577_v45  ;;  %v417_v56 = vpop.f32.mrb[5].mxu0  ;;  %v481_v57 = vpop.f32.mrb[5].mxu1 }
  0xf0   : > { %v954_v58 = vpack.c.bf16 %v593_v54, %v592_v46  ;;  %v994_v59 = vpack.c.bf16 %v609_v55, %v608_v47  ;;  %v426_v60 = vadd.f32 %v1077_v50, %v1226_v19  ;;  %v490_v61 = vadd.f32 %v1093_v51, %v1226_v19  ;;  %v1078_v62 = vpop.f32.mrb[6].mxu0  ;;  %v1094_v63 = vpop.f32.mrb[6].mxu1 }
  0xf1   : > { %1031 = vst [vmem:[%s1243_s29 + $0x8] sm:$0xff] %v959_v52   ;;  %1039 = vst [vmem:[%s1243_s29 + $0x48] sm:$0xff] %v999_v53   ;;  %v418_v0 = vadd.f32 %v1226_v19, %v417_v56  ;;  %v482_v1 = vadd.f32 %v1226_v19, %v481_v57  ;;  %v429_v2 = vadd.f32 %v1078_v62, %v1226_v19  ;;  %v420_v4 = vpop.f32.mrb[7].mxu0  ;;  %v484_v5 = vpop.f32.mrb[7].mxu1 }
  0xf2   : > { %v493_v3 = vadd.f32 %v1094_v63, %v1226_v19  ;;  %955 = vst [vmem:[%s1243_s29] sm:$0xff] %v954_v58   ;;  %1038 = vst [vmem:[%s1243_s29 + $0x40] sm:$0xff] %v994_v59   ;;  %vm534_vm9 = vcmp.ge.f32.partialorder %v426_v60, 0.0  ;;  %v566_v6 = vmul.f32 0.2, %v426_v60  ;;  %vm550_vm10 = vcmp.ge.f32.partialorder %v490_v61, 0.0 }
  0xf3   : > { %v582_v7 = vmul.f32 0.2, %v490_v61  ;;  %vm532_vm11 = vcmp.ge.f32.partialorder %v418_v0, 0.0  ;;  %v564_v8 = vmul.f32 0.2, %v418_v0  ;;  %vm548_vm12 = vcmp.ge.f32.partialorder %v482_v1, 0.0 }
  0xf4   : > { %v598_v9 = vsel %vm534_vm9, %v426_v60, %v566_v6  ;;  %v580_v10 = vmul.f32 0.2, %v482_v1  ;;  %vm535_vm13 = vcmp.ge.f32.partialorder %v429_v2, 0.0  ;;  %v567_v11 = vmul.f32 0.2, %v429_v2 }
  0xf5   : > { %v614_v12 = vsel %vm550_vm10, %v490_v61, %v582_v7  ;;  %v596_v13 = vsel %vm532_vm11, %v418_v0, %v564_v8  ;;  %vm551_vm14 = vcmp.ge.f32.partialorder %v493_v3, 0.0  ;;  %v583_v14 = vmul.f32 0.2, %v493_v3  ;;  %v1081_v15 = vpop.f32.mrb[8].mxu0 }
  0xf6   : > { %v1097_v16 = vpop.f32.mrb[8].mxu1  ;;  %v599_v17 = vsel %vm535_vm13, %v429_v2, %v567_v11  ;;  %v421_v18 = vadd.f32 %v1226_v19, %v420_v4  ;;  %v485_v20 = vadd.f32 %v1226_v19, %v484_v5  ;;  %v442_v21 = vadd.f32 %v1081_v15, %v1226_v19  ;;  %v433_v22 = vpop.f32.mrb[9].mxu0 }
  0xf7   : > { %v497_v23 = vpop.f32.mrb[9].mxu1  ;;  %v969_v24 = vpack.c.bf16 %v599_v17, %v598_v9  ;;  %v615_v25 = vsel %vm551_vm14, %v493_v3, %v583_v14  ;;  %v506_v26 = vadd.f32 %v1097_v16, %v1226_v19  ;;  %v434_v27 = vadd.f32 %v1226_v19, %v433_v22  ;;  %v1082_v28 = vpop.f32.mrb[10].mxu0 }
  0xf8   : > { %v1098_v29 = vpop.f32.mrb[10].mxu1  ;;  %v1009_v30 = vpack.c.bf16 %v615_v25, %v614_v12  ;;  %vm533_vm15 = vcmp.ge.f32.partialorder %v421_v18, 0.0  ;;  %v565_v31 = vmul.f32 0.2, %v421_v18  ;;  %vm549_vm0 = vcmp.ge.f32.partialorder %v485_v20, 0.0  ;;  %v436_v32 = vpop.f32.mrb[11].mxu0 }
  0xf9   : > { %v500_v33 = vpop.f32.mrb[11].mxu1  ;;  %1033 = vst [vmem:[%s1243_s29 + $0x18] sm:$0xff] %v969_v24   ;;  %v581_v34 = vmul.f32 0.2, %v485_v20  ;;  %vm538_vm1 = vcmp.ge.f32.partialorder %v442_v21, 0.0  ;;  %vm554_vm2 = vcmp.ge.f32.partialorder %v506_v26, 0.0  ;;  %v612_v36 = vsel %vm548_vm12, %v482_v1, %v580_v10 }
  0xfa   : > { %v570_v35 = vmul.f32 0.2, %v442_v21  ;;  %1041 = vst [vmem:[%s1243_s29 + $0x58] sm:$0xff] %v1009_v30   ;;  %v597_v37 = vsel %vm533_vm15, %v421_v18, %v565_v31  ;;  %v586_v38 = vmul.f32 0.2, %v506_v26  ;;  %vm536_vm3 = vcmp.ge.f32.partialorder %v434_v27, 0.0 }
  0xfb   : > { %v964_v39 = vpack.c.bf16 %v597_v37, %v596_v13  ;;  %v613_v40 = vsel %vm549_vm0, %v485_v20, %v581_v34  ;;  %v568_v41 = vmul.f32 0.2, %v434_v27  ;;  %v498_v42 = vadd.f32 %v1226_v19, %v497_v23 }
  0xfc   : > { %v1004_v43 = vpack.c.bf16 %v613_v40, %v612_v36  ;;  %v602_v44 = vsel %vm538_vm1, %v442_v21, %v570_v35  ;;  %v618_v45 = vsel %vm554_vm2, %v506_v26, %v586_v38  ;;  %v445_v46 = vadd.f32 %v1082_v28, %v1226_v19 }
  0xfd   : > { %1032 = vst [vmem:[%s1243_s29 + $0x10] sm:$0xff] %v964_v39   ;;  %vm552_vm4 = vcmp.ge.f32.partialorder %v498_v42, 0.0  ;;  %v584_v47 = vmul.f32 0.2, %v498_v42  ;;  %v509_v48 = vadd.f32 %v1098_v29, %v1226_v19  ;;  %v437_v49 = vadd.f32 %v1226_v19, %v436_v32  ;;  %v1085_v50 = vpop.f32.mrb[12].mxu0 }
  0xfe   : > { %v1101_v51 = vpop.f32.mrb[12].mxu1  ;;  %1040 = vst [vmem:[%s1243_s29 + $0x50] sm:$0xff] %v1004_v43   ;;  %vm539_vm5 = vcmp.ge.f32.partialorder %v445_v46, 0.0  ;;  %v571_v52 = vmul.f32 0.2, %v445_v46  ;;  %v501_v53 = vadd.f32 %v1226_v19, %v500_v33  ;;  %v458_v54 = vadd.f32 %v1085_v50, %v1226_v19  ;;  %v449_v55 = vpop.f32.mrb[13].mxu0 }
  0xff   : > { %v513_v56 = vpop.f32.mrb[13].mxu1  ;;  %v600_v57 = vsel %vm536_vm3, %v434_v27, %v568_v41  ;;  %vm555_vm6 = vcmp.ge.f32.partialorder %v509_v48, 0.0  ;;  %v587_v58 = vmul.f32 0.2, %v509_v48  ;;  %vm537_vm7 = vcmp.ge.f32.partialorder %v437_v49, 0.0  ;;  %v1086_v59 = vpop.f32.mrb[14].mxu0 }
 0x100   : > { %v1102_v60 = vpop.f32.mrb[14].mxu1  ;;  %v603_v61 = vsel %vm539_vm5, %v445_v46, %v571_v52  ;;  %v569_v62 = vmul.f32 0.2, %v437_v49  ;;  %vm553_vm8 = vcmp.ge.f32.partialorder %v501_v53, 0.0  ;;  %v585_v63 = vmul.f32 0.2, %v501_v53 }
 0x101   : > { %v452_v0 = vpop.f32.mrb[15].mxu0  ;;  %v616_v1 = vsel %vm552_vm4, %v498_v42, %v584_v47  ;;  %v979_v2 = vpack.c.bf16 %v603_v61, %v602_v44  ;;  %v619_v3 = vsel %vm555_vm6, %v509_v48, %v587_v58  ;;  %v574_v4 = vmul.f32 0.2, %v458_v54  ;;  %v516_v5 = vpop.f32.mrb[15].mxu1 }
 0x102   : > { %v1019_v6 = vpack.c.bf16 %v619_v3, %v618_v45  ;;  %v601_v7 = vsel %vm537_vm7, %v437_v49, %v569_v62  ;;  %v617_v8 = vsel %vm553_vm8, %v501_v53, %v585_v63  ;;  %v522_v9 = vadd.f32 %v1101_v51, %v1226_v19 }
 0x103   : > { %1035 = vst [vmem:[%s1243_s29 + $0x28] sm:$0xff] %v979_v2   ;;  %v974_v10 = vpack.c.bf16 %v601_v7, %v600_v57  ;;  %v1014_v11 = vpack.c.bf16 %v617_v8, %v616_v1  ;;  %vm542_vm9 = vcmp.ge.f32.partialorder %v458_v54, 0.0  ;;  %v450_v12 = vadd.f32 %v1226_v19, %v449_v55 }
 0x104   : > { %1043 = vst [vmem:[%s1243_s29 + $0x68] sm:$0xff] %v1019_v6   ;;  %vm558_vm10 = vcmp.ge.f32.partialorder %v522_v9, 0.0  ;;  %v590_v13 = vmul.f32 0.2, %v522_v9  ;;  %v514_v14 = vadd.f32 %v1226_v19, %v513_v56  ;;  %v461_v15 = vadd.f32 %v1086_v59, %v1226_v19 }
 0x105   : > { %1034 = vst [vmem:[%s1243_s29 + $0x20] sm:$0xff] %v974_v10   ;;  %1042 = vst [vmem:[%s1243_s29 + $0x60] sm:$0xff] %v1014_v11   ;;  %v572_v16 = vmul.f32 0.2, %v450_v12  ;;  %v525_v17 = vadd.f32 %v1102_v60, %v1226_v19  ;;  %v453_v18 = vadd.f32 %v1226_v19, %v452_v0  ;;  %v606_v20 = vsel %vm542_vm9, %v458_v54, %v574_v4 }
 0x106   : > { %vm540_vm11 = vcmp.ge.f32.partialorder %v450_v12, 0.0  ;;  %vm543_vm12 = vcmp.ge.f32.partialorder %v461_v15, 0.0  ;;  %v622_v21 = vsel %vm558_vm10, %v522_v9, %v590_v13  ;;  %v575_v22 = vmul.f32 0.2, %v461_v15 }
 0x107   : > { %vm559_vm13 = vcmp.ge.f32.partialorder %v525_v17, 0.0  ;;  %v591_v23 = vmul.f32 0.2, %v525_v17  ;;  %vm556_vm14 = vcmp.ge.f32.partialorder %v514_v14, 0.0  ;;  %vm541_vm15 = vcmp.ge.f32.partialorder %v453_v18, 0.0 }
 0x108   : > { %v573_v24 = vmul.f32 0.2, %v453_v18  ;;  %v517_v25 = vadd.f32 %v1226_v19, %v516_v5  ;;  %v604_v26 = vsel %vm540_vm11, %v450_v12, %v572_v16  ;;  %v588_v27 = vmul.f32 0.2, %v514_v14 }
 0x109   : > { %v607_v28 = vsel %vm543_vm12, %v461_v15, %v575_v22  ;;  %v623_v29 = vsel %vm559_vm13, %v525_v17, %v591_v23 }
 0x10a   : > { %v989_v30 = vpack.c.bf16 %v607_v28, %v606_v20  ;;  %v1029_v31 = vpack.c.bf16 %v623_v29, %v622_v21  ;;  %v605_v32 = vsel %vm541_vm15, %v453_v18, %v573_v24  ;;  %vm557_vm0 = vcmp.ge.f32.partialorder %v517_v25, 0.0 }
 0x10b   : > { %v984_v33 = vpack.c.bf16 %v605_v32, %v604_v26  ;;  %v589_v34 = vmul.f32 0.2, %v517_v25  ;;  %v620_v35 = vsel %vm556_vm14, %v514_v14, %v588_v27 }
 0x10c   : > { %1037 = vst [vmem:[%s1243_s29 + $0x38] sm:$0xff] %v989_v30   ;;  %1045 = vst [vmem:[%s1243_s29 + $0x78] sm:$0xff] %v1029_v31  }
 0x10d   : > { %1036 = vst [vmem:[%s1243_s29 + $0x30] sm:$0xff] %v984_v33   ;;  %v621_v36 = vsel %vm557_vm0, %v517_v25, %v589_v34 }
 0x10e   : > { %v1024_v37 = vpack.c.bf16 %v621_v36, %v620_v35 }
 0x110   : > { %1044 = vst [vmem:[%s1243_s29 + $0x70] sm:$0xff] %v1024_v37  }
 0x111 PF: > { %s13_s12 = sadd.s32 1, %s1142_s12  }
 0x112   : > { %p10_p4 = scmp.ge.s32.totalorder %s13_s12, 4  }
 0x114   :  { %12 = sbr.rel (!%p10_p4) target bundleno = 1 (0x1), region = 62 }

// kernel: dcgan_discriminator.5
= control target key start
LH: loop header
LB: loop body
LE: loop exit
PB: predicated region body
PF: predicated region fallthrough
CT: control target
= control target key end

     0   :  { %s3694_s15 = smov 0   ;;  %s4667_s0 = inlined_call_operand.vmem [shape: bf16[176,512], index: 0, kind: input, shape index: {}]   ;;  %s4668_s1 = inlined_call_operand.vmem [shape: bf16[4,512,128], index: 1, kind: input, shape index: {}]   ;;  %s4669_s2 = inlined_call_operand.vmem [shape: f32[1,128], index: 2, kind: input, shape index: {}]   ;;  %s4670_s3 = inlined_call_operand.vmem [shape: f32[72,1], index: 3, kind: input, shape index: {}]   ;;  %s4671_s4 = inlined_call_operand.vmem [shape: bf16[144,128], index: 4, kind: output, shape index: {}]  }
   0x1 LB: > { %s2680_s16 = sadd.s32 4294967295, %s3666_s15   ;;  %p2684_p0 = scmp.ge.s32.totalorder %s3666_s15, 1  ;;  %s3666_s15 = sphi %s3694_s15, %s14_s15  }
   0x2   : > { %p164_p1 = scmp.lt.s32.totalorder %s3666_s15, 3 }
   0x4   : > { %p165_p2 = pnand %p2684_p0, %p164_p1 }
   0x5   : > { %v3480_v0 = vld [vmem:[%s4668_s1 + $0x140] sm:$0xff] (!%p165_p2)   ;;  %v3484_v4 = vld [vmem:[%s4668_s1 + $0x148] sm:$0xff] (!%p165_p2)   ;;  %v3488_v8 = vld [vmem:[%s4668_s1 + $0x150] sm:$0xff] (!%p165_p2)   ;;  %s191_s23 = smul.u32 (!%p165_p2), 11, %s2680_s16  ;;  %vm435_vm0 = vsmask.f32 (!%p165_p2), 7424 }
   0x6   : > { %168 = sbr.rel (%p165_p2) target bundleno = 422 (0x1a6), region = 36  ;;  %v3481_v1 = vld [vmem:[%s4668_s1 + $0x1c0] sm:$0xff] (!%p165_p2)   ;;  %3101 = vmatprep.subr.bf16.mxu0 (!%p165_p2), %v3480_v0  ;;  %v3485_v5 = vld [vmem:[%s4668_s1 + $0x1c8] sm:$0xff] (!%p165_p2)   ;;  %v3489_v9 = vld [vmem:[%s4668_s1 + $0x1d0] sm:$0xff] (!%p165_p2)   ;;  %vm2071_vm1 = vcmask (!%p165_p2), 1046528  }
   0x7   : > { %v3482_v2 = vld [vmem:[%s4668_s1 + $0x100] sm:$0xff] (!%p165_p2)   ;;  %3147 = vmatprep.subr.bf16.mxu1 (!%p165_p2), %v3481_v1  ;;  %v3486_v6 = vld [vmem:[%s4668_s1 + $0x108] sm:$0xff] (!%p165_p2)   ;;  %v3490_v10 = vld [vmem:[%s4668_s1 + $0x110] sm:$0xff] (!%p165_p2)   ;;  %p192_p3 = scmp.lt.s32.totalorder (!%p165_p2), %s191_s23, 21  ;;  %s198_s14 = smul.u32 (!%p165_p2), 9, %s2680_s16 }
   0x8   : > { %v3483_v3 = vld [vmem:[%s4668_s1 + $0x180] sm:$0xff] (!%p165_p2)   ;;  %3102 = vmatpush3.bf16.msra.mxu0 (!%p165_p2), %v3482_v2  ;;  %v3487_v7 = vld [vmem:[%s4668_s1 + $0x188] sm:$0xff] (!%p165_p2)   ;;  %v3491_v11 = vld [vmem:[%s4668_s1 + $0x190] sm:$0xff] (!%p165_p2)  }
   0x9   : > { %3148 = vmatpush3.bf16.msra.mxu1 (!%p165_p2), %v3483_v3  ;;  %3103 = vmatprep.subr.bf16.mxu0 (!%p165_p2), %v3484_v4  ;;  %v3492_v12 = vld [vmem:[%s4668_s1 + $0x158] sm:$0xff] (!%p165_p2)   ;;  %v3496_v16 = vld [vmem:[%s4668_s1 + $0x160] sm:$0xff] (!%p165_p2)   ;;  %v3500_v20 = vld [vmem:[%s4668_s1 + $0x168] sm:$0xff] (!%p165_p2)   ;;  %p199_p4 = scmp.lt.s32.totalorder (!%p165_p2), %s198_s14, 17 }
   0xa   : > { %3149 = vmatprep.subr.bf16.mxu1 (!%p165_p2), %v3485_v5  ;;  %v3493_v13 = vld [vmem:[%s4668_s1 + $0x1d8] sm:$0xff] (!%p165_p2)   ;;  %v3497_v17 = vld [vmem:[%s4668_s1 + $0x1e0] sm:$0xff] (!%p165_p2)   ;;  %v3501_v21 = vld [vmem:[%s4668_s1 + $0x1e8] sm:$0xff] (!%p165_p2)  }
   0xb   : > { %v3494_v14 = vld [vmem:[%s4668_s1 + $0x118] sm:$0xff] (!%p165_p2)   ;;  %v3498_v18 = vld [vmem:[%s4668_s1 + $0x120] sm:$0xff] (!%p165_p2)   ;;  %v3502_v22 = vld [vmem:[%s4668_s1 + $0x128] sm:$0xff] (!%p165_p2)  }
   0xc   : > { %3104 = vmatpush3.bf16.msra.mxu0 (!%p165_p2), %v3486_v6  ;;  %v3495_v15 = vld [vmem:[%s4668_s1 + $0x198] sm:$0xff] (!%p165_p2)   ;;  %v3499_v19 = vld [vmem:[%s4668_s1 + $0x1a0] sm:$0xff] (!%p165_p2)   ;;  %v3503_v23 = vld [vmem:[%s4668_s1 + $0x1a8] sm:$0xff] (!%p165_p2)  }
   0xd   : > { %3150 = vmatpush3.bf16.msra.mxu1 %v3487_v7  ;;  %3105 = vmatprep.subr.bf16.mxu0 %v3488_v8  ;;  %s4673_s23 = smov (!%p192_p3, %s191_s23), 21  ;;  %v3504_v24 = vld [vmem:[%s4668_s1 + $0x170] sm:$0xff]   ;;  %v3508_v28 = vld [vmem:[%s4668_s1 + $0x178] sm:$0xff]   ;;  %v3520_v50 = vld [vmem:[%s4668_s1 + $0x40] sm:$0xff]   ;;  %s4675_s14 = smov (!%p199_p4, %s198_s14), 17 }
   0xe   : > { %3151 = vmatprep.subr.bf16.mxu1 %v3489_v9  ;;  %v3505_v25 = vld [vmem:[%s4668_s1 + $0x1f0] sm:$0xff]   ;;  %s3068_s25 = sshll.u32 %s4673_s23, 4  ;;  %v3509_v29 = vld [vmem:[%s4668_s1 + $0x1f8] sm:$0xff]   ;;  %v3521_v59 = vld [vmem:[%s4668_s1 + $0xc0] sm:$0xff]   ;;  %s2687_s16 = sshll.u32 %s4675_s14, 2 }
   0xf   : > { %v3506_v26 = vld [vmem:[%s4668_s1 + $0x130] sm:$0xff]   ;;  %s3797_s8 = scalar_lea.vmem %s4667_s0, %s3068_s25  ;;  %v3510_v30 = vld [vmem:[%s4668_s1 + $0x138] sm:$0xff]   ;;  %v3522_v7 = vld [vmem:[%s4668_s1] sm:$0xff]   ;;  %s4646_s21 = scalar_lea.vmem %s4671_s4, %s2687_s16 }
  0x10   : > { %3106 = vmatpush3.bf16.msra.mxu0 %v3490_v10  ;;  %v3507_v27 = vld [vmem:[%s4668_s1 + $0x1b0] sm:$0xff]   ;;  %v3511_v31 = vld [vmem:[%s4668_s1 + $0x1b8] sm:$0xff]   ;;  %v206_v32 = vld [vmem:[%s3797_s8] sm:$0xff] }
  0x11   : > { %3152 = vmatpush3.bf16.msra.mxu1 %v3491_v11  ;;  %3107 = vmatprep.subr.bf16.mxu0 %v3492_v12  ;;  %v3807_v33 = vld [vmem:[%s3797_s8 + $0x10] sm:$0xff]  ;;  %v3810_v34 = vld [vmem:[%s3797_s8 + $0x20] sm:$0xff]  ;;  %v207_v37 = vld [vmem:[%s3797_s8 + $0x8] sm:$0xff] }
  0x12   : > { %3153 = vmatprep.subr.bf16.mxu1 %v3493_v13  ;;  %v3813_v35 = vld [vmem:[%s3797_s8 + $0x30] sm:$0xff]  ;;  %v3816_v36 = vcombine.high %v206_v32, %v3807_v33  ;;  %v3820_v38 = vld [vmem:[%s3797_s8 + $0x18] sm:$0xff]  ;;  %v3823_v39 = vcombine.low %v206_v32, %v3807_v33  ;;  %v3830_v41 = vld [vmem:[%s3797_s8 + $0x28] sm:$0xff] }
  0x13   : > { %v3827_v40 = vcombine.high %v3810_v34, %v3813_v35  ;;  %v3833_v42 = vld [vmem:[%s3797_s8 + $0x38] sm:$0xff]  ;;  %v3836_v43 = vcombine.high %v207_v37, %v3820_v38  ;;  %v3840_v44 = vcombine.low %v3810_v34, %v3813_v35  ;;  %v3843_v45 = vcombine.low %v207_v37, %v3820_v38  ;;  %v3524_v10 = vld [vmem:[%s4668_s1 + $0x48] sm:$0xff]  }
  0x14   : > { %3108 = vmatpush3.bf16.msra.mxu0 %v3494_v14  ;;  %v449_v46 = vshrl.u32 %v3816_v36, 16  ;;  %v451_v47 = vshll.u32 %v3816_v36, 16  ;;  %v3849_v48 = vcombine.high %v3830_v41, %v3833_v42  ;;  %v437_v49 = vshrl.u32 %v3823_v39, 16  ;;  %v3523_v14 = vld [vmem:[%s4668_s1 + $0x80] sm:$0xff]  }
  0x15   : > { %3154 = vmatpush3.bf16.msra.mxu1 %v3495_v15  ;;  %3109 = vmatprep.subr.bf16.mxu0 %v3496_v16  ;;  %v456_v51 = vshll.u32 %v3827_v40, 16  ;;  %v473_v52 = vshrl.u32 %v3836_v43, 16  ;;  %v475_v53 = vshll.u32 %v3836_v43, 16  ;;  %v439_v54 = vshll.u32 %v3823_v39, 16  ;;  %v3525_v16 = vld [vmem:[%s4668_s1 + $0xc8] sm:$0xff]  }
  0x16   : > { %3155 = vmatprep.subr.bf16.mxu1 %v3497_v17  ;;  %v453_v55 = vrot.slane %v451_v47, 1  ;;  %v480_v56 = vshll.u32 %v3849_v48, 16  ;;  %v444_v57 = vshll.u32 %v3840_v44, 16  ;;  %v3863_v58 = vcombine.low %v3830_v41, %v3833_v42 }
  0x17   : > { %v458_v60 = vrot.slane %v456_v51, 1  ;;  %v477_v61 = vrot.slane %v475_v53, 1  ;;  %v441_v62 = vrot.slane %v439_v54, 1  ;;  %v461_v63 = vshrl.u32 %v3843_v45, 16  ;;  %v3534_v53 = vld [vmem:[%s4668_s1 + $0x10] sm:$0xff]  }
  0x18   : > { %3110 = vmatpush3.bf16.msra.mxu0 %v3498_v18  ;;  %v454_v0 = vor.u32 %v453_v55, %v449_v46  ;;  %v482_v1 = vrot.slane %v480_v56, 1  ;;  %v446_v2 = vrot.slane %v444_v57, 1  ;;  %v463_v3 = vshll.u32 %v3843_v45, 16  ;;  %v3526_v18 = vld [vmem:[%s4668_s1 + $0x8] sm:$0xff]  }
  0x19   : > { %3156 = vmatpush3.bf16.msra.mxu1 %v3499_v19  ;;  %3111 = vmatprep.subr.bf16.mxu0 %v3500_v20  ;;  %v478_v4 = vor.u32 %v477_v61, %v473_v52  ;;  %v442_v5 = vor.u32 %v441_v62, %v437_v49  ;;  %v468_v6 = vshll.u32 %v3863_v58, 16  ;;  %v492_v17 = vshrl.u32 %v3827_v40, 16  ;;  %v3532_v49 = vld [vmem:[%s4668_s1 + $0x50] sm:$0xff]  }
  0x1a   : > { %3157 = vmatprep.subr.bf16.mxu1 %v3501_v21  ;;  %v459_v8 = vsel %vm435_vm0, %v454_v0, %v458_v60  ;;  %v465_v9 = vrot.slane %v463_v3, 1  ;;  %v508_v19 = vshrl.u32 %v3849_v48, 16  ;;  %v3527_v21 = vld [vmem:[%s4668_s1 + $0x88] sm:$0xff]   ;;  %v3533_v52 = vld [vmem:[%s4668_s1 + $0xd0] sm:$0xff]  }
  0x1b   : > { %836 = vmatprep.mubr.bf16.mxu0 %v459_v8  ;;  %v483_v11 = vsel %vm435_vm0, %v478_v4, %v482_v1  ;;  %v447_v12 = vsel %vm435_vm0, %v442_v5, %v446_v2  ;;  %v470_v13 = vrot.slane %v468_v6, 1  ;;  %v219_v4 = vld [vmem:[%s3797_s8 + $0x68] sm:$0xff]  ;;  %v3952_v5 = vld [vmem:[%s3797_s8 + $0x78] sm:$0xff] }
  0x1c   : > { %3112 = vmatpush3.bf16.msra.mxu0 %v3502_v22  ;;  %908 = vmatprep.mubr.bf16.mxu1 %v483_v11  ;;  %v466_v15 = vor.u32 %v465_v9, %v461_v63  ;;  %v214_v22 = vld [vmem:[%s3797_s8 + $0x40] sm:$0xff]  ;;  %v510_v37 = vor.u32 %v508_v19, %v482_v1 }
  0x1d   : > { %3158 = vmatpush3.bf16.msra.mxu1 %v3503_v23  ;;  %3113 = vmatprep.subr.bf16.mxu0 %v3504_v24  ;;  %v3897_v23 = vld [vmem:[%s3797_s8 + $0x50] sm:$0xff]  ;;  %v215_v24 = vld [vmem:[%s3797_s8 + $0x48] sm:$0xff]  ;;  %v3932_v54 = vcombine.high %v3813_v35, %v214_v22  ;;  %v218_v63 = vld [vmem:[%s3797_s8 + $0x60] sm:$0xff] }
  0x1e   : > { %3159 = vmatprep.subr.bf16.mxu1 %v3505_v25  ;;  %v471_v20 = vsel %vm435_vm0, %v466_v15, %v470_v13  ;;  %v484_v25 = vshrl.u32 %v3840_v44, 16  ;;  %v3935_v55 = vcombine.low %v3833_v42, %v215_v24  ;;  %v3539_v15 = vld [vmem:[%s4668_s1 + $0xd8] sm:$0xff]  }
  0x20   : > { %3114 = vmatpush3.bf16.msra.mxu0 %v3506_v26  ;;  %v500_v26 = vshrl.u32 %v3863_v58, 16  ;;  %v486_v46 = vor.u32 %v484_v25, %v446_v2  ;;  %v3947_v2 = vld [vmem:[%s3797_s8 + $0x70] sm:$0xff]  ;;  %v3543_v25 = vld [vmem:[%s4668_s1 + $0x98] sm:$0xff]  }
  0x21   : > { %3160 = vmatpush3.bf16.msra.mxu1 %v3507_v27  ;;  %3115 = vmatprep.subr.bf16.mxu0 %v3508_v28  ;;  %v3903_v27 = vcombine.high %v214_v22, %v3897_v23  ;;  %v494_v28 = vor.u32 %v492_v17, %v458_v60  ;;  %v3940_v60 = vcombine.high %v3833_v42, %v215_v24 }
  0x22   : > { %3161 = vmatprep.subr.bf16.mxu1 %v3509_v29  ;;  %v3906_v29 = vld [vmem:[%s3797_s8 + $0x58] sm:$0xff]  ;;  %v502_v57 = vor.u32 %v500_v26, %v470_v13  ;;  %v3955_v42 = vcombine.high %v3897_v23, %v218_v63  ;;  %v3960_v8 = vcombine.high %v218_v63, %v3947_v2 }
  0x23   : > { %v3915_v32 = vcombine.high %v215_v24, %v3906_v29  ;;  %v3918_v47 = vcombine.low %v215_v24, %v3906_v29  ;;  %v524_v3 = vshrl.u32 %v3903_v27, 16  ;;  %v3542_v24 = vld [vmem:[%s4668_s1 + $0x18] sm:$0xff]   ;;  %v3991_v26 = vcombine.high %v3906_v29, %v219_v4 }
  0x24   : > { %3116 = vmatpush3.bf16.msra.mxu0 %v3510_v30  ;;  %v3909_v30 = vcombine.low %v214_v22, %v3897_v23 }
  0x25   : > { %3162 = vmatpush3.bf16.msra.mxu1 %v3511_v31  ;;  %3193 = vmatprep.subr.bf16.mxu0 %v3520_v50  ;;  %v3912_v31 = vcombine.low %v3813_v35, %v214_v22  ;;  %v496_v50 = vshll.u32 %v3903_v27, 16  ;;  %v512_v56 = vshll.u32 %v3915_v32, 16  ;;  %v3535_v35 = vld [vmem:[%s4668_s1 + $0x90] sm:$0xff]   ;;  %v540_v9 = vshrl.u32 %v3915_v32, 16 }
  0x26   : > { %3239 = vmatprep.subr.bf16.mxu1 %v3521_v59  ;;  %v488_v51 = vshll.u32 %v3909_v30, 16  ;;  %v504_v59 = vshll.u32 %v3918_v47, 16  ;;  %v516_v19 = vshrl.u32 %v3909_v30, 16  ;;  %v532_v22 = vshrl.u32 %v3918_v47, 16 }
  0x27   : > { %837 = vmatmul.mubr.bf16.vlgmr.msra.gmra.mrb[0].mxu0 %v447_v12  ;;  %v498_v61 = vrot.slane %v496_v50, 1  ;;  %v514_v0 = vrot.slane %v512_v56, 1  ;;  %v3545_v56 = vld [vmem:[%s4668_s1 + $0xe0] sm:$0xff]  }
  0x28   : > { %3194 = vmatpush3.bf16.msra.mxu0 %v3522_v7  ;;  %909 = vmatmul.mubr.bf16.vlgmr.msra.gmra.mrb[0].mxu1 %v471_v20  ;;  %v490_v62 = vrot.slane %v488_v51, 1  ;;  %v506_v1 = vrot.slane %v504_v59, 1 }
  0x29   : > { %3195 = vmatprep.subr.bf16.mxu0 %v3524_v10  ;;  %3240 = vmatpush3.bf16.msra.mxu1 %v3523_v14  ;;  %v499_v6 = vsel %vm435_vm0, %v494_v28, %v498_v61  ;;  %v3538_v10 = vld [vmem:[%s4668_s1 + $0x58] sm:$0xff]   ;;  %v515_v11 = vsel %vm435_vm0, %v510_v37, %v514_v0  ;;  %v526_v13 = vor.u32 %v524_v3, %v498_v61  ;;  %v3546_v61 = vld [vmem:[%s4668_s1 + $0x20] sm:$0xff]  }
  0x2a   : > { %3241 = vmatprep.subr.bf16.mxu1 %v3525_v16  ;;  %v491_v7 = vsel %vm435_vm0, %v486_v46, %v490_v62  ;;  %844 = vmatprep.mubr.bf16.mxu0 %v499_v6  ;;  %v507_v12 = vsel %vm435_vm0, %v502_v57, %v506_v1  ;;  %v3969_v14 = vcombine.high %v219_v4, %v3952_v5  ;;  %v528_v16 = vshll.u32 %v3960_v8, 16  ;;  %v4023_v6 = vld [vmem:[%s3797_s8 + $0x88] sm:$0xff] }
  0x2b   : > { %916 = vmatprep.mubr.bf16.mxu1 %v515_v11  ;;  %v542_v17 = vor.u32 %v540_v9, %v514_v0  ;;  %v518_v37 = vor.u32 %v516_v19, %v490_v62  ;;  %v534_v51 = vor.u32 %v532_v22, %v506_v1  ;;  %v4005_v57 = vcombine.low %v3906_v29, %v219_v4  ;;  %v3547_v29 = vld [vmem:[%s4668_s1 + $0xa0] sm:$0xff]  }
  0x2c   : > { %3196 = vmatpush3.bf16.msra.mxu0 %v3526_v18  ;;  %v3976_v18 = vcombine.low %v218_v63, %v3947_v2  ;;  %v544_v20 = vshll.u32 %v3969_v14, 16  ;;  %v530_v28 = vrot.slane %v528_v16, 1  ;;  %v4017_v0 = vld [vmem:[%s3797_s8 + $0x80] sm:$0xff]  ;;  %v556_v1 = vshrl.u32 %v3960_v8, 16 }
  0x2d   : > { %3197 = vmatprep.subr.bf16.mxu0 %v3532_v49  ;;  %3242 = vmatpush3.bf16.msra.mxu1 %v3527_v21  ;;  %v3981_v21 = vcombine.low %v219_v4, %v3952_v5  ;;  %v3995_v49 = vcombine.low %v3897_v23, %v218_v63  ;;  %v288_v4 = vld [vmem:[%s3797_s8 + $0x90] sm:$0x11]  ;;  %v572_v9 = vshrl.u32 %v3969_v14, 16 }
  0x2e   : > { %3243 = vmatprep.subr.bf16.mxu1 %v3533_v52  ;;  %v520_v46 = vshll.u32 %v3976_v18, 16  ;;  %v546_v50 = vrot.slane %v544_v20, 1  ;;  %v531_v23 = vsel %vm435_vm0, %v526_v13, %v530_v28  ;;  %v3552_v13 = vld [vmem:[%s4668_s1 + $0x68] sm:$0xff]   ;;  %v548_v16 = vshrl.u32 %v3976_v18, 16 }
  0x2f   : > { %845 = vmatmul.mubr.bf16.gmra.mrb[4].mxu0 %v491_v7  ;;  %v536_v52 = vshll.u32 %v3981_v21, 16  ;;  %v289_v7 = vld [vmem:[%s3797_s8 + $0x98] sm:$0x11]  ;;  %v564_v19 = vshrl.u32 %v3981_v21, 16 }
  0x30   : > { %3198 = vmatpush3.bf16.msra.mxu0 %v3534_v53  ;;  %917 = vmatmul.mubr.bf16.gmra.mrb[4].mxu1 %v507_v12  ;;  %v3544_v53 = vld [vmem:[%s4668_s1 + $0x60] sm:$0xff]   ;;  %v522_v59 = vrot.slane %v520_v46, 1  ;;  %v547_v62 = vsel %vm435_vm0, %v542_v17, %v546_v50  ;;  %v2771_v11 = vcombine.high %v4023_v6, %v289_v7  ;;  %v2768_v12 = vcombine.low %v4017_v0, %v288_v4 }
  0x31   : > { %3199 = vmatprep.subr.bf16.mxu0 %v3538_v10  ;;  %3244 = vmatpush3.bf16.msra.mxu1 %v3535_v35  ;;  %v538_v35 = vrot.slane %v536_v52, 1  ;;  %v2769_v10 = vcombine.high %v4017_v0, %v288_v4  ;;  %v2770_v17 = vcombine.low %v4023_v6, %v289_v7  ;;  %v574_v22 = vor.u32 %v572_v9, %v546_v50  ;;  %v3555_v50 = vld [vmem:[%s4668_s1 + $0xa8] sm:$0xff]   ;;  %v3557_v7 = vld [vmem:[%s4668_s1 + $0xf0] sm:$0xff]  }
  0x32   : > { %3245 = vmatprep.subr.bf16.mxu1 %v3539_v15  ;;  %852 = vmatprep.mubr.bf16.mxu0 %v531_v23  ;;  %v523_v63 = vsel %vm435_vm0, %v518_v37, %v522_v59  ;;  %v558_v15 = vor.u32 %v556_v1, %v530_v28  ;;  %v3553_v37 = vld [vmem:[%s4668_s1 + $0xe8] sm:$0xff]   ;;  %v550_v46 = vor.u32 %v548_v16, %v522_v59  ;;  %v3556_v59 = vld [vmem:[%s4668_s1 + $0x70] sm:$0xff]  }
  0x33   : > { %924 = vmatprep.mubr.bf16.mxu1 %v547_v62  ;;  %v539_v3 = vsel %vm435_vm0, %v534_v51, %v538_v35  ;;  %v560_v20 = vshll.u32 %v2769_v10, 16  ;;  %v566_v51 = vor.u32 %v564_v19, %v538_v35  ;;  %v568_v52 = vshll.u32 %v2770_v17, 16  ;;  %v3554_v28 = vld [vmem:[%s4668_s1 + $0x28] sm:$0xff]   ;;  %v3559_v19 = vld [vmem:[%s4668_s1 + $0xb0] sm:$0xff]  }
  0x34   : > { %3200 = vmatpush3.bf16.msra.mxu0 %v3542_v24  ;;  %v576_v24 = vshll.u32 %v2771_v11, 16  ;;  %v4054_v35 = vcombine.high %v3952_v5, %v4023_v6  ;;  %v583_v9 = vshrl.u32 %v2769_v10, 16  ;;  %v580_v10 = vshrl.u32 %v2768_v12, 16 }
  0x35   : > { %3201 = vmatprep.subr.bf16.mxu0 %v3544_v53  ;;  %3246 = vmatpush3.bf16.msra.mxu1 %v3543_v25  ;;  %v552_v25 = vshll.u32 %v2768_v12, 16  ;;  %v562_v53 = vrot.slane %v560_v20, 1  ;;  %v570_v62 = vrot.slane %v568_v52, 1  ;;  %v3562_v12 = vld [vmem:[%s4668_s1 + $0x38] sm:$0xff]   ;;  %v2907_v52 = vcombine.high %v3820_v38, %v3830_v41 }
  0x36   : > { %3247 = vmatprep.subr.bf16.mxu1 %v3545_v56  ;;  %v578_v56 = vrot.slane %v576_v24, 1  ;;  %v3561_v24 = vld [vmem:[%s4668_s1 + $0xf8] sm:$0xff]  }
  0x37   : > { %853 = vmatmul.mubr.bf16.gmra.mrb[8].mxu0 %v523_v63  ;;  %v554_v23 = vrot.slane %v552_v25, 1  ;;  %v4062_v63 = vcombine.low %v3952_v5, %v4023_v6  ;;  %v563_v1 = vsel %vm435_vm0, %v558_v15, %v562_v53  ;;  %v3558_v5 = vld [vmem:[%s4668_s1 + $0x30] sm:$0xff]   ;;  %v2905_v15 = vcombine.high %v3807_v33, %v3810_v34 }
  0x38   : > { %3202 = vmatpush3.bf16.msra.mxu0 %v3546_v61  ;;  %925 = vmatmul.mubr.bf16.gmra.mrb[8].mxu1 %v539_v3  ;;  %v4047_v61 = vcombine.high %v3947_v2, %v4017_v0  ;;  %v579_v3 = vsel %vm435_vm0, %v574_v22, %v578_v56  ;;  %v585_v16 = vor.u32 %v583_v9, %v562_v53  ;;  %v586_v22 = vshrl.u32 %v2770_v17, 16  ;;  %v3563_v17 = vld [vmem:[%s4668_s1 + $0xb8] sm:$0xff]   ;;  %v3564_v53 = vld [vmem:[%s4668_s1 + $0x240] sm:$0xff]  }
  0x39   : > { %3248 = vmatpush3.bf16.msra.mxu1 %v3547_v29  ;;  %3203 = vmatprep.subr.bf16.mxu0 %v3552_v13  ;;  %v4058_v29 = vcombine.low %v3947_v2, %v4017_v0  ;;  %v555_v4 = vsel %vm435_vm0, %v550_v46, %v554_v23  ;;  %v571_v2 = vsel %vm435_vm0, %v566_v51, %v570_v62  ;;  %v589_v13 = vshrl.u32 %v2771_v11, 16  ;;  %v3560_v11 = vld [vmem:[%s4668_s1 + $0x78] sm:$0xff]  }
  0x3a   : > { %3249 = vmatprep.subr.bf16.mxu1 %v3553_v37  ;;  %860 = vmatprep.mubr.bf16.mxu0 %v563_v1  ;;  %v1486_v25 = vshrl.u32 %v2905_v15, 16  ;;  %v1488_v37 = vshll.u32 %v2905_v15, 16  ;;  %v582_v46 = vor.u32 %v580_v10, %v554_v23  ;;  %v1493_v51 = vshll.u32 %v3932_v54, 16  ;;  %v3565_v23 = vld [vmem:[%s4668_s1 + $0x2c0] sm:$0xff]  }
  0x3b   : > { %932 = vmatprep.mubr.bf16.mxu1 %v579_v3  ;;  %v591_v20 = vor.u32 %v589_v13, %v578_v56  ;;  %v1510_v1 = vshrl.u32 %v2907_v52, 16  ;;  %v1512_v3 = vshll.u32 %v2907_v52, 16  ;;  %v1481_v10 = vshll.u32 %v3912_v31, 16  ;;  %v3576_v52 = vld [vmem:[%s4668_s1 + $0x258] sm:$0xff]  }
  0x3c   : > { %3204 = vmatpush3.bf16.msra.mxu0 %v3554_v28  ;;  %v588_v28 = vor.u32 %v586_v22, %v570_v62  ;;  %v1490_v56 = vrot.slane %v1488_v37, 1  ;;  %v2904_v62 = vcombine.low %v3807_v33, %v3810_v34  ;;  %v3568_v33 = vld [vmem:[%s4668_s1 + $0x248] sm:$0xff]  }
  0x3d   : > { %3250 = vmatpush3.bf16.msra.mxu1 %v3555_v50  ;;  %3205 = vmatprep.subr.bf16.mxu0 %v3556_v59  ;;  %v1495_v50 = vrot.slane %v1493_v51, 1  ;;  %v1514_v9 = vrot.slane %v1512_v3, 1  ;;  %v1545_v3 = vshrl.u32 %v3940_v60, 16 }
  0x3e   : > { %3251 = vmatprep.subr.bf16.mxu1 %v3557_v7  ;;  %v1491_v59 = vor.u32 %v1490_v56, %v1486_v25  ;;  %v1517_v7 = vshll.u32 %v3940_v60, 16  ;;  %v1476_v15 = vshll.u32 %v2904_v62, 16  ;;  %v1533_v56 = vshll.u32 %v3955_v42, 16 }
  0x3f   : > { %861 = vmatmul.mubr.bf16.gmra.mrb[12].mxu0 %v555_v4  ;;  %v1515_v34 = vor.u32 %v1514_v9, %v1510_v1 }
  0x40   : > { %933 = vmatmul.mubr.bf16.gmra.mrb[12].mxu1 %v571_v2  ;;  %868 = vmatprep.mubr.bf16.mxu0 %v585_v16  ;;  %v4104_v4 = vsel %vm435_vm0, %v1491_v59, %v1495_v50  ;;  %v3566_v2 = vld [vmem:[%s4668_s1 + $0x200] sm:$0xff]   ;;  %v1519_v13 = vrot.slane %v1517_v7, 1  ;;  %v2906_v16 = vcombine.low %v3820_v38, %v3830_v41  ;;  %v1478_v22 = vrot.slane %v1476_v15, 1  ;;  %v3572_v38 = vld [vmem:[%s4668_s1 + $0x250] sm:$0xff]  }
  0x41   : > { %3206 = vmatpush3.bf16.msra.mxu0 %v3558_v5  ;;  %940 = vmatprep.mubr.bf16.mxu1 %v591_v20  ;;  %v1474_v5 = vshrl.u32 %v2904_v62, 16  ;;  %v3570_v20 = vld [vmem:[%s4668_s1 + $0x208] sm:$0xff]   ;;  %v3579_v62 = vld [vmem:[%s4668_s1 + $0x298] sm:$0xff]   ;;  %v1535_v7 = vrot.slane %v1533_v56, 1  ;;  %v1553_v56 = vshrl.u32 %v3995_v49, 16 }
  0x42   : > { %3252 = vmatpush3.bf16.msra.mxu1 %v3559_v19  ;;  %3207 = vmatprep.subr.bf16.mxu0 %v3560_v11  ;;  %v4123_v19 = vsel %vm435_vm0, %v1515_v34, %v1519_v13  ;;  %v3571_v11 = vld [vmem:[%s4668_s1 + $0x288] sm:$0xff]   ;;  %v1498_v25 = vshrl.u32 %v2906_v16, 16  ;;  %v1547_v9 = vor.u32 %v1545_v3, %v1519_v13  ;;  %v1525_v34 = vshll.u32 %v3995_v49, 16  ;;  %v3598_v3 = vld [vmem:[%s4668_s1 + $0x238] sm:$0xff]  }
  0x43   : > { %3253 = vmatprep.subr.bf16.mxu1 %v3561_v24  ;;  %v1483_v24 = vrot.slane %v1481_v10, 1  ;;  %v1479_v41 = vor.u32 %v1478_v22, %v1474_v5  ;;  %v3584_v5 = vld [vmem:[%s4668_s1 + $0x268] sm:$0xff]  }
  0x44   : > { %v1527_v10 = vrot.slane %v1525_v34, 1 }
  0x45   : > { %3208 = vmatpush3.bf16.msra.mxu0 %v3562_v12  ;;  %v1500_v12 = vshll.u32 %v2906_v16, 16  ;;  %v4142_v37 = vsel %vm435_vm0, %v1479_v41, %v1483_v24  ;;  %v3585_v16 = vld [vmem:[%s4668_s1 + $0x2e8] sm:$0xff]   ;;  %v1561_v41 = vshrl.u32 %v3955_v42, 16 }
  0x46   : > { %3254 = vmatpush3.bf16.msra.mxu1 %v3563_v17  ;;  %3285 = vmatprep.subr.bf16.mxu0 %v3564_v53  ;;  %v3577_v53 = vld [vmem:[%s4668_s1 + $0x2d8] sm:$0xff]  }
  0x47   : > { %869 = vmatmul.mubr.bf16.gmra.mrb[16].mxu0 %v582_v46  ;;  %3331 = vmatprep.subr.bf16.mxu1 %v3565_v23  ;;  %v3574_v46 = vld [vmem:[%s4668_s1 + $0x210] sm:$0xff]   ;;  %v1502_v17 = vrot.slane %v1500_v12, 1  ;;  %v3578_v23 = vld [vmem:[%s4668_s1 + $0x218] sm:$0xff]   ;;  %v1563_v12 = vor.u32 %v1561_v41, %v1535_v7  ;;  %v2084_v41 = vrot.slane %v3995_v49, 1 }
  0x48   : > { %941 = vmatmul.mubr.bf16.gmra.mrb[16].mxu1 %v588_v28  ;;  %1196 = vmatprep.mubr.bf16.mxu0 %v3816_v36  ;;  %v3567_v36 = vld [vmem:[%s4668_s1 + $0x280] sm:$0xff]  }
  0x49   : > { %1268 = vmatprep.mubr.bf16.mxu1 %v3836_v43  ;;  %v3569_v43 = vld [vmem:[%s4668_s1 + $0x2c8] sm:$0xff]   ;;  %v1503_v28 = vor.u32 %v1502_v17, %v1498_v25 }
  0x4f   : > { %1197 = vmatmul.mubr.bf16.vlgmr.msra.gmra.mrb[20].mxu0 %v3823_v39  ;;  %v3573_v39 = vld [vmem:[%s4668_s1 + $0x2d0] sm:$0xff]  }
  0x50   : > { %1269 = vmatmul.mubr.bf16.vlgmr.msra.gmra.mrb[20].mxu1 %v3843_v45  ;;  %3286 = vmatpush3.bf16.msra.mxu0 %v3566_v2  ;;  %v1505_v45 = vshll.u32 %v3935_v55, 16 }
  0x51   : > { %3332 = vmatpush3.bf16.msra.mxu1 %v3567_v36  ;;  %3287 = vmatprep.subr.bf16.mxu0 %v3568_v33  ;;  %v1521_v36 = vshrl.u32 %v3912_v31, 16 }
  0x52   : > { %3333 = vmatprep.subr.bf16.mxu1 %v3569_v43  ;;  %1204 = vmatprep.mubr.bf16.mxu0 %v3827_v40  ;;  %v3575_v40 = vld [vmem:[%s4668_s1 + $0x290] sm:$0xff]   ;;  %v1507_v51 = vrot.slane %v1505_v45, 1  ;;  %v1537_v43 = vshrl.u32 %v3935_v55, 16 }
  0x53   : > { %1276 = vmatprep.mubr.bf16.mxu1 %v3849_v48  ;;  %v1529_v48 = vshrl.u32 %v3932_v54, 16  ;;  %v1523_v33 = vor.u32 %v1521_v36, %v1483_v24  ;;  %v3587_v24 = vld [vmem:[%s4668_s1 + $0x2a8] sm:$0xff]   ;;  %v3609_v36 = vld [vmem:[%s4668_s1 + $0x3c0] sm:$0xff]  }
  0x54   : > { %3288 = vmatpush3.bf16.msra.mxu0 %v3570_v20  ;;  %v4165_v59 = vsel %vm435_vm0, %v1503_v28, %v1507_v51  ;;  %v3586_v20 = vld [vmem:[%s4668_s1 + $0x228] sm:$0xff]   ;;  %v1539_v22 = vor.u32 %v1537_v43, %v1507_v51  ;;  %v3593_v51 = vld [vmem:[%s4668_s1 + $0x2b0] sm:$0xff]   ;;  %v1581_v28 = vshll.u32 %v4054_v35, 16 }
  0x55   : > { %3334 = vmatpush3.bf16.msra.mxu1 %v3571_v11  ;;  %3289 = vmatprep.subr.bf16.mxu0 %v3572_v38  ;;  %v1531_v1 = vor.u32 %v1529_v48, %v1495_v50  ;;  %v1549_v50 = vshll.u32 %v3991_v26, 16  ;;  %v1541_v11 = vshll.u32 %v4005_v57, 16  ;;  %v4212_v38 = vsel %vm435_vm0, %v1523_v33, %v1527_v10  ;;  %v3596_v48 = vld [vmem:[%s4668_s1 + $0x278] sm:$0xff]   ;;  %v3612_v43 = vld [vmem:[%s4668_s1 + $0x348] sm:$0xff]  }
  0x56   : > { %3335 = vmatprep.subr.bf16.mxu1 %v3573_v39  ;;  %v1565_v39 = vshll.u32 %v4047_v61, 16 }
  0x57   : > { %1205 = vmatmul.mubr.bf16.gmra.mrb[24].mxu0 %v3840_v44  ;;  %v3580_v44 = vld [vmem:[%s4668_s1 + $0x260] sm:$0xff]   ;;  %v4182_v2 = vsel %vm435_vm0, %v1531_v1, %v1535_v7  ;;  %v1551_v13 = vrot.slane %v1549_v50, 1  ;;  %v1543_v25 = vrot.slane %v1541_v11, 1  ;;  %v4253_v1 = vrot.slane %v1581_v28, 1 }
  0x58   : > { %1277 = vmatmul.mubr.bf16.gmra.mrb[24].mxu1 %v3863_v58  ;;  %3290 = vmatpush3.bf16.msra.mxu0 %v3574_v46  ;;  %v3581_v58 = vld [vmem:[%s4668_s1 + $0x2e0] sm:$0xff]   ;;  %v2805_v46 = vcombine.high %v4017_v0, %v4017_v0  ;;  %v4233_v17 = vrot.slane %v1565_v39, 1  ;;  %v1557_v7 = vshll.u32 %v4058_v29, 16  ;;  %v2073_v11 = vrot.slane %v3912_v31, 1  ;;  %v3622_v39 = vld [vmem:[%s4668_s1 + $0x310] sm:$0xff]  }
  0x59   : > { %3336 = vmatpush3.bf16.msra.mxu1 %v3575_v40  ;;  %1212 = vmatprep.mubr.bf16.mxu0 %v3903_v27  ;;  %v3582_v27 = vld [vmem:[%s4668_s1 + $0x220] sm:$0xff]   ;;  %v4196_v15 = vsel %vm435_vm0, %v1547_v9, %v1551_v13  ;;  %v4225_v45 = vsel %vm435_vm0, %v1539_v22, %v1543_v25  ;;  %v2807_v40 = vcombine.high %v4023_v6, %v4023_v6  ;;  %v2090_v22 = vrot.slane %v3991_v26, 1 }
  0x5a   : > { %1284 = vmatprep.mubr.bf16.mxu1 %v3915_v32  ;;  %3291 = vmatprep.subr.bf16.mxu0 %v3576_v52  ;;  %v3583_v32 = vld [vmem:[%s4668_s1 + $0x2a0] sm:$0xff]   ;;  %v4271_v50 = vrot.slane %v1557_v7, 1  ;;  %v1601_v7 = vshrl.u32 %v4062_v63, 16 }
  0x5b   : > { %3337 = vmatprep.subr.bf16.mxu1 %v3577_v53  ;;  %v4246_v53 = vsel %vm435_vm0, %v1563_v12, %v4233_v17  ;;  %v3608_v9 = vld [vmem:[%s4668_s1 + $0x340] sm:$0xff]  }
  0x5c   : > { %3292 = vmatpush3.bf16.msra.mxu0 %v3578_v23  ;;  %v3597_v23 = vld [vmem:[%s4668_s1 + $0x2f8] sm:$0xff]   ;;  %v4348_v12 = vld [vmem:[%s3797_s8 + $0x94] ss:$16 sps:$4 sm:$0x1f]  }
  0x5d   : > { %3338 = vmatpush3.bf16.msra.mxu1 %v3579_v62  ;;  %3293 = vmatprep.subr.bf16.mxu0 %v3580_v44  ;;  %v1555_v62 = vor.u32 %v1553_v56, %v1527_v10  ;;  %v3614_v10 = vld [vmem:[%s4668_s1 + $0x308] sm:$0xff]   ;;  %v1597_v28 = vshll.u32 %v4348_v12, 16  ;;  %v3631_v56 = vld [vmem:[%s4668_s1 + $0x398] sm:$0xff]   ;;  %v2102_v31 = vrot.slane %v4348_v12, 1 }
  0x5e   : > { %3339 = vmatprep.subr.bf16.mxu1 %v3581_v58  ;;  %v2804_v58 = vcombine.low %v4017_v0, %v4017_v0 }
  0x5f   : > { %1213 = vmatmul.mubr.bf16.gmra.mrb[28].mxu0 %v3909_v30  ;;  %v3588_v30 = vld [vmem:[%s4668_s1 + $0x270] sm:$0xff]   ;;  %v4283_v33 = vsel %vm435_vm0, %v1555_v62, %v4271_v50  ;;  %v3632_v62 = vld [vmem:[%s4668_s1 + $0x360] sm:$0xff]  }
  0x60   : > { %1285 = vmatmul.mubr.bf16.gmra.mrb[28].mxu1 %v3918_v47  ;;  %3294 = vmatpush3.bf16.msra.mxu0 %v3582_v27  ;;  %v3589_v47 = vld [vmem:[%s4668_s1 + $0x2f0] sm:$0xff]  }
  0x61   : > { %3340 = vmatpush3.bf16.msra.mxu1 %v3583_v32  ;;  %1220 = vmatprep.mubr.bf16.mxu0 %v3960_v8  ;;  %v1577_v8 = vshrl.u32 %v3991_v26, 16  ;;  %v2806_v32 = vcombine.low %v4023_v6, %v4023_v6  ;;  %v3610_v6 = vld [vmem:[%s4668_s1 + $0x300] sm:$0xff]  }
  0x62   : > { %1292 = vmatprep.mubr.bf16.mxu1 %v3969_v14  ;;  %3295 = vmatprep.subr.bf16.mxu0 %v3584_v5  ;;  %v3592_v14 = vld [vmem:[%s4668_s1 + $0x230] sm:$0xff]   ;;  %v3611_v5 = vld [vmem:[%s4668_s1 + $0x380] sm:$0xff]  }
  0x63   : > { %3341 = vmatprep.subr.bf16.mxu1 %v3585_v16  ;;  %v1579_v52 = vor.u32 %v1577_v8, %v1551_v13  ;;  %v1573_v13 = vshll.u32 %v4062_v63, 16  ;;  %v3613_v16 = vld [vmem:[%s4668_s1 + $0x3c8] sm:$0xff]  }
  0x64   : > { %3296 = vmatpush3.bf16.msra.mxu0 %v3586_v20  ;;  %v2082_v20 = vrot.slane %v3940_v60, 1  ;;  %v4355_v8 = vld [vmem:[%s3797_s8 + $0x9c] ss:$16 sps:$4 sm:$0x1f]  }
  0x65   : > { %3342 = vmatpush3.bf16.msra.mxu1 %v3587_v24  ;;  %3297 = vmatprep.subr.bf16.mxu0 %v3588_v30  ;;  %v4265_v44 = vsel %vm435_vm0, %v1579_v52, %v4253_v1  ;;  %v4285_v34 = vrot.slane %v1573_v13, 1  ;;  %v3615_v30 = vld [vmem:[%s4668_s1 + $0x388] sm:$0xff]   ;;  %v3630_v52 = vld [vmem:[%s4668_s1 + $0x318] sm:$0xff]   ;;  %v1626_v26 = vshrl.u32 %v4355_v8, 16 }
  0x66   : > { %3343 = vmatprep.subr.bf16.mxu1 %v3589_v47  ;;  %v3621_v47 = vld [vmem:[%s4668_s1 + $0x3d0] sm:$0xff]   ;;  %v2520_v60 = vld [vmem:[%s4670_s3 + $0x28] sm:$0xff] }
  0x67   : > { %1221 = vmatmul.mubr.bf16.gmra.mrb[32].mxu0 %v3976_v18  ;;  %v3599_v18 = vld [vmem:[%s4668_s1 + $0x2b8] sm:$0xff]  }
  0x68   : > { %1293 = vmatmul.mubr.bf16.gmra.mrb[32].mxu1 %v3981_v21  ;;  %1228 = vmatprep.mubr.bf16.mxu0 %v2805_v46  ;;  %v1569_v21 = vshrl.u32 %v4005_v57, 16  ;;  %v3626_v46 = vld [vmem:[%s4668_s1 + $0x358] sm:$0xff]  }
  0x69   : > { %1300 = vmatprep.mubr.bf16.mxu1 %v2807_v40  ;;  %3298 = vmatpush3.bf16.msra.mxu0 %v3592_v14  ;;  %v1593_v14 = vshrl.u32 %v4047_v61, 16  ;;  %v3627_v40 = vld [vmem:[%s4668_s1 + $0x3d8] sm:$0xff]  }
  0x6a   : > { %3344 = vmatpush3.bf16.msra.mxu1 %v3593_v51  ;;  %3299 = vmatprep.subr.bf16.mxu0 %v3596_v48  ;;  %v1571_v27 = vor.u32 %v1569_v21, %v1543_v25  ;;  %v3620_v25 = vld [vmem:[%s4668_s1 + $0x350] sm:$0xff]   ;;  %v1585_v51 = vshrl.u32 %v4058_v29, 16 }
  0x6b   : > { %3345 = vmatprep.subr.bf16.mxu1 %v3597_v23  ;;  %v4374_v48 = vld [vmem:[%s3797_s8 + $0x90] ss:$16 sps:$4 sm:$0x1f]   ;;  %v1613_v23 = vshll.u32 %v4355_v8, 16  ;;  %v1595_v21 = vor.u32 %v1593_v14, %v4233_v17  ;;  %v2094_v17 = vrot.slane %v4047_v61, 1 }
  0x6c   : > { %v4289_v0 = vsel %vm435_vm0, %v1571_v27, %v4285_v34  ;;  %v1589_v27 = vshll.u32 %v4374_v48, 16 }
  0x6d   : > { %3300 = vmatpush3.bf16.msra.mxu0 %v3598_v3  ;;  %v4382_v3 = vld [vmem:[%s3797_s8 + $0x98] ss:$16 sps:$4 sm:$0x1f]  }
  0x6e   : > { %3346 = vmatpush3.bf16.msra.mxu1 %v3599_v18  ;;  %3377 = vmatprep.subr.bf16.mxu0 %v3608_v9  ;;  %v2079_v18 = vrot.slane %v3935_v55, 1  ;;  %v1599_v9 = vrot.slane %v1597_v28, 1  ;;  %v1605_v13 = vshll.u32 %v4382_v3, 16  ;;  %v3648_v28 = vld [vmem:[%s4668_s1 + $0x330] sm:$0xff]   ;;  %v2106_v55 = vrot.slane %v4355_v8, 1 }
  0x6f   : > { %1229 = vmatmul.mubr.bf16.gmra.mrb[36].mxu0 %v2804_v58  ;;  %3423 = vmatprep.subr.bf16.mxu1 %v3609_v36  ;;  %v1615_v36 = vrot.slane %v1613_v23, 1 }
  0x70   : > { %1301 = vmatmul.mubr.bf16.gmra.mrb[36].mxu1 %v2806_v32  ;;  %1873 = vmatprep.mubr.bf16.mxu0 %v4104_v4  ;;  %v2076_v4 = vrot.slane %v3932_v54, 1  ;;  %v1600_v32 = vsel %vm435_vm0, %v1595_v21, %v1599_v9  ;;  %v3668_v21 = vmov 0   ;;  %v2521_v54 = vld [vmem:[%s4670_s3 + $0x30] sm:$0xff] }
  0x71   : > { %1945 = vmatprep.mubr.bf16.mxu1 %v4123_v19  ;;  %v2086_v19 = vrot.slane %v3955_v42, 1  ;;  %3478 = vset.pattern.permute.xlu0 %v3668_v21 }
  0x72   : > { %3479 = vset.pattern.permute.xlu1 %v3668_v21 }
  0x73   : > { %v4319_v24 = vsel %vm2071_vm1, %v2076_v4, %v2086_v19 }
  0x77   : > { %1874 = vmatmul.mubr.bf16.vlgmr.msra.gmra.mrb[40].mxu0 %v4142_v37  ;;  %v4331_v37 = vsel %vm2071_vm1, %v2082_v20, %v2090_v22 }
  0x78   : > { %1946 = vmatmul.mubr.bf16.vlgmr.msra.gmra.mrb[40].mxu1 %v4165_v59  ;;  %3378 = vmatpush3.bf16.msra.mxu0 %v3610_v6  ;;  %v4341_v59 = vsel %vm2071_vm1, %v2073_v11, %v2084_v41  ;;  %v3642_v6 = vld [vmem:[%s4668_s1 + $0x368] sm:$0xff]  }
  0x79   : > { %3424 = vmatpush3.bf16.msra.mxu1 %v3611_v5  ;;  %3379 = vmatprep.subr.bf16.mxu0 %v3612_v43  ;;  %v1587_v43 = vor.u32 %v1585_v51, %v4271_v50  ;;  %v3644_v50 = vld [vmem:[%s4668_s1 + $0x328] sm:$0xff]  }
  0x7a   : > { %3425 = vmatprep.subr.bf16.mxu1 %v3613_v16  ;;  %1881 = vmatprep.mubr.bf16.mxu0 %v4182_v2  ;;  %v3623_v2 = vld [vmem:[%s4668_s1 + $0x390] sm:$0xff]   ;;  %v3643_v16 = vld [vmem:[%s4668_s1 + $0x3e8] sm:$0xff]  }
  0x7b   : > { %1953 = vmatprep.mubr.bf16.mxu1 %v4196_v15  ;;  %v1609_v15 = vshrl.u32 %v4054_v35, 16 }
  0x7c   : > { %3380 = vmatpush3.bf16.msra.mxu0 %v3614_v10  ;;  %v4428_v10 = vsel %vm2071_vm1, %v2086_v19, %v2094_v17  ;;  %v2096_v19 = vrot.slane %v4062_v63, 1 }
  0x7d   : > { %3426 = vmatpush3.bf16.msra.mxu1 %v3615_v30  ;;  %3381 = vmatprep.subr.bf16.mxu0 %v3620_v25  ;;  %v1611_v58 = vor.u32 %v1609_v15, %v4253_v1  ;;  %v2092_v30 = vrot.slane %v4058_v29, 1  ;;  %v1620_v25 = vshrl.u32 %v4348_v12, 16  ;;  %v1995_v15 = vld [vmem:[%s3797_s8 + $0x18] sm:$0xee] }
  0x7e   : > { %3427 = vmatprep.subr.bf16.mxu1 %v3621_v47  ;;  %v1607_v47 = vrot.slane %v1605_v13, 1  ;;  %v3653_v13 = vld [vmem:[%s4668_s1 + $0x3b8] sm:$0xff]  }
  0x7f   : > { %1882 = vmatmul.mubr.bf16.gmra.mrb[44].mxu0 %v4212_v38  ;;  %v3633_v38 = vld [vmem:[%s4668_s1 + $0x3e0] sm:$0xff]   ;;  %v1616_v5 = vsel %vm435_vm0, %v1611_v58, %v1615_v36  ;;  %v1623_v58 = vshrl.u32 %v4382_v3, 16 }
  0x80   : > { %1954 = vmatmul.mubr.bf16.gmra.mrb[44].mxu1 %v4225_v45  ;;  %3382 = vmatpush3.bf16.msra.mxu0 %v3622_v39  ;;  %v3634_v45 = vld [vmem:[%s4668_s1 + $0x320] sm:$0xff]   ;;  %v3645_v39 = vld [vmem:[%s4668_s1 + $0x3a8] sm:$0xff]  }
  0x81   : > { %3428 = vmatpush3.bf16.msra.mxu1 %v3623_v2  ;;  %1889 = vmatprep.mubr.bf16.mxu0 %v4246_v53  ;;  %v3635_v53 = vld [vmem:[%s4668_s1 + $0x3a0] sm:$0xff]   ;;  %v3646_v2 = vld [vmem:[%s4668_s1 + $0x370] sm:$0xff]  }
  0x82   : > { %1961 = vmatprep.mubr.bf16.mxu1 %v4265_v44  ;;  %3383 = vmatprep.subr.bf16.mxu0 %v3626_v46  ;;  %v2088_v44 = vrot.slane %v4005_v57, 1  ;;  %v2098_v57 = vrot.slane %v4054_v35, 1  ;;  %v1994_v46 = vld [vmem:[%s3797_s8 + $0x10] sm:$0xee] }
  0x83   : > { %3429 = vmatprep.subr.bf16.mxu1 %v3627_v40  ;;  %v2515_v40 = vld [vmem:[%s4670_s3] sm:$0xff] }
  0x84   : > { %3384 = vmatpush3.bf16.msra.mxu0 %v3630_v52  ;;  %v4414_v1 = vsel %vm2071_vm1, %v2079_v18, %v2088_v44  ;;  %v4441_v42 = vsel %vm2071_vm1, %v2090_v22, %v2098_v57  ;;  %v4457_v22 = vsel %vm2071_vm1, %v2084_v41, %v2092_v30  ;;  %v4466_v14 = vsel %vm2071_vm1, %v2088_v44, %v2096_v19 }
  0x85   : > { %3430 = vmatpush3.bf16.msra.mxu1 %v3631_v56  ;;  %3385 = vmatprep.subr.bf16.mxu0 %v3632_v62  ;;  %v1622_v41 = vor.u32 %v1620_v25, %v1599_v9  ;;  %v1628_v52 = vor.u32 %v1626_v26, %v1615_v36  ;;  %v3658_v56 = vld [vmem:[%s3797_s8 + $0x20] sm:$0xff]  ;;  %v3649_v62 = vld [vmem:[%s4668_s1 + $0x3b0] sm:$0xff]   ;;  %v1617_v9 = vshrl.u32 %v4374_v48, 16  ;;  %v2516_v36 = vld [vmem:[%s4670_s3 + $0x8] sm:$0xff] }
  0x86   : > { %3431 = vmatprep.subr.bf16.mxu1 %v3633_v38  ;;  %v3021_v23 = vcombine.high %v1994_v46, %v3658_v56  ;;  %v3659_v38 = vld [vmem:[%s3797_s8 + $0x28] sm:$0xff]  ;;  %2526 = vperm.xlu0 %3478, %v2515_v40  }
  0x87   : > { %1890 = vmatmul.mubr.bf16.gmra.mrb[48].mxu0 %v4283_v33  ;;  %v1591_v33 = vrot.slane %v1589_v27, 1  ;;  %v3652_v27 = vld [vmem:[%s4668_s1 + $0x338] sm:$0xff]  }
  0x88   : > { %1962 = vmatmul.mubr.bf16.gmra.mrb[48].mxu1 %v4289_v0  ;;  %3386 = vmatpush3.bf16.msra.mxu0 %v3634_v45  ;;  %v1603_v0 = vor.u32 %v1601_v7, %v4285_v34  ;;  %v3647_v34 = vld [vmem:[%s4668_s1 + $0x3f0] sm:$0xff]   ;;  %v3650_v7 = vld [vmem:[%s4668_s1 + $0x378] sm:$0xff]   ;;  %v3023_v45 = vcombine.high %v1995_v15, %v3659_v38  ;;  %v2075_v44 = vrot.slane %v3021_v23, 1 }
  0x89   : > { %3432 = vmatpush3.bf16.msra.mxu1 %v3635_v53  ;;  %1897 = vmatprep.mubr.bf16.mxu0 %v1600_v32  ;;  %v1592_v49 = vsel %vm435_vm0, %v1587_v43, %v1591_v33  ;;  %v3651_v53 = vld [vmem:[%s4668_s1 + $0x3f8] sm:$0xff]   ;;  %v1625_v43 = vor.u32 %v1623_v58, %v1607_v47 }
  0x8a   : > { %1969 = vmatprep.mubr.bf16.mxu1 %v1616_v5  ;;  %3387 = vmatprep.subr.bf16.mxu0 %v3642_v6  ;;  %v1608_v51 = vsel %vm435_vm0, %v1603_v0, %v1607_v47  ;;  %v2081_v32 = vrot.slane %v3023_v45, 1  ;;  %v2517_v6 = vld [vmem:[%s4670_s3 + $0x10] sm:$0xff]  ;;  %v1619_v5 = vor.u32 %v1617_v9, %v1591_v33  ;;  %v2077_v25 = vsel %vm2071_vm1, %v2075_v44, %v2076_v4  ;;  %v2518_v47 = vld [vmem:[%s4670_s3 + $0x18] sm:$0xff] }
  0x8b   : > { %3433 = vmatprep.subr.bf16.mxu1 %v3643_v16  ;;  %2531 = vperm.xlu0 %3478, %v2516_v36   ;;  %v3020_v16 = vcombine.low %v1994_v46, %v3658_v56  ;;  %v3022_v0 = vcombine.low %v1995_v15, %v3659_v38 }
  0x8c   : > { %3388 = vmatpush3.bf16.msra.mxu0 %v3644_v50  ;;  %v2519_v50 = vld [vmem:[%s4670_s3 + $0x20] sm:$0xff]  ;;  %2536 = vperm.xlu1 %3479, %v2517_v6   ;;  %v2083_v33 = vsel %vm2071_vm1, %v2081_v32, %v2082_v20 }
  0x8d   : > { %3434 = vmatpush3.bf16.msra.mxu1 %v3645_v39  ;;  %3389 = vmatprep.subr.bf16.mxu0 %v3646_v2  ;;  %v2072_v39 = vrot.slane %v3020_v16, 1  ;;  %v2078_v4 = vrot.slane %v3022_v0, 1  ;;  %v2523_v2 = vld [vmem:[%s4670_s3 + $0x40] sm:$0xff] }
  0x8e   : > { %3435 = vmatprep.subr.bf16.mxu1 %v3647_v34  ;;  %v2522_v34 = vld [vmem:[%s4670_s3 + $0x38] sm:$0xff] }
  0x8f   : > { %1898 = vmatmul.mubr.bf16.gmra.mrb[52].mxu0 %v1592_v49  ;;  %2546 = vperm.xlu0 %3478, %v2519_v50   ;;  %v2074_v20 = vsel %vm2071_vm1, %v2072_v39, %v2073_v11  ;;  %v2080_v26 = vsel %vm2071_vm1, %v2078_v4, %v2079_v18  ;;  %v2103_v11 = vsel %vm2071_vm1, %v2094_v17, %v2102_v31 }
  0x90   : > { %1970 = vmatmul.mubr.bf16.gmra.mrb[52].mxu1 %v1608_v51  ;;  %1905 = vmatprep.mubr.bf16.mxu0 %v1622_v41 }
  0x91   : > { %1977 = vmatprep.mubr.bf16.mxu1 %v1628_v52  ;;  %3390 = vmatpush3.bf16.msra.mxu0 %v3648_v28 }
  0x92   : > { %3436 = vmatpush3.bf16.msra.mxu1 %v3649_v62  ;;  %3391 = vmatprep.subr.bf16.mxu0 %v3650_v7 }
  0x93   : > { %3437 = vmatprep.subr.bf16.mxu1 %v3651_v53  ;;  %2541 = vperm.xlu1 %3479, %v2518_v47  }
  0x94   : > { %2556 = vperm.xlu0 %3478, %v2521_v54  }
  0x95   : > { %3392 = vmatpush3.bf16.msra.mxu0 %v3652_v27 }
  0x96   : > { %3438 = vmatpush3.bf16.msra.mxu1 %v3653_v13 }
  0x97   : > { %1906 = vmatmul.mubr.bf16.gmra.mrb[56].mxu0 %v1619_v5  ;;  %2551 = vperm.xlu1 %3479, %v2520_v60  }
  0x98   : > { %1978 = vmatmul.mubr.bf16.gmra.mrb[56].mxu1 %v1625_v43  ;;  %2352 = vmatprep.mubr.bf16.mxu0 %v2077_v25 }
  0x99   : > { %2424 = vmatprep.mubr.bf16.mxu1 %v2083_v33  ;;  %2566 = vperm.xlu0 %3478, %v2523_v2  }
  0x9b   : > { %2561 = vperm.xlu1 %3479, %v2522_v34  }
  0x9f   : > { %2353 = vmatmul.mubr.bf16.vlgmr.msra.gmra.mrb[60].mxu0 %v2074_v20 }
  0xa0   : > { %2425 = vmatmul.mubr.bf16.vlgmr.msra.gmra.mrb[60].mxu1 %v2080_v26  ;;  %2360 = vmatprep.mubr.bf16.mxu0 %v4319_v24  ;;  %v2107_v24 = vsel %vm2071_vm1, %v2098_v57, %v2106_v55 }
  0xa1   : > { %2432 = vmatprep.mubr.bf16.mxu1 %v4331_v37  ;;  %v2100_v37 = vrot.slane %v4374_v48, 1 }
  0xa3   : > { %v2101_v61 = vsel %vm2071_vm1, %v2092_v30, %v2100_v37 }
  0xa7   : > { %2361 = vmatmul.mubr.bf16.gmra.mrb[64].mxu0 %v4341_v59  ;;  %v2104_v59 = vrot.slane %v4382_v3, 1 }
  0xa8   : > { %2433 = vmatmul.mubr.bf16.gmra.mrb[64].mxu1 %v4414_v1  ;;  %2368 = vmatprep.mubr.bf16.mxu0 %v4428_v10 }
  0xa9   : > { %2440 = vmatprep.mubr.bf16.mxu1 %v4441_v42  ;;  %v2105_v35 = vsel %vm2071_vm1, %v2096_v19, %v2104_v59 }
  0xaf   : > { %2369 = vmatmul.mubr.bf16.gmra.mrb[68].mxu0 %v4457_v22 }
  0xb0   : > { %2441 = vmatmul.mubr.bf16.gmra.mrb[68].mxu1 %v4466_v14  ;;  %2376 = vmatprep.mubr.bf16.mxu0 %v2103_v11 }
  0xb1   : > { %2448 = vmatprep.mubr.bf16.mxu1 %v2107_v24 }
  0xb7   : > { %2377 = vmatmul.mubr.bf16.gmra.mrb[72].mxu0 %v2101_v61 }
  0xb8   : > { %2449 = vmatmul.mubr.bf16.gmra.mrb[72].mxu1 %v2105_v35  ;;  %2384 = vmatprep.mubr.bf16.mxu0 %v2102_v31 }
  0xb9   : > { %2456 = vmatprep.mubr.bf16.mxu1 %v2106_v55 }
  0xbf   : > { %2385 = vmatmul.mubr.bf16.gmra.mrb[76].mxu0 %v2100_v37 }
  0xc0   : > { %2457 = vmatmul.mubr.bf16.gmra.mrb[76].mxu1 %v2104_v59 }
  0xfa   : > { %v3117_v12 = vpop.f32.mrb[0].mxu0 }
  0xfb   : > { %v3118_v8 = vpop.f32.mrb[1].mxu0  ;;  %v3163_v17 = vpop.f32.mrb[0].mxu1 }
  0xfc   : > { %v3119_v48 = vadd.f32 %v3118_v8, %v3117_v12  ;;  %v3120_v18 = vpop.f32.mrb[2].mxu0  ;;  %v3164_v1 = vpop.f32.mrb[1].mxu1 }
  0xfd   : > { %v3121_v3 = vpop.f32.mrb[3].mxu0  ;;  %v3165_v57 = vadd.f32 %v3164_v1, %v3163_v17  ;;  %v3166_v10 = vpop.f32.mrb[2].mxu1 }
  0xfe   : > { %v3122_v29 = vadd.f32 %v3121_v3, %v3120_v18  ;;  %v3167_v30 = vpop.f32.mrb[3].mxu1 }
  0xff   : > { %v4556_v63 = vadd.f32 %v3165_v57, %v3119_v48  ;;  %v3168_v42 = vadd.f32 %v3167_v30, %v3166_v10 }
 0x101   : > { %v4558_v19 = vadd.f32 %v3168_v42, %v3122_v29 }
 0x102   : > { %v3123_v22 = vpop.f32.mrb[4].mxu0 }
 0x103   : > { %v3169_v46 = vpop.f32.mrb[4].mxu1  ;;  %v3124_v14 = vpop.f32.mrb[5].mxu0 }
 0x104   : > { %v3125_v15 = vadd.f32 %v3124_v14, %v3123_v22  ;;  %v3170_v49 = vpop.f32.mrb[5].mxu1  ;;  %v3126_v41 = vpop.f32.mrb[6].mxu0 }
 0x105   : > { %v3171_v40 = vadd.f32 %v3170_v49, %v3169_v46  ;;  %v3172_v51 = vpop.f32.mrb[6].mxu1  ;;  %v3127_v52 = vpop.f32.mrb[7].mxu0 }
 0x106   : > { %v3128_v28 = vadd.f32 %v3127_v52, %v3126_v41  ;;  %v3173_v56 = vpop.f32.mrb[7].mxu1 }
 0x107   : > { %v4560_v23 = vadd.f32 %v3171_v40, %v3125_v15  ;;  %v3174_v62 = vadd.f32 %v3173_v56, %v3172_v51 }
 0x109   : > { %v4562_v7 = vadd.f32 %v3174_v62, %v3128_v28 }
 0x10a   : > { %v3129_v38 = vpop.f32.mrb[8].mxu0 }
 0x10b   : > { %v3175_v45 = vpop.f32.mrb[8].mxu1  ;;  %v3130_v21 = vpop.f32.mrb[9].mxu0 }
 0x10c   : > { %v3131_v9 = vadd.f32 %v3130_v21, %v3129_v38  ;;  %v3176_v53 = vpop.f32.mrb[9].mxu1  ;;  %v3132_v58 = vpop.f32.mrb[10].mxu0 }
 0x10d   : > { %v3177_v36 = vadd.f32 %v3176_v53, %v3175_v45  ;;  %v3178_v27 = vpop.f32.mrb[10].mxu1  ;;  %v3133_v44 = vpop.f32.mrb[11].mxu0 }
 0x10e   : > { %v3134_v13 = vadd.f32 %v3133_v44, %v3132_v58  ;;  %v3179_v32 = vpop.f32.mrb[11].mxu1 }
 0x10f   : > { %v4564_v6 = vadd.f32 %v3177_v36, %v3131_v9  ;;  %v3180_v5 = vadd.f32 %v3179_v32, %v3178_v27 }
 0x111   : > { %v4566_v43 = vadd.f32 %v3180_v5, %v3134_v13 }
 0x112   : > { %v3135_v16 = vpop.f32.mrb[12].mxu0 }
 0x113   : > { %v3181_v50 = vpop.f32.mrb[12].mxu1  ;;  %v3136_v25 = vpop.f32.mrb[13].mxu0 }
 0x114   : > { %v3137_v0 = vadd.f32 %v3136_v25, %v3135_v16  ;;  %v3182_v33 = vpop.f32.mrb[13].mxu1  ;;  %v3138_v47 = vpop.f32.mrb[14].mxu0 }
 0x115   : > { %v3183_v39 = vadd.f32 %v3182_v33, %v3181_v50  ;;  %v3184_v54 = vpop.f32.mrb[14].mxu1  ;;  %v3139_v4 = vpop.f32.mrb[15].mxu0 }
 0x116   : > { %v3140_v60 = vadd.f32 %v3139_v4, %v3138_v47  ;;  %v3185_v20 = vpop.f32.mrb[15].mxu1 }
 0x117   : > { %v4568_v2 = vadd.f32 %v3183_v39, %v3137_v0  ;;  %v3186_v26 = vadd.f32 %v3185_v20, %v3184_v54 }
 0x119   : > { %v4570_v34 = vadd.f32 %v3186_v26, %v3140_v60 }
 0x11a   : > { %v3141_v31 = vpop.f32.mrb[16].mxu0 }
 0x11b   : > { %v3187_v55 = vpop.f32.mrb[16].mxu1  ;;  %v3142_v11 = vpop.f32.mrb[17].mxu0 }
 0x11c   : > { %v3143_v24 = vadd.f32 %v3142_v11, %v3141_v31  ;;  %v3188_v37 = vpop.f32.mrb[17].mxu1  ;;  %v3144_v59 = vpop.f32.mrb[18].mxu0 }
 0x11d   : > { %v3189_v61 = vadd.f32 %v3188_v37, %v3187_v55  ;;  %v3190_v35 = vpop.f32.mrb[18].mxu1  ;;  %v3145_v12 = vpop.f32.mrb[19].mxu0 }
 0x11e   : > { %v3191_v8 = vpop.f32.mrb[19].mxu1 }
 0x11f   : > { %v4572_v48 = vadd.f32 %v3189_v61, %v3143_v24 }
 0x122   : > { %v3209_v18 = vpop.f32.mrb[20].mxu0 }
 0x123   : > { %v3255_v17 = vpop.f32.mrb[20].mxu1  ;;  %v3210_v3 = vpop.f32.mrb[21].mxu0 }
 0x124   : > { %v3211_v1 = vadd.f32 %v3210_v3, %v3209_v18  ;;  %v3256_v29 = vpop.f32.mrb[21].mxu1  ;;  %v3212_v57 = vpop.f32.mrb[22].mxu0 }
 0x125   : > { %v3257_v10 = vadd.f32 %v3256_v29, %v3255_v17  ;;  %v3258_v30 = vpop.f32.mrb[22].mxu1  ;;  %v3213_v42 = vpop.f32.mrb[23].mxu0 }
 0x126   : > { %v1199_v22 = vadd.f32 %v3211_v1, %v4556_v63  ;;  %v3214_v46 = vadd.f32 %v3213_v42, %v3212_v57  ;;  %v3259_v14 = vpop.f32.mrb[23].mxu1 }
 0x127   : > { %v3260_v15 = vadd.f32 %v3259_v14, %v3258_v30 }
 0x128   : > { %v4575_v49 = vadd.f32 %v3257_v10, %v1199_v22  ;;  %v1202_v41 = vadd.f32 %v3214_v46, %v4558_v19 }
 0x12a   : > { %v4578_v40 = vadd.f32 %v3260_v15, %v1202_v41  ;;  %v3215_v51 = vpop.f32.mrb[24].mxu0 }
 0x12b   : > { %v3261_v52 = vpop.f32.mrb[24].mxu1  ;;  %v3216_v28 = vpop.f32.mrb[25].mxu0 }
 0x12c   : > { %v3217_v56 = vadd.f32 %v3216_v28, %v3215_v51  ;;  %v3262_v62 = vpop.f32.mrb[25].mxu1  ;;  %v3218_v38 = vpop.f32.mrb[26].mxu0 }
 0x12d   : > { %v3263_v45 = vadd.f32 %v3262_v62, %v3261_v52  ;;  %v3264_v21 = vpop.f32.mrb[26].mxu1  ;;  %v3219_v9 = vpop.f32.mrb[27].mxu0 }
 0x12e   : > { %v1207_v63 = vadd.f32 %v3217_v56, %v4560_v23  ;;  %v3220_v53 = vadd.f32 %v3219_v9, %v3218_v38  ;;  %v3265_v58 = vpop.f32.mrb[27].mxu1 }
 0x12f   : > { %v3266_v36 = vadd.f32 %v3265_v58, %v3264_v21 }
 0x130   : > { %v4581_v27 = vadd.f32 %v3263_v45, %v1207_v63  ;;  %v1210_v19 = vadd.f32 %v3220_v53, %v4562_v7 }
 0x132   : > { %v4584_v44 = vadd.f32 %v3266_v36, %v1210_v19  ;;  %v3221_v13 = vpop.f32.mrb[28].mxu0 }
 0x133   : > { %v3267_v32 = vpop.f32.mrb[28].mxu1  ;;  %v3222_v5 = vpop.f32.mrb[29].mxu0 }
 0x134   : > { %v3223_v16 = vadd.f32 %v3222_v5, %v3221_v13  ;;  %v3268_v50 = vpop.f32.mrb[29].mxu1  ;;  %v3224_v25 = vpop.f32.mrb[30].mxu0 }
 0x135   : > { %v3269_v0 = vadd.f32 %v3268_v50, %v3267_v32  ;;  %v3270_v33 = vpop.f32.mrb[30].mxu1  ;;  %v3225_v47 = vpop.f32.mrb[31].mxu0 }
 0x136   : > { %v1215_v23 = vadd.f32 %v3223_v16, %v4564_v6  ;;  %v3226_v39 = vadd.f32 %v3225_v47, %v3224_v25  ;;  %v3271_v54 = vpop.f32.mrb[31].mxu1 }
 0x137   : > { %v3272_v4 = vadd.f32 %v3271_v54, %v3270_v33 }
 0x138   : > { %v4587_v60 = vadd.f32 %v3269_v0, %v1215_v23  ;;  %v1218_v7 = vadd.f32 %v3226_v39, %v4566_v43 }
 0x13a   : > { %v4590_v20 = vadd.f32 %v3272_v4, %v1218_v7  ;;  %v3227_v26 = vpop.f32.mrb[32].mxu0 }
 0x13b   : > { %v3273_v31 = vpop.f32.mrb[32].mxu1  ;;  %v3228_v55 = vpop.f32.mrb[33].mxu0 }
 0x13c   : > { %v3229_v11 = vadd.f32 %v3228_v55, %v3227_v26  ;;  %v3274_v24 = vpop.f32.mrb[33].mxu1  ;;  %v3230_v37 = vpop.f32.mrb[34].mxu0 }
 0x13d   : > { %v3275_v59 = vadd.f32 %v3274_v24, %v3273_v31  ;;  %v3276_v61 = vpop.f32.mrb[34].mxu1  ;;  %v3231_v35 = vpop.f32.mrb[35].mxu0 }
 0x13e   : > { %v1223_v6 = vadd.f32 %v3229_v11, %v4568_v2  ;;  %v3232_v12 = vadd.f32 %v3231_v35, %v3230_v37  ;;  %v3277_v8 = vpop.f32.mrb[35].mxu1 }
 0x13f   : > { %v3278_v18 = vadd.f32 %v3277_v8, %v3276_v61 }
 0x140   : > { %v4593_v17 = vadd.f32 %v3275_v59, %v1223_v6  ;;  %v1226_v43 = vadd.f32 %v3232_v12, %v4570_v34 }
 0x142   : > { %v4596_v3 = vadd.f32 %v3278_v18, %v1226_v43  ;;  %v3233_v1 = vpop.f32.mrb[36].mxu0 }
 0x143   : > { %v3279_v29 = vpop.f32.mrb[36].mxu1  ;;  %v3234_v57 = vpop.f32.mrb[37].mxu0 }
 0x144   : > { %v3235_v10 = vadd.f32 %v3234_v57, %v3233_v1  ;;  %v3280_v30 = vpop.f32.mrb[37].mxu1  ;;  %v3236_v42 = vpop.f32.mrb[38].mxu0 }
 0x145   : > { %v3281_v22 = vadd.f32 %v3280_v30, %v3279_v29  ;;  %v3282_v46 = vpop.f32.mrb[38].mxu1  ;;  %v3237_v14 = vpop.f32.mrb[39].mxu0 }
 0x146   : > { %v1231_v2 = vadd.f32 %v3235_v10, %v4572_v48  ;;  %v3283_v15 = vpop.f32.mrb[39].mxu1 }
 0x148   : > { %v4599_v41 = vadd.f32 %v3281_v22, %v1231_v2 }
 0x14a   : > { %v3301_v51 = vpop.f32.mrb[40].mxu0 }
 0x14b   : > { %v3347_v52 = vpop.f32.mrb[40].mxu1  ;;  %v3302_v28 = vpop.f32.mrb[41].mxu0 }
 0x14c   : > { %v3303_v34 = vadd.f32 %v3302_v28, %v3301_v51  ;;  %v3348_v56 = vpop.f32.mrb[41].mxu1  ;;  %v3304_v62 = vpop.f32.mrb[42].mxu0 }
 0x14d   : > { %v3349_v38 = vadd.f32 %v3348_v56, %v3347_v52  ;;  %v3350_v45 = vpop.f32.mrb[42].mxu1  ;;  %v3305_v21 = vpop.f32.mrb[43].mxu0 }
 0x14e   : > { %v3306_v9 = vadd.f32 %v3305_v21, %v3304_v62  ;;  %v3351_v63 = vpop.f32.mrb[43].mxu1 }
 0x14f   : > { %v1948_v53 = vadd.f32 %v3349_v38, %v3303_v34  ;;  %v3352_v58 = vadd.f32 %v3351_v63, %v3350_v45 }
 0x151   : > { %v4602_v36 = vadd.f32 %v1948_v53, %v4575_v49  ;;  %v1951_v48 = vadd.f32 %v3352_v58, %v3306_v9 }
 0x152   : > { %v3307_v19 = vpop.f32.mrb[44].mxu0 }
 0x153   : > { %v4605_v13 = vadd.f32 %v1951_v48, %v4578_v40  ;;  %v3353_v32 = vpop.f32.mrb[44].mxu1  ;;  %v3308_v5 = vpop.f32.mrb[45].mxu0 }
 0x154   : > { %v3309_v16 = vadd.f32 %v3308_v5, %v3307_v19  ;;  %v3354_v50 = vpop.f32.mrb[45].mxu1  ;;  %v3310_v25 = vpop.f32.mrb[46].mxu0 }
 0x155   : > { %v3355_v0 = vadd.f32 %v3354_v50, %v3353_v32  ;;  %v3356_v33 = vpop.f32.mrb[46].mxu1  ;;  %v3311_v47 = vpop.f32.mrb[47].mxu0 }
 0x156   : > { %v3312_v23 = vadd.f32 %v3311_v47, %v3310_v25  ;;  %v3357_v39 = vpop.f32.mrb[47].mxu1 }
 0x157   : > { %v1956_v54 = vadd.f32 %v3355_v0, %v3309_v16  ;;  %v3358_v4 = vadd.f32 %v3357_v39, %v3356_v33 }
 0x159   : > { %v4608_v49 = vadd.f32 %v1956_v54, %v4581_v27  ;;  %v1959_v7 = vadd.f32 %v3358_v4, %v3312_v23 }
 0x15a   : > { %v3313_v26 = vpop.f32.mrb[48].mxu0 }
 0x15b   : > { %v4611_v40 = vadd.f32 %v1959_v7, %v4584_v44  ;;  %v3359_v31 = vpop.f32.mrb[48].mxu1  ;;  %v3314_v55 = vpop.f32.mrb[49].mxu0 }
 0x15c   : > { %v3315_v11 = vadd.f32 %v3314_v55, %v3313_v26  ;;  %v3360_v24 = vpop.f32.mrb[49].mxu1  ;;  %v3316_v37 = vpop.f32.mrb[50].mxu0 }
 0x15d   : > { %v3361_v59 = vadd.f32 %v3360_v24, %v3359_v31  ;;  %v3362_v61 = vpop.f32.mrb[50].mxu1  ;;  %v3317_v35 = vpop.f32.mrb[51].mxu0 }
 0x15e   : > { %v3318_v6 = vadd.f32 %v3317_v35, %v3316_v37  ;;  %v3363_v12 = vpop.f32.mrb[51].mxu1  ;;  %v2527_v31 = vpop.permute.xlu0 %2526 }
 0x15f   : > { %v1964_v8 = vadd.f32 %v3361_v59, %v3315_v11  ;;  %v3364_v18 = vadd.f32 %v3363_v12, %v3362_v61 }
 0x161   : > { %v4614_v27 = vadd.f32 %v1964_v8, %v4587_v60  ;;  %v1967_v43 = vadd.f32 %v3364_v18, %v3318_v6 }
 0x162   : > { %v3319_v1 = vpop.f32.mrb[52].mxu0 }
 0x163   : > { %v4617_v44 = vadd.f32 %v1967_v43, %v4590_v20  ;;  %v3365_v29 = vpop.f32.mrb[52].mxu1  ;;  %v3320_v57 = vpop.f32.mrb[53].mxu0 }
 0x164   : > { %v3321_v10 = vadd.f32 %v3320_v57, %v3319_v1  ;;  %v3366_v30 = vpop.f32.mrb[53].mxu1  ;;  %v3322_v42 = vpop.f32.mrb[54].mxu0 }
 0x165   : > { %v3367_v22 = vadd.f32 %v3366_v30, %v3365_v29  ;;  %v3368_v46 = vpop.f32.mrb[54].mxu1  ;;  %v3323_v14 = vpop.f32.mrb[55].mxu0 }
 0x166   : > { %v3324_v2 = vadd.f32 %v3323_v14, %v3322_v42  ;;  %v3369_v15 = vpop.f32.mrb[55].mxu1 }
 0x167   : > { %v1972_v51 = vadd.f32 %v3367_v22, %v3321_v10  ;;  %v3370_v52 = vadd.f32 %v3369_v15, %v3368_v46  ;;  %v2532_v10 = vpop.permute.xlu0 %2531 }
 0x169   : > { %v4620_v60 = vadd.f32 %v1972_v51, %v4593_v17  ;;  %v1975_v28 = vadd.f32 %v3370_v52, %v3324_v2  ;;  %v2537_v2 = vpop.permute.xlu1 %2536 }
 0x16a   : > { %v3325_v34 = vpop.f32.mrb[56].mxu0 }
 0x16b   : > { %v4623_v20 = vadd.f32 %v1975_v28, %v4596_v3  ;;  %v3371_v56 = vpop.f32.mrb[56].mxu1  ;;  %v3326_v62 = vpop.f32.mrb[57].mxu0 }
 0x16c   : > { %v3327_v38 = vadd.f32 %v3326_v62, %v3325_v34  ;;  %v3372_v45 = vpop.f32.mrb[57].mxu1  ;;  %v3328_v21 = vpop.f32.mrb[58].mxu0 }
 0x16d   : > { %v3373_v9 = vadd.f32 %v3372_v45, %v3371_v56  ;;  %v3374_v63 = vpop.f32.mrb[58].mxu1  ;;  %v3329_v53 = vpop.f32.mrb[59].mxu0 }
 0x16e   : > { %v3375_v58 = vpop.f32.mrb[59].mxu1 }
 0x16f   : > { %v1980_v48 = vadd.f32 %v3373_v9, %v3327_v38 }
 0x171   : > { %v4626_v19 = vadd.f32 %v1980_v48, %v4599_v41  ;;  %v4633_v41 = vld [vmem:[%s4669_s2] ss:$0 sm:$0xff] }
 0x172   : > { %v3393_v17 = vpop.f32.mrb[60].mxu0 }
 0x173   : > { %v3439_v32 = vpop.f32.mrb[60].mxu1  ;;  %v3394_v5 = vpop.f32.mrb[61].mxu0 }
 0x174   : > { %v3395_v16 = vadd.f32 %v3394_v5, %v3393_v17  ;;  %v3440_v3 = vpop.f32.mrb[61].mxu1  ;;  %v3396_v50 = vpop.f32.mrb[62].mxu0 }
 0x175   : > { %v3441_v25 = vadd.f32 %v3440_v3, %v3439_v32  ;;  %v3442_v0 = vpop.f32.mrb[62].mxu1  ;;  %v3397_v33 = vpop.f32.mrb[63].mxu0 }
 0x176   : > { %v3398_v47 = vadd.f32 %v3397_v33, %v3396_v50  ;;  %v3443_v23 = vpop.f32.mrb[63].mxu1 }
 0x177   : > { %v2427_v39 = vadd.f32 %v3441_v25, %v3395_v16  ;;  %v3444_v54 = vadd.f32 %v3443_v23, %v3442_v0  ;;  %v2542_v16 = vpop.permute.xlu1 %2541 }
 0x179   : > { %v2464_v4 = vadd.f32 %v2427_v39, %v4602_v36  ;;  %v2430_v7 = vadd.f32 %v3444_v54, %v3398_v47 }
 0x17a   : > { %v3399_v26 = vpop.f32.mrb[64].mxu0 }
 0x17b   : > { %v2465_v55 = vadd.f32 %v2430_v7, %v4605_v13  ;;  %v3445_v11 = vpop.f32.mrb[64].mxu1  ;;  %v3400_v24 = vpop.f32.mrb[65].mxu0  ;;  %v2479_v37 = vadd.f32 %v4633_v41, %v2464_v4 }
 0x17c   : > { %v3401_v59 = vadd.f32 %v3400_v24, %v3399_v26  ;;  %v3446_v61 = vpop.f32.mrb[65].mxu1  ;;  %v3402_v35 = vpop.f32.mrb[66].mxu0 }
 0x17d   : > { %v3447_v6 = vadd.f32 %v3446_v61, %v3445_v11  ;;  %vm2488_vm2 = vcmp.ge.f32.partialorder %v2479_v37, 0.0  ;;  %v2497_v12 = vmul.f32 0.2, %v2479_v37  ;;  %v3448_v8 = vpop.f32.mrb[66].mxu1  ;;  %v3403_v18 = vpop.f32.mrb[67].mxu0  ;;  %v2480_v36 = vadd.f32 %v4633_v41, %v2465_v55 }
 0x17e   : > { %v3404_v43 = vadd.f32 %v3403_v18, %v3402_v35  ;;  %v3449_v1 = vpop.f32.mrb[67].mxu1 }
 0x17f   : > { %v2435_v29 = vadd.f32 %v3447_v6, %v3401_v59  ;;  %v3450_v13 = vadd.f32 %v3449_v1, %v3448_v8  ;;  %vm2489_vm3 = vcmp.ge.f32.partialorder %v2480_v36, 0.0  ;;  %v2506_v57 = vsel %vm2488_vm2, %v2479_v37, %v2497_v12 }
 0x180   : > { %v2498_v30 = vmul.f32 0.2, %v2480_v36  ;;  %v2569_v15 = vmul.f32 %v2527_v31, %v2506_v57 }
 0x181   : > { %v2466_v42 = vadd.f32 %v2435_v29, %v4608_v49  ;;  %v2438_v22 = vadd.f32 %v3450_v13, %v3404_v43  ;;  %v2552_v29 = vpop.permute.xlu1 %2551 }
 0x182   : > { %v2507_v46 = vsel %vm2489_vm3, %v2480_v36, %v2498_v30  ;;  %v3405_v14 = vpop.f32.mrb[68].mxu0  ;;  %v2547_v36 = vpop.permute.xlu0 %2546 }
 0x183   : > { %v2467_v51 = vadd.f32 %v2438_v22, %v4611_v40  ;;  %v2570_v52 = vmul.f32 %v2532_v10, %v2507_v46  ;;  %v3451_v28 = vpop.f32.mrb[68].mxu1  ;;  %v3406_v34 = vpop.f32.mrb[69].mxu0  ;;  %v2481_v56 = vadd.f32 %v4633_v41, %v2466_v42 }
 0x184   : > { %v3407_v49 = vadd.f32 %v3406_v34, %v3405_v14  ;;  %v3452_v62 = vpop.f32.mrb[69].mxu1  ;;  %v3408_v38 = vpop.f32.mrb[70].mxu0 }
 0x185   : > { %v3081_v45 = vpack.c.bf16 %v2570_v52, %v2569_v15  ;;  %v3453_v21 = vadd.f32 %v3452_v62, %v3451_v28  ;;  %vm2490_vm4 = vcmp.ge.f32.partialorder %v2481_v56, 0.0  ;;  %v2499_v9 = vmul.f32 0.2, %v2481_v56  ;;  %v3454_v63 = vpop.f32.mrb[70].mxu1  ;;  %v3409_v40 = vpop.f32.mrb[71].mxu0 }
 0x186   : > { %v3410_v53 = vadd.f32 %v3409_v40, %v3408_v38  ;;  %v3455_v58 = vpop.f32.mrb[71].mxu1  ;;  %v2482_v48 = vadd.f32 %v4633_v41, %v2467_v51 }
 0x187   : > { %3082 = vst [vmem:[%s4646_s21] sm:$0xff] %v3081_v45   ;;  %v2443_v17 = vadd.f32 %v3453_v21, %v3407_v49  ;;  %v3456_v32 = vadd.f32 %v3455_v58, %v3454_v63  ;;  %v2508_v5 = vsel %vm2490_vm4, %v2481_v56, %v2499_v9  ;;  %v2557_v21 = vpop.permute.xlu0 %2556  ;;  %v2562_v9 = vpop.permute.xlu1 %2561 }
 0x188   : > { %vm2491_vm5 = vcmp.ge.f32.partialorder %v2482_v48, 0.0  ;;  %v2500_v3 = vmul.f32 0.2, %v2482_v48  ;;  %v2571_v47 = vmul.f32 %v2537_v2, %v2508_v5 }
 0x189   : > { %v2468_v50 = vadd.f32 %v2443_v17, %v4614_v27  ;;  %v2446_v25 = vadd.f32 %v3456_v32, %v3410_v53 }
 0x18a   : > { %v2509_v0 = vsel %vm2491_vm5, %v2482_v48, %v2500_v3  ;;  %v3411_v33 = vpop.f32.mrb[72].mxu0 }
 0x18b   : > { %v2469_v23 = vadd.f32 %v2446_v25, %v4617_v44  ;;  %v2483_v39 = vadd.f32 %v4633_v41, %v2468_v50  ;;  %v2572_v54 = vmul.f32 %v2542_v16, %v2509_v0  ;;  %v3457_v4 = vpop.f32.mrb[72].mxu1  ;;  %v3412_v7 = vpop.f32.mrb[73].mxu0 }
 0x18c   : > { %v3413_v26 = vadd.f32 %v3412_v7, %v3411_v33  ;;  %v3458_v31 = vpop.f32.mrb[73].mxu1  ;;  %v3414_v55 = vpop.f32.mrb[74].mxu0 }
 0x18d   : > { %vm2492_vm6 = vcmp.ge.f32.partialorder %v2483_v39, 0.0  ;;  %v2501_v11 = vmul.f32 0.2, %v2483_v39  ;;  %v3086_v24 = vpack.c.bf16 %v2572_v54, %v2571_v47  ;;  %v3459_v37 = vadd.f32 %v3458_v31, %v3457_v4  ;;  %v3460_v27 = vpop.f32.mrb[74].mxu1  ;;  %v3415_v59 = vpop.f32.mrb[75].mxu0 }
 0x18e   : > { %v3416_v61 = vadd.f32 %v3415_v59, %v3414_v55  ;;  %v3461_v35 = vpop.f32.mrb[75].mxu1  ;;  %v2484_v6 = vadd.f32 %v4633_v41, %v2469_v23  ;;  %v2567_v5 = vpop.permute.xlu0 %2566 }
 0x18f   : > { %3098 = vst [vmem:[%s4646_s21 + $0x8] sm:$0xff] %v3086_v24   ;;  %v2451_v44 = vadd.f32 %v3459_v37, %v3413_v26  ;;  %v3462_v12 = vadd.f32 %v3461_v35, %v3460_v27  ;;  %v2510_v8 = vsel %vm2492_vm6, %v2483_v39, %v2501_v11 }
 0x190   : > { %vm2493_vm7 = vcmp.ge.f32.partialorder %v2484_v6, 0.0  ;;  %v2502_v18 = vmul.f32 0.2, %v2484_v6  ;;  %v2573_v10 = vmul.f32 %v2547_v36, %v2510_v8 }
 0x191   : > { %v2470_v43 = vadd.f32 %v2451_v44, %v4620_v60  ;;  %v2454_v1 = vadd.f32 %v3462_v12, %v3416_v61 }
 0x192   : > { %v2511_v13 = vsel %vm2493_vm7, %v2484_v6, %v2502_v18  ;;  %v3417_v57 = vpop.f32.mrb[76].mxu0 }
 0x193   : > { %v2485_v30 = vadd.f32 %v4633_v41, %v2470_v43  ;;  %v2471_v42 = vadd.f32 %v2454_v1, %v4623_v20  ;;  %v2574_v22 = vmul.f32 %v2552_v29, %v2511_v13  ;;  %v3463_v46 = vpop.f32.mrb[76].mxu1  ;;  %v3418_v14 = vpop.f32.mrb[77].mxu0 }
 0x194   : > { %v3419_v2 = vadd.f32 %v3418_v14, %v3417_v57  ;;  %v3464_v15 = vpop.f32.mrb[77].mxu1  ;;  %v3420_v51 = vpop.f32.mrb[78].mxu0 }
 0x195   : > { %v3091_v52 = vpack.c.bf16 %v2574_v22, %v2573_v10  ;;  %v2486_v28 = vadd.f32 %v4633_v41, %v2471_v42  ;;  %vm2494_vm8 = vcmp.ge.f32.partialorder %v2485_v30, 0.0  ;;  %v2503_v60 = vmul.f32 0.2, %v2485_v30  ;;  %v3466_v34 = vpop.f32.mrb[78].mxu1  ;;  %v3421_v56 = vpop.f32.mrb[79].mxu0 }
 0x196   : > { %v3465_v49 = vadd.f32 %v3464_v15, %v3463_v46  ;;  %v3467_v62 = vpop.f32.mrb[79].mxu1 }
 0x197   : > { %3099 = vst [vmem:[%s4646_s21 + $0x10] sm:$0xff] %v3091_v52   ;;  %vm2495_vm9 = vcmp.ge.f32.partialorder %v2486_v28, 0.0  ;;  %v2504_v38 = vmul.f32 0.2, %v2486_v28  ;;  %v2512_v20 = vsel %vm2494_vm8, %v2485_v30, %v2503_v60 }
 0x198   : > { %v2459_v45 = vadd.f32 %v3465_v49, %v3419_v2  ;;  %v2575_v40 = vmul.f32 %v2557_v21, %v2512_v20 }
 0x199   : > { %v2513_v63 = vsel %vm2495_vm9, %v2486_v28, %v2504_v38 }
 0x19a   : > { %v2576_v53 = vmul.f32 %v2562_v9, %v2513_v63  ;;  %v2472_v58 = vadd.f32 %v2459_v45, %v4626_v19 }
 0x19c   : > { %v3096_v48 = vpack.c.bf16 %v2576_v53, %v2575_v40  ;;  %v2487_v17 = vadd.f32 %v4633_v41, %v2472_v58 }
 0x19e   : > { %3100 = vst [vmem:[%s4646_s21 + $0x18] sm:$0xff] %v3096_v48   ;;  %vm2496_vm10 = vcmp.ge.f32.partialorder %v2487_v17, 0.0  ;;  %v2505_v32 = vmul.f32 0.2, %v2487_v17 }
 0x1a0   : > { %v2514_v16 = vsel %vm2496_vm10, %v2487_v17, %v2505_v32 }
 0x1a1   : > { %v2577_v3 = vmul.f32 %v2567_v5, %v2514_v16 }
 0x1a3   : > { %v3077_v50 = vpack.c.bf16 %v2577_v3, %v2577_v3 }
 0x1a5   : > { %2623 = vst [vmem:[%s4646_s21 + $0x20] sm:$0xf] %v3077_v50 }
 0x1a6 PF: > { %s14_s15 = sadd.s32 1, %s3666_s15  }
 0x1a7   : > { %p11_p5 = scmp.ge.s32.totalorder %s14_s15, 4  }
 0x1a9   :  { %13 = sbr.rel (!%p11_p5) target bundleno = 1 (0x1), region = 69 }

// kernel: dcgan_discriminator.6
= control target key start
LH: loop header
LB: loop body
LE: loop exit
PB: predicated region body
PF: predicated region fallthrough
CT: control target
= control target key end

     0   :  { %s2812_s15 = smov 0   ;;  %s3331_s0 = inlined_call_operand.vmem [shape: bf16[64,512], index: 0, kind: input, shape index: {}]   ;;  %s3332_s1 = inlined_call_operand.vmem [shape: bf16[4,512,128], index: 1, kind: input, shape index: {}]   ;;  %s3333_s2 = inlined_call_operand.vmem [shape: f32[1,128], index: 2, kind: input, shape index: {}]   ;;  %s3334_s3 = inlined_call_operand.vmem [shape: f32[24,1], index: 3, kind: input, shape index: {}]   ;;  %s3335_s4 = inlined_call_operand.vmem [shape: bf16[48,128], index: 4, kind: output, shape index: {}]  }
   0x1 LB: > { %s2017_s16 = sadd.s32 4294967295, %s2784_s15   ;;  %p2021_p0 = scmp.ge.s32.totalorder %s2784_s15, 1  ;;  %s2784_s15 = sphi %s2812_s15, %s14_s15  }
   0x2   : > { %p164_p1 = scmp.lt.s32.totalorder %s2784_s15, 3 }
   0x4   : > { %p165_p2 = pnand %p2021_p0, %p164_p1 }
   0x5   : > { %v2624_v0 = vld [vmem:[%s3332_s1 + $0x140] sm:$0xff] (!%p165_p2)   ;;  %v2628_v4 = vld [vmem:[%s3332_s1 + $0x148] sm:$0xff] (!%p165_p2)   ;;  %v2632_v8 = vld [vmem:[%s3332_s1 + $0x150] sm:$0xff] (!%p165_p2)   ;;  %s2022_s25 = sshll.u32 (!%p165_p2), %s2017_s16, 2  ;;  %v2786_v35 = vmov (!%p165_p2), 0   ;;  %vm1594_vm2 = vcmask (!%p165_p2), 1044480  }
   0x6   : > { %168 = sbr.rel (%p165_p2) target bundleno = 374 (0x176), region = 36  ;;  %v2625_v1 = vld [vmem:[%s3332_s1 + $0x1c0] sm:$0xff] (!%p165_p2)   ;;  %2389 = vmatprep.subr.bf16.mxu0 (!%p165_p2), %v2624_v0  ;;  %v2629_v5 = vld [vmem:[%s3332_s1 + $0x1c8] sm:$0xff] (!%p165_p2)   ;;  %v2633_v9 = vld [vmem:[%s3332_s1 + $0x1d0] sm:$0xff] (!%p165_p2)   ;;  %p192_p3 = scmp.lt.s32.totalorder (!%p165_p2), %s2022_s25, 7  ;;  %2622 = vset.pattern.permute.xlu0 (!%p165_p2), %v2786_v35 }
   0x7   : > { %v2626_v2 = vld [vmem:[%s3332_s1 + $0x100] sm:$0xff] (!%p165_p2)   ;;  %2417 = vmatprep.subr.bf16.mxu1 (!%p165_p2), %v2625_v1  ;;  %v2630_v6 = vld [vmem:[%s3332_s1 + $0x108] sm:$0xff] (!%p165_p2)   ;;  %v2634_v10 = vld [vmem:[%s3332_s1 + $0x110] sm:$0xff] (!%p165_p2)   ;;  %vm381_vm0 = vsmask.f32 (!%p165_p2), 7424  ;;  %2623 = vset.pattern.permute.xlu1 (!%p165_p2), %v2786_v35  ;;  %s198_s28 = smul.u32 (!%p165_p2), 3, %s2017_s16 }
   0x8   : > { %v2627_v3 = vld [vmem:[%s3332_s1 + $0x180] sm:$0xff] (!%p165_p2)   ;;  %2390 = vmatpush3.bf16.msra.mxu0 (!%p165_p2), %v2626_v2  ;;  %v2631_v7 = vld [vmem:[%s3332_s1 + $0x188] sm:$0xff] (!%p165_p2)   ;;  %v2635_v11 = vld [vmem:[%s3332_s1 + $0x190] sm:$0xff] (!%p165_p2)   ;;  %vm1149_vm1 = vsmask.f32 (!%p165_p2), 5376 }
   0x9   : > { %2418 = vmatpush3.bf16.msra.mxu1 (!%p165_p2), %v2627_v3  ;;  %2391 = vmatprep.subr.bf16.mxu0 (!%p165_p2), %v2628_v4  ;;  %v2636_v12 = vld [vmem:[%s3332_s1 + $0x158] sm:$0xff] (!%p165_p2)   ;;  %v2640_v16 = vld [vmem:[%s3332_s1 + $0x160] sm:$0xff] (!%p165_p2)   ;;  %v2644_v20 = vld [vmem:[%s3332_s1 + $0x168] sm:$0xff] (!%p165_p2)   ;;  %p199_p4 = scmp.lt.s32.totalorder (!%p165_p2), %s198_s28, 5 }
   0xa   : > { %2419 = vmatprep.subr.bf16.mxu1 (!%p165_p2), %v2629_v5  ;;  %v2637_v13 = vld [vmem:[%s3332_s1 + $0x1d8] sm:$0xff] (!%p165_p2)   ;;  %v2641_v17 = vld [vmem:[%s3332_s1 + $0x1e0] sm:$0xff] (!%p165_p2)   ;;  %v2645_v21 = vld [vmem:[%s3332_s1 + $0x1e8] sm:$0xff] (!%p165_p2)  }
   0xb   : > { %v2638_v14 = vld [vmem:[%s3332_s1 + $0x118] sm:$0xff] (!%p165_p2)   ;;  %v2642_v18 = vld [vmem:[%s3332_s1 + $0x120] sm:$0xff] (!%p165_p2)   ;;  %v2646_v22 = vld [vmem:[%s3332_s1 + $0x128] sm:$0xff] (!%p165_p2)  }
   0xc   : > { %2392 = vmatpush3.bf16.msra.mxu0 (!%p165_p2), %v2630_v6  ;;  %v2639_v15 = vld [vmem:[%s3332_s1 + $0x198] sm:$0xff] (!%p165_p2)   ;;  %v2643_v19 = vld [vmem:[%s3332_s1 + $0x1a0] sm:$0xff] (!%p165_p2)   ;;  %v2647_v23 = vld [vmem:[%s3332_s1 + $0x1a8] sm:$0xff] (!%p165_p2)  }
   0xd   : > { %2420 = vmatpush3.bf16.msra.mxu1 %v2631_v7  ;;  %2393 = vmatprep.subr.bf16.mxu0 %v2632_v8  ;;  %s3337_s25 = smov (!%p192_p3, %s2022_s25), 7  ;;  %v2648_v24 = vld [vmem:[%s3332_s1 + $0x170] sm:$0xff]   ;;  %v2652_v28 = vld [vmem:[%s3332_s1 + $0x178] sm:$0xff]   ;;  %v2664_v51 = vld [vmem:[%s3332_s1 + $0x40] sm:$0xff]   ;;  %s3339_s28 = smov (!%p199_p4, %s198_s28), 5 }
   0xe   : > { %2421 = vmatprep.subr.bf16.mxu1 %v2633_v9  ;;  %v2649_v25 = vld [vmem:[%s3332_s1 + $0x1f0] sm:$0xff]   ;;  %s2380_s24 = sshll.u32 %s3337_s25, 4  ;;  %v2653_v29 = vld [vmem:[%s3332_s1 + $0x1f8] sm:$0xff]   ;;  %v2665_v60 = vld [vmem:[%s3332_s1 + $0xc0] sm:$0xff]   ;;  %s2025_s16 = sshll.u32 %s3339_s28, 2 }
   0xf   : > { %v2650_v26 = vld [vmem:[%s3332_s1 + $0x130] sm:$0xff]   ;;  %s2915_s8 = scalar_lea.vmem %s3331_s0, %s2380_s24  ;;  %v2654_v30 = vld [vmem:[%s3332_s1 + $0x138] sm:$0xff]   ;;  %v2666_v8 = vld [vmem:[%s3332_s1] sm:$0xff]   ;;  %s202_s7 = scalar_lea.vmem %s3335_s4, %s2025_s16 }
  0x10   : > { %2394 = vmatpush3.bf16.msra.mxu0 %v2634_v10  ;;  %v2651_v27 = vld [vmem:[%s3332_s1 + $0x1b0] sm:$0xff]   ;;  %v2655_v31 = vld [vmem:[%s3332_s1 + $0x1b8] sm:$0xff]   ;;  %v276_v32 = vld [vmem:[%s2915_s8] sm:$0xff] }
  0x11   : > { %2422 = vmatpush3.bf16.msra.mxu1 %v2635_v11  ;;  %2395 = vmatprep.subr.bf16.mxu0 %v2636_v12  ;;  %v2925_v33 = vld [vmem:[%s2915_s8 + $0x10] sm:$0xff]  ;;  %v2928_v34 = vld [vmem:[%s2915_s8 + $0x20] sm:$0xff]  ;;  %v277_v38 = vld [vmem:[%s2915_s8 + $0x8] sm:$0xff] }
  0x12   : > { %2423 = vmatprep.subr.bf16.mxu1 %v2637_v13  ;;  %v282_v36 = vld [vmem:[%s2915_s8 + $0x30] sm:$0x11]  ;;  %v2932_v37 = vcombine.high %v276_v32, %v2925_v33  ;;  %v2936_v39 = vld [vmem:[%s2915_s8 + $0x18] sm:$0xff]  ;;  %v2939_v40 = vcombine.low %v276_v32, %v2925_v33  ;;  %v2943_v42 = vld [vmem:[%s2915_s8 + $0x28] sm:$0xff] }
  0x13   : > { %v2095_v41 = vcombine.high %v2928_v34, %v282_v36  ;;  %v283_v43 = vld [vmem:[%s2915_s8 + $0x38] sm:$0x11]  ;;  %v2947_v44 = vcombine.high %v277_v38, %v2936_v39  ;;  %v2094_v45 = vcombine.low %v2928_v34, %v282_v36  ;;  %v2951_v46 = vcombine.low %v277_v38, %v2936_v39  ;;  %v2668_v11 = vld [vmem:[%s3332_s1 + $0x48] sm:$0xff]   ;;  %v2675_v32 = vld [vmem:[%s3332_s1 + $0x90] sm:$0xff]  }
  0x14   : > { %2396 = vmatpush3.bf16.msra.mxu0 %v2638_v14  ;;  %v395_v47 = vshrl.u32 %v2932_v37, 16  ;;  %v397_v48 = vshll.u32 %v2932_v37, 16  ;;  %v2097_v49 = vcombine.high %v2943_v42, %v283_v43  ;;  %v383_v50 = vshrl.u32 %v2939_v40, 16  ;;  %v2677_v36 = vld [vmem:[%s3332_s1 + $0xd8] sm:$0xff]  }
  0x15   : > { %2424 = vmatpush3.bf16.msra.mxu1 %v2639_v15  ;;  %2397 = vmatprep.subr.bf16.mxu0 %v2640_v16  ;;  %v402_v52 = vshll.u32 %v2095_v41, 16  ;;  %v419_v53 = vshrl.u32 %v2947_v44, 16  ;;  %v421_v54 = vshll.u32 %v2947_v44, 16  ;;  %v385_v55 = vshll.u32 %v2939_v40, 16  ;;  %v2667_v15 = vld [vmem:[%s3332_s1 + $0x80] sm:$0xff]   ;;  %v2678_v38 = vld [vmem:[%s3332_s1 + $0x18] sm:$0xff]  }
  0x16   : > { %2425 = vmatprep.subr.bf16.mxu1 %v2641_v17  ;;  %v399_v56 = vrot.slane %v397_v48, 1  ;;  %v426_v57 = vshll.u32 %v2097_v49, 16  ;;  %v390_v58 = vshll.u32 %v2094_v45, 16  ;;  %v2096_v59 = vcombine.low %v2943_v42, %v283_v43  ;;  %v2669_v17 = vld [vmem:[%s3332_s1 + $0xc8] sm:$0xff]   ;;  %v2679_v43 = vld [vmem:[%s3332_s1 + $0x98] sm:$0xff]   ;;  %v2683_v48 = vld [vmem:[%s3332_s1 + $0xa0] sm:$0xff]  }
  0x17   : > { %v404_v61 = vrot.slane %v402_v52, 1  ;;  %v423_v62 = vrot.slane %v421_v54, 1  ;;  %v387_v63 = vrot.slane %v385_v55, 1  ;;  %v407_v0 = vshrl.u32 %v2951_v46, 16  ;;  %v2689_v52 = vld [vmem:[%s3332_s1 + $0xf0] sm:$0xff]   ;;  %v2692_v54 = vld [vmem:[%s3332_s1 + $0x78] sm:$0xff]  }
  0x18   : > { %2398 = vmatpush3.bf16.msra.mxu0 %v2642_v18  ;;  %v400_v1 = vor.u32 %v399_v56, %v395_v47  ;;  %v428_v2 = vrot.slane %v426_v57, 1  ;;  %v392_v3 = vrot.slane %v390_v58, 1  ;;  %v409_v4 = vshll.u32 %v2951_v46, 16  ;;  %v2682_v47 = vld [vmem:[%s3332_s1 + $0x20] sm:$0xff]   ;;  %v2691_v55 = vld [vmem:[%s3332_s1 + $0xb0] sm:$0xff]   ;;  %v2693_v56 = vld [vmem:[%s3332_s1 + $0xf8] sm:$0xff]  }
  0x19   : > { %2426 = vmatpush3.bf16.msra.mxu1 %v2643_v19  ;;  %2399 = vmatprep.subr.bf16.mxu0 %v2644_v20  ;;  %v424_v5 = vor.u32 %v423_v62, %v419_v53  ;;  %v388_v6 = vor.u32 %v387_v63, %v383_v50  ;;  %v414_v7 = vshll.u32 %v2096_v59, 16  ;;  %v433_v18 = vshrl.u32 %v2095_v41, 16  ;;  %v2670_v19 = vld [vmem:[%s3332_s1 + $0x8] sm:$0xff]   ;;  %v2680_v41 = vld [vmem:[%s3332_s1 + $0x60] sm:$0xff]   ;;  %v2688_v50 = vld [vmem:[%s3332_s1 + $0x70] sm:$0xff]  }
  0x1a   : > { %2427 = vmatprep.subr.bf16.mxu1 %v2645_v21  ;;  %v405_v9 = vsel %vm381_vm0, %v400_v1, %v404_v61  ;;  %v411_v10 = vrot.slane %v409_v4, 1  ;;  %v439_v20 = vshrl.u32 %v2097_v49, 16  ;;  %v2686_v49 = vld [vmem:[%s3332_s1 + $0x28] sm:$0xff]   ;;  %v2690_v53 = vld [vmem:[%s3332_s1 + $0x30] sm:$0xff]   ;;  %v2694_v57 = vld [vmem:[%s3332_s1 + $0x38] sm:$0xff]   ;;  %v2135_v63 = vcombine.high %v2928_v34, %v2928_v34 }
  0x1b   : > { %674 = vmatprep.mubr.bf16.mxu0 %v405_v9  ;;  %v429_v12 = vsel %vm381_vm0, %v424_v5, %v428_v2  ;;  %v393_v13 = vsel %vm381_vm0, %v388_v6, %v392_v3  ;;  %v416_v14 = vrot.slane %v414_v7, 1  ;;  %v2696_v58 = vld [vmem:[%s3332_s1 + $0x240] sm:$0xff]   ;;  %v2700_v62 = vld [vmem:[%s3332_s1 + $0x248] sm:$0xff]   ;;  %v2706_v4 = vld [vmem:[%s3332_s1 + $0x250] sm:$0xff]   ;;  %v2134_v5 = vcombine.low %v2928_v34, %v2928_v34 }
  0x1c   : > { %2400 = vmatpush3.bf16.msra.mxu0 %v2646_v22  ;;  %722 = vmatprep.mubr.bf16.mxu1 %v429_v12  ;;  %v412_v16 = vor.u32 %v411_v10, %v407_v0  ;;  %v2672_v22 = vld [vmem:[%s3332_s1 + $0x50] sm:$0xff]   ;;  %v2699_v0 = vld [vmem:[%s3332_s1 + $0x280] sm:$0xff]   ;;  %v2701_v1 = vld [vmem:[%s3332_s1 + $0x2c8] sm:$0xff]   ;;  %v2136_v9 = vcombine.low %v2943_v42, %v2943_v42 }
  0x1d   : > { %2428 = vmatpush3.bf16.msra.mxu1 %v2647_v23  ;;  %2401 = vmatprep.subr.bf16.mxu0 %v2648_v24  ;;  %v435_v23 = vor.u32 %v433_v18, %v404_v61  ;;  %v430_v24 = vshrl.u32 %v2094_v45, 16  ;;  %v2681_v45 = vld [vmem:[%s3332_s1 + $0xe0] sm:$0xff]   ;;  %v2707_v6 = vld [vmem:[%s3332_s1 + $0x2d0] sm:$0xff]   ;;  %v2713_v10 = vld [vmem:[%s3332_s1 + $0x2d8] sm:$0xff]  }
  0x1e   : > { %2429 = vmatprep.subr.bf16.mxu1 %v2649_v25  ;;  %v417_v21 = vsel %vm381_vm0, %v412_v16, %v416_v14  ;;  %v2671_v25 = vld [vmem:[%s3332_s1 + $0x88] sm:$0xff]   ;;  %v2698_v61 = vld [vmem:[%s3332_s1 + $0x200] sm:$0xff]   ;;  %v2709_v7 = vld [vmem:[%s3332_s1 + $0x210] sm:$0xff]  }
  0x1f   : > { %v2716_v12 = vld [vmem:[%s3332_s1 + $0x260] sm:$0xff]   ;;  %v2720_v16 = vld [vmem:[%s3332_s1 + $0x268] sm:$0xff]  }
  0x20   : > { %2402 = vmatpush3.bf16.msra.mxu0 %v2650_v26  ;;  %v441_v26 = vor.u32 %v439_v20, %v428_v2  ;;  %v2137_v2 = vcombine.high %v2943_v42, %v2943_v42  ;;  %v2721_v18 = vld [vmem:[%s3332_s1 + $0x2e8] sm:$0xff]   ;;  %v2724_v20 = vld [vmem:[%s3332_s1 + $0x270] sm:$0xff]  }
  0x21   : > { %2430 = vmatpush3.bf16.msra.mxu1 %v2651_v27  ;;  %2403 = vmatprep.subr.bf16.mxu0 %v2652_v28  ;;  %v436_v27 = vshrl.u32 %v2096_v59, 16  ;;  %v2673_v28 = vld [vmem:[%s3332_s1 + $0xd0] sm:$0xff]   ;;  %v2695_v59 = vld [vmem:[%s3332_s1 + $0xb8] sm:$0xff]  }
  0x22   : > { %2431 = vmatprep.subr.bf16.mxu1 %v2653_v29  ;;  %v432_v29 = vor.u32 %v430_v24, %v392_v3  ;;  %v2702_v3 = vld [vmem:[%s3332_s1 + $0x208] sm:$0xff]   ;;  %v2728_v24 = vld [vmem:[%s3332_s1 + $0x278] sm:$0xff]  }
  0x23   : > { %v438_v35 = vor.u32 %v436_v27, %v416_v14  ;;  %v2717_v14 = vld [vmem:[%s3332_s1 + $0x2e0] sm:$0xff]   ;;  %v2730_v27 = vld [vmem:[%s3332_s1 + $0x238] sm:$0xff]  }
  0x24   : > { %2404 = vmatpush3.bf16.msra.mxu0 %v2654_v30  ;;  %v2674_v30 = vld [vmem:[%s3332_s1 + $0x10] sm:$0xff]  }
  0x25   : > { %2432 = vmatpush3.bf16.msra.mxu1 %v2655_v31  ;;  %2445 = vmatprep.subr.bf16.mxu0 %v2664_v51  ;;  %v2676_v31 = vld [vmem:[%s3332_s1 + $0x58] sm:$0xff]   ;;  %v2687_v51 = vld [vmem:[%s3332_s1 + $0xa8] sm:$0xff]  }
  0x26   : > { %2473 = vmatprep.subr.bf16.mxu1 %v2665_v60  ;;  %v2697_v60 = vld [vmem:[%s3332_s1 + $0x2c0] sm:$0xff]  }
  0x27   : > { %675 = vmatmul.mubr.bf16.vlgmr.msra.gmra.mrb[0].mxu0 %v393_v13  ;;  %v2715_v13 = vld [vmem:[%s3332_s1 + $0x298] sm:$0xff]  }
  0x28   : > { %2446 = vmatpush3.bf16.msra.mxu0 %v2666_v8  ;;  %723 = vmatmul.mubr.bf16.vlgmr.msra.gmra.mrb[0].mxu1 %v417_v21  ;;  %v2710_v8 = vld [vmem:[%s3332_s1 + $0x290] sm:$0xff]   ;;  %v2723_v21 = vld [vmem:[%s3332_s1 + $0x2a8] sm:$0xff]  }
  0x29   : > { %2447 = vmatprep.subr.bf16.mxu0 %v2668_v11  ;;  %2474 = vmatpush3.bf16.msra.mxu1 %v2667_v15  ;;  %v2714_v11 = vld [vmem:[%s3332_s1 + $0x218] sm:$0xff]   ;;  %v2718_v15 = vld [vmem:[%s3332_s1 + $0x220] sm:$0xff]  }
  0x2a   : > { %682 = vmatprep.mubr.bf16.mxu0 %v435_v23  ;;  %2475 = vmatprep.subr.bf16.mxu1 %v2669_v17  ;;  %v2719_v17 = vld [vmem:[%s3332_s1 + $0x2a0] sm:$0xff]   ;;  %v2726_v23 = vld [vmem:[%s3332_s1 + $0x230] sm:$0xff]  }
  0x2b   : > { %730 = vmatprep.mubr.bf16.mxu1 %v441_v26  ;;  %v2729_v26 = vld [vmem:[%s3332_s1 + $0x2f8] sm:$0xff]  }
  0x2c   : > { %2448 = vmatpush3.bf16.msra.mxu0 %v2670_v19  ;;  %v2722_v19 = vld [vmem:[%s3332_s1 + $0x228] sm:$0xff]  }
  0x2d   : > { %2449 = vmatprep.subr.bf16.mxu0 %v2672_v22  ;;  %2476 = vmatpush3.bf16.msra.mxu1 %v2671_v25  ;;  %v2725_v22 = vld [vmem:[%s3332_s1 + $0x2f0] sm:$0xff]  }
  0x2e   : > { %2477 = vmatprep.subr.bf16.mxu1 %v2673_v28  ;;  %v2727_v25 = vld [vmem:[%s3332_s1 + $0x2b0] sm:$0xff]   ;;  %v2731_v28 = vld [vmem:[%s3332_s1 + $0x2b8] sm:$0xff]  }
  0x2f   : > { %683 = vmatmul.mubr.bf16.gmra.mrb[4].mxu0 %v432_v29  ;;  %v1060_v29 = vld [vmem:[%s2915_s8] sm:$0xcc] }
  0x30   : > { %2450 = vmatpush3.bf16.msra.mxu0 %v2674_v30  ;;  %996 = vmatprep.mubr.bf16.mxu0 %v2932_v37  ;;  %v2684_v37 = vld [vmem:[%s3332_s1 + $0x68] sm:$0xff]   ;;  %v1062_v30 = vld [vmem:[%s2915_s8 + $0x30] sm:$0x77] }
  0x31   : > { %2451 = vmatprep.subr.bf16.mxu0 %v2676_v31  ;;  %731 = vmatmul.mubr.bf16.gmra.mrb[4].mxu1 %v438_v35  ;;  %v2234_v31 = vcombine.low %v1060_v29, %v2925_v33  ;;  %v3176_v35 = vcombine.low %v2928_v34, %v1062_v30 }
  0x32   : > { %2478 = vmatpush3.bf16.msra.mxu1 %v2675_v32  ;;  %1044 = vmatprep.mubr.bf16.mxu1 %v2947_v44  ;;  %v2685_v44 = vld [vmem:[%s3332_s1 + $0xe8] sm:$0xff]   ;;  %v2235_v32 = vcombine.high %v1060_v29, %v2925_v33  ;;  %v2740_v33 = vld [vmem:[%s3332_s1 + $0x340] sm:$0xff]  }
  0x33   : > { %2479 = vmatprep.subr.bf16.mxu1 %v2677_v36  ;;  %v3179_v36 = vcombine.high %v2928_v34, %v1062_v30  ;;  %v2747_v29 = vld [vmem:[%s3332_s1 + $0x388] sm:$0xff]   ;;  %v2749_v30 = vld [vmem:[%s3332_s1 + $0x3d0] sm:$0xff]  }
  0x34   : > { %2452 = vmatpush3.bf16.msra.mxu0 %v2678_v38  ;;  %v1061_v38 = vld [vmem:[%s2915_s8 + $0x8] sm:$0xcc]  ;;  %v1168_v34 = vshrl.u32 %v2235_v32, 16 }
  0x35   : > { %2453 = vmatprep.subr.bf16.mxu0 %v2680_v41  ;;  %v1063_v41 = vld [vmem:[%s2915_s8 + $0x38] sm:$0x77] }
  0x36   : > { %2480 = vmatpush3.bf16.msra.mxu1 %v2679_v43  ;;  %v2236_v43 = vcombine.low %v1061_v38, %v2936_v39 }
  0x37   : > { %2481 = vmatprep.subr.bf16.mxu1 %v2681_v45  ;;  %v2237_v45 = vcombine.high %v1061_v38, %v2936_v39  ;;  %v2751_v38 = vld [vmem:[%s3332_s1 + $0x390] sm:$0xff]  }
  0x38   : > { %2454 = vmatpush3.bf16.msra.mxu0 %v2682_v47  ;;  %v3186_v47 = vcombine.low %v2943_v42, %v1063_v41 }
  0x39   : > { %2455 = vmatprep.subr.bf16.mxu0 %v2684_v37  ;;  %v3189_v37 = vcombine.high %v2943_v42, %v1063_v41  ;;  %v1205_v39 = vshll.u32 %v2237_v45, 16  ;;  %v2741_v42 = vld [vmem:[%s3332_s1 + $0x3c0] sm:$0xff]   ;;  %v2753_v41 = vld [vmem:[%s3332_s1 + $0x3d8] sm:$0xff]  }
  0x3a   : > { %2482 = vmatpush3.bf16.msra.mxu1 %v2683_v48  ;;  %v1171_v48 = vshll.u32 %v2235_v32, 16  ;;  %v2752_v32 = vld [vmem:[%s3332_s1 + $0x358] sm:$0xff]  }
  0x3b   : > { %2483 = vmatprep.subr.bf16.mxu1 %v2685_v44  ;;  %v1176_v44 = vshrl.u32 %v3179_v36, 16 }
  0x3c   : > { %2456 = vmatpush3.bf16.msra.mxu0 %v2686_v49  ;;  %v1179_v49 = vshll.u32 %v3179_v36, 16 }
  0x3d   : > { %2457 = vmatprep.subr.bf16.mxu0 %v2688_v50  ;;  %v1202_v50 = vshrl.u32 %v2237_v45, 16  ;;  %v2756_v45 = vld [vmem:[%s3332_s1 + $0x360] sm:$0xff]  }
  0x3e   : > { %2484 = vmatpush3.bf16.msra.mxu1 %v2687_v51  ;;  %v1210_v51 = vshrl.u32 %v3189_v37, 16 }
  0x3f   : > { %2485 = vmatprep.subr.bf16.mxu1 %v2689_v52  ;;  %v1213_v52 = vshll.u32 %v3189_v37, 16 }
  0x40   : > { %2458 = vmatpush3.bf16.msra.mxu0 %v2690_v53  ;;  %v1170_v53 = vrot.slane %v1168_v34, 2  ;;  %v2757_v34 = vld [vmem:[%s3332_s1 + $0x3e0] sm:$0xff]  }
  0x41   : > { %2459 = vmatprep.subr.bf16.mxu0 %v2692_v54  ;;  %v1173_v54 = vrot.slane %v1171_v48, 3  ;;  %v2758_v48 = vld [vmem:[%s3332_s1 + $0x320] sm:$0xff]  }
  0x42   : > { %2486 = vmatpush3.bf16.msra.mxu1 %v2691_v55  ;;  %v1178_v55 = vrot.slane %v1176_v44, 2  ;;  %v2760_v44 = vld [vmem:[%s3332_s1 + $0x368] sm:$0xff]  }
  0x43   : > { %2487 = vmatprep.subr.bf16.mxu1 %v2693_v56  ;;  %v1181_v56 = vrot.slane %v1179_v49, 3  ;;  %v2759_v49 = vld [vmem:[%s3332_s1 + $0x3a0] sm:$0xff]  }
  0x44   : > { %2460 = vmatpush3.bf16.msra.mxu0 %v2694_v57  ;;  %v1204_v57 = vrot.slane %v1202_v50, 2  ;;  %v2761_v50 = vld [vmem:[%s3332_s1 + $0x3e8] sm:$0xff]  }
  0x45   : > { %2501 = vmatprep.subr.bf16.mxu0 %v2696_v58  ;;  %v1207_v58 = vrot.slane %v1205_v39, 3  ;;  %v2762_v39 = vld [vmem:[%s3332_s1 + $0x328] sm:$0xff]  }
  0x46   : > { %2488 = vmatpush3.bf16.msra.mxu1 %v2695_v59  ;;  %v1212_v59 = vrot.slane %v1210_v51, 2  ;;  %v2764_v51 = vld [vmem:[%s3332_s1 + $0x370] sm:$0xff]  }
  0x47   : > { %997 = vmatmul.mubr.bf16.vlgmr.msra.gmra.mrb[8].mxu0 %v2939_v40  ;;  %2529 = vmatprep.subr.bf16.mxu1 %v2697_v60  ;;  %v2703_v40 = vld [vmem:[%s3332_s1 + $0x288] sm:$0xff]   ;;  %v1215_v60 = vrot.slane %v1213_v52, 3 }
  0x48   : > { %2502 = vmatpush3.bf16.msra.mxu0 %v2698_v61  ;;  %1004 = vmatprep.mubr.bf16.mxu0 %v2135_v63  ;;  %v1174_v61 = vor.u32 %v1173_v54, %v1170_v53  ;;  %v1151_v63 = vshrl.u32 %v2234_v31, 16  ;;  %v2763_v52 = vld [vmem:[%s3332_s1 + $0x3a8] sm:$0xff]   ;;  %v2766_v53 = vld [vmem:[%s3332_s1 + $0x330] sm:$0xff]   ;;  %v2768_v54 = vld [vmem:[%s3332_s1 + $0x378] sm:$0xff]  }
  0x49   : > { %2503 = vmatprep.subr.bf16.mxu0 %v2700_v62  ;;  %1045 = vmatmul.mubr.bf16.vlgmr.msra.gmra.mrb[8].mxu1 %v2951_v46  ;;  %v2712_v46 = vld [vmem:[%s3332_s1 + $0x258] sm:$0xff]   ;;  %v1182_v62 = vor.u32 %v1181_v56, %v1178_v55  ;;  %v1517_v55 = vld [vmem:[%s2915_s8] sm:$0x88]  ;;  %v2776_v56 = vld [vmem:[%s2915_s8 + $0x10] sm:$0xff] }
  0x4a   : > { %2530 = vmatpush3.bf16.msra.mxu1 %v2699_v0  ;;  %1052 = vmatprep.mubr.bf16.mxu1 %v2137_v2  ;;  %v1154_v0 = vshll.u32 %v2234_v31, 16  ;;  %v1216_v2 = vor.u32 %v1215_v60, %v1212_v59  ;;  %v2750_v31 = vld [vmem:[%s3332_s1 + $0x310] sm:$0xff]   ;;  %v1599_v59 = vrot.slane %v3179_v36, 3  ;;  %v1518_v60 = vld [vmem:[%s2915_s8 + $0x8] sm:$0x88] }
  0x4b   : > { %2531 = vmatprep.subr.bf16.mxu1 %v2701_v1  ;;  %v1208_v1 = vor.u32 %v1207_v58, %v1204_v57  ;;  %v2338_v57 = vcombine.low %v1517_v55, %v2776_v56  ;;  %v2339_v58 = vcombine.high %v1517_v55, %v2776_v56  ;;  %v1926_v36 = vld [vmem:[%s3334_s3 + $0x10] sm:$0xff] }
  0x4c   : > { %2504 = vmatpush3.bf16.msra.mxu0 %v2702_v3  ;;  %v1159_v3 = vshrl.u32 %v3176_v35, 16  ;;  %1939 = vperm.xlu1 %2623, %v1926_v36  }
  0x4d   : > { %2505 = vmatprep.subr.bf16.mxu0 %v2706_v4  ;;  %v1162_v4 = vshll.u32 %v3176_v35, 16 }
  0x4e   : > { %2532 = vmatpush3.bf16.msra.mxu1 %v2703_v40  ;;  %v1183_v40 = vsel %vm1149_vm1, %v1174_v61, %v1182_v62  ;;  %v1924_v61 = vld [vmem:[%s3334_s3] sm:$0xff] }
  0x4f   : > { %1005 = vmatmul.mubr.bf16.gmra.mrb[12].mxu0 %v2134_v5  ;;  %2533 = vmatprep.subr.bf16.mxu1 %v2707_v6  ;;  %v1153_v5 = vrot.slane %v1151_v63, 2  ;;  %v1156_v6 = vrot.slane %v1154_v0, 3  ;;  %v2777_v63 = vld [vmem:[%s2915_s8 + $0x18] sm:$0xff] }
  0x50   : > { %2506 = vmatpush3.bf16.msra.mxu0 %v2709_v7  ;;  %v1185_v7 = vshrl.u32 %v2236_v43, 16  ;;  %1450 = vmatprep.mubr.bf16.mxu0 %v1183_v40  ;;  %v2340_v0 = vcombine.low %v1518_v60, %v2777_v63  ;;  %v1595_v40 = vrot.slane %v2338_v57, 3 }
  0x51   : > { %2507 = vmatprep.subr.bf16.mxu0 %v2712_v46  ;;  %1053 = vmatmul.mubr.bf16.gmra.mrb[12].mxu1 %v2136_v9  ;;  %v1217_v46 = vsel %vm1149_vm1, %v1208_v1, %v1216_v2  ;;  %v1164_v9 = vrot.slane %v1162_v4, 3  ;;  %v2341_v1 = vcombine.high %v1518_v60, %v2777_v63  ;;  %v2770_v4 = vld [vmem:[%s3332_s1 + $0x338] sm:$0xff]  }
  0x52   : > { %2534 = vmatpush3.bf16.msra.mxu1 %v2710_v8  ;;  %v1161_v8 = vrot.slane %v1159_v3, 2  ;;  %1498 = vmatprep.mubr.bf16.mxu1 %v1217_v46  ;;  %v2769_v3 = vld [vmem:[%s3332_s1 + $0x3f8] sm:$0xff]   ;;  %v1925_v46 = vld [vmem:[%s3334_s3 + $0x8] sm:$0xff] }
  0x53   : > { %2535 = vmatprep.subr.bf16.mxu1 %v2713_v10  ;;  %v1188_v10 = vshll.u32 %v2236_v43, 16  ;;  %v2754_v43 = vld [vmem:[%s3332_s1 + $0x318] sm:$0xff]   ;;  %1929 = vperm.xlu0 %2622, %v1924_v61  }
  0x54   : > { %2508 = vmatpush3.bf16.msra.mxu0 %v2714_v11  ;;  %v1157_v11 = vor.u32 %v1156_v6, %v1153_v5  ;;  %v1598_v5 = vrot.slane %v2339_v58, 3  ;;  %v1596_v6 = vrot.slane %v3176_v35, 3  ;;  %v1602_v35 = vrot.slane %v3186_v47, 3 }
  0x55   : > { %2509 = vmatprep.subr.bf16.mxu0 %v2716_v12  ;;  %v1187_v12 = vrot.slane %v1185_v7, 2 }
  0x56   : > { %2536 = vmatpush3.bf16.msra.mxu1 %v2715_v13  ;;  %v1193_v13 = vshrl.u32 %v3186_v47, 16  ;;  %v1600_v7 = vsel %vm1594_vm2, %v1598_v5, %v1599_v59 }
  0x57   : > { %2537 = vmatprep.subr.bf16.mxu1 %v2717_v14  ;;  %v1196_v14 = vshll.u32 %v3186_v47, 16  ;;  %1934 = vperm.xlu0 %2622, %v1925_v46  }
  0x58   : > { %2510 = vmatpush3.bf16.msra.mxu0 %v2718_v15  ;;  %v2742_v15 = vld [vmem:[%s3332_s1 + $0x300] sm:$0xff]  }
  0x59   : > { %2511 = vmatprep.subr.bf16.mxu0 %v2720_v16  ;;  %v1165_v16 = vor.u32 %v1164_v9, %v1161_v8  ;;  %v2771_v8 = vld [vmem:[%s3332_s1 + $0x3b8] sm:$0xff]   ;;  %v1601_v9 = vrot.slane %v2340_v0, 3 }
  0x5a   : > { %2538 = vmatpush3.bf16.msra.mxu1 %v2719_v17  ;;  %v1190_v17 = vrot.slane %v1188_v10, 3 }
  0x5b   : > { %2539 = vmatprep.subr.bf16.mxu1 %v2721_v18  ;;  %v2744_v18 = vld [vmem:[%s3332_s1 + $0x348] sm:$0xff]  }
  0x5c   : > { %2512 = vmatpush3.bf16.msra.mxu0 %v2722_v19  ;;  %v1195_v19 = vrot.slane %v1193_v13, 2 }
  0x5d   : > { %2513 = vmatprep.subr.bf16.mxu0 %v2724_v20  ;;  %v1198_v20 = vrot.slane %v1196_v14, 3 }
  0x5e   : > { %2540 = vmatpush3.bf16.msra.mxu1 %v2723_v21  ;;  %v2743_v21 = vld [vmem:[%s3332_s1 + $0x380] sm:$0xff]  }
  0x5f   : > { %2541 = vmatprep.subr.bf16.mxu1 %v2725_v22  ;;  %v1166_v22 = vsel %vm1149_vm1, %v1157_v11, %v1165_v16  ;;  %v1597_v11 = vsel %vm1594_vm2, %v1595_v40, %v1596_v6 }
  0x60   : > { %2514 = vmatpush3.bf16.msra.mxu0 %v2726_v23  ;;  %v1191_v23 = vor.u32 %v1190_v17, %v1187_v12  ;;  %v1603_v12 = vsel %vm1594_vm2, %v1601_v9, %v1602_v35 }
  0x61   : > { %2515 = vmatprep.subr.bf16.mxu0 %v2728_v24  ;;  %v1199_v24 = vor.u32 %v1198_v20, %v1195_v19 }
  0x62   : > { %2542 = vmatpush3.bf16.msra.mxu1 %v2727_v25  ;;  %v2745_v25 = vld [vmem:[%s3332_s1 + $0x3c8] sm:$0xff]  }
  0x63   : > { %2543 = vmatprep.subr.bf16.mxu1 %v2729_v26  ;;  %v2746_v26 = vld [vmem:[%s3332_s1 + $0x308] sm:$0xff]  }
  0x64   : > { %2516 = vmatpush3.bf16.msra.mxu0 %v2730_v27  ;;  %v1200_v27 = vsel %vm1149_vm1, %v1191_v23, %v1199_v24 }
  0x65   : > { %2557 = vmatprep.subr.bf16.mxu0 %v2740_v33  ;;  %v2755_v33 = vld [vmem:[%s3332_s1 + $0x398] sm:$0xff]  }
  0x66   : > { %2544 = vmatpush3.bf16.msra.mxu1 %v2731_v28  ;;  %v2748_v28 = vld [vmem:[%s3332_s1 + $0x350] sm:$0xff]  }
  0x67   : > { %2585 = vmatprep.subr.bf16.mxu1 %v2741_v42  ;;  %1451 = vmatmul.mubr.bf16.vlgmr.msra.gmra.mrb[16].mxu0 %v1166_v22  ;;  %v2765_v42 = vld [vmem:[%s3332_s1 + $0x3f0] sm:$0xff]  }
  0x68   : > { %2558 = vmatpush3.bf16.msra.mxu0 %v2742_v15  ;;  %1458 = vmatprep.mubr.bf16.mxu0 %v1182_v62  ;;  %v2767_v62 = vld [vmem:[%s3332_s1 + $0x3b0] sm:$0xff]  }
  0x69   : > { %2559 = vmatprep.subr.bf16.mxu0 %v2744_v18  ;;  %1499 = vmatmul.mubr.bf16.vlgmr.msra.gmra.mrb[16].mxu1 %v1200_v27 }
  0x6a   : > { %2586 = vmatpush3.bf16.msra.mxu1 %v2743_v21  ;;  %1506 = vmatprep.mubr.bf16.mxu1 %v1216_v2  ;;  %v1605_v2 = vrot.slane %v3189_v37, 3  ;;  %v1604_v37 = vrot.slane %v2341_v1, 3 }
  0x6b   : > { %2587 = vmatprep.subr.bf16.mxu1 %v2745_v25 }
  0x6c   : > { %2560 = vmatpush3.bf16.msra.mxu0 %v2746_v26  ;;  %v1606_v10 = vsel %vm1594_vm2, %v1604_v37, %v1605_v2 }
  0x6d   : > { %2561 = vmatprep.subr.bf16.mxu0 %v2748_v28 }
  0x6e   : > { %2588 = vmatpush3.bf16.msra.mxu1 %v2747_v29 }
  0x6f   : > { %1459 = vmatmul.mubr.bf16.gmra.mrb[20].mxu0 %v1165_v16  ;;  %2589 = vmatprep.subr.bf16.mxu1 %v2749_v30 }
  0x70   : > { %2562 = vmatpush3.bf16.msra.mxu0 %v2750_v31  ;;  %1839 = vmatprep.mubr.bf16.mxu0 %v1600_v7 }
  0x71   : > { %2563 = vmatprep.subr.bf16.mxu0 %v2752_v32  ;;  %1507 = vmatmul.mubr.bf16.gmra.mrb[20].mxu1 %v1199_v24 }
  0x72   : > { %2590 = vmatpush3.bf16.msra.mxu1 %v2751_v38  ;;  %1887 = vmatprep.mubr.bf16.mxu1 %v1606_v10 }
  0x73   : > { %2591 = vmatprep.subr.bf16.mxu1 %v2753_v41 }
  0x74   : > { %2564 = vmatpush3.bf16.msra.mxu0 %v2754_v43 }
  0x75   : > { %2565 = vmatprep.subr.bf16.mxu0 %v2756_v45 }
  0x76   : > { %2592 = vmatpush3.bf16.msra.mxu1 %v2755_v33 }
  0x77   : > { %2593 = vmatprep.subr.bf16.mxu1 %v2757_v34 }
  0x78   : > { %2566 = vmatpush3.bf16.msra.mxu0 %v2758_v48 }
  0x79   : > { %2567 = vmatprep.subr.bf16.mxu0 %v2760_v44 }
  0x7a   : > { %2594 = vmatpush3.bf16.msra.mxu1 %v2759_v49 }
  0x7b   : > { %2595 = vmatprep.subr.bf16.mxu1 %v2761_v50 }
  0x7c   : > { %2568 = vmatpush3.bf16.msra.mxu0 %v2762_v39 }
  0x7d   : > { %2569 = vmatprep.subr.bf16.mxu0 %v2764_v51 }
  0x7e   : > { %2596 = vmatpush3.bf16.msra.mxu1 %v2763_v52 }
  0x7f   : > { %2597 = vmatprep.subr.bf16.mxu1 %v2765_v42 }
  0x80   : > { %2570 = vmatpush3.bf16.msra.mxu0 %v2766_v53 }
  0x81   : > { %2571 = vmatprep.subr.bf16.mxu0 %v2768_v54 }
  0x82   : > { %2598 = vmatpush3.bf16.msra.mxu1 %v2767_v62 }
  0x83   : > { %2599 = vmatprep.subr.bf16.mxu1 %v2769_v3 }
  0x84   : > { %2572 = vmatpush3.bf16.msra.mxu0 %v2770_v4 }
  0x86   : > { %2600 = vmatpush3.bf16.msra.mxu1 %v2771_v8 }
  0x87   : > { %1840 = vmatmul.mubr.bf16.vlgmr.msra.gmra.mrb[24].mxu0 %v1597_v11 }
  0x88   : > { %1847 = vmatprep.mubr.bf16.mxu0 %v1599_v59 }
  0x89   : > { %1888 = vmatmul.mubr.bf16.vlgmr.msra.gmra.mrb[24].mxu1 %v1603_v12 }
  0x8a   : > { %1895 = vmatprep.mubr.bf16.mxu1 %v1605_v2 }
  0x8f   : > { %1848 = vmatmul.mubr.bf16.gmra.mrb[28].mxu0 %v1596_v6 }
  0x91   : > { %1896 = vmatmul.mubr.bf16.gmra.mrb[28].mxu1 %v1602_v35 }
  0xfa   : > { %v2405_v13 = vpop.f32.mrb[0].mxu0 }
  0xfb   : > { %v2406_v14 = vpop.f32.mrb[1].mxu0  ;;  %v2433_v47 = vpop.f32.mrb[0].mxu1 }
  0xfc   : > { %v2407_v15 = vadd.f32 %v2406_v14, %v2405_v13  ;;  %v2408_v16 = vpop.f32.mrb[2].mxu0  ;;  %v2434_v18 = vpop.f32.mrb[1].mxu1 }
  0xfd   : > { %v2409_v17 = vpop.f32.mrb[3].mxu0  ;;  %v2435_v20 = vadd.f32 %v2434_v18, %v2433_v47  ;;  %v2436_v21 = vpop.f32.mrb[2].mxu1 }
  0xfe   : > { %v2410_v19 = vadd.f32 %v2409_v17, %v2408_v16  ;;  %v2437_v22 = vpop.f32.mrb[3].mxu1 }
  0xff   : > { %v725_v23 = vadd.f32 %v2435_v20, %v2407_v15  ;;  %v2438_v24 = vadd.f32 %v2437_v22, %v2436_v21 }
 0x101   : > { %v728_v26 = vadd.f32 %v2438_v24, %v2410_v19 }
 0x102   : > { %v2411_v25 = vpop.f32.mrb[4].mxu0 }
 0x103   : > { %v2412_v27 = vpop.f32.mrb[5].mxu0 }
 0x104   : > { %v2413_v28 = vadd.f32 %v2412_v27, %v2411_v25  ;;  %v2414_v29 = vpop.f32.mrb[6].mxu0  ;;  %v2439_v30 = vpop.f32.mrb[4].mxu1 }
 0x105   : > { %v2415_v31 = vpop.f32.mrb[7].mxu0  ;;  %v2440_v32 = vpop.f32.mrb[5].mxu1 }
 0x106   : > { %v2441_v38 = vadd.f32 %v2440_v32, %v2439_v30  ;;  %v2442_v41 = vpop.f32.mrb[6].mxu1 }
 0x107   : > { %v2443_v43 = vpop.f32.mrb[7].mxu1 }
 0x108   : > { %v733_v45 = vadd.f32 %v2441_v38, %v2413_v28 }
 0x11a   : > { %v2461_v33 = vpop.f32.mrb[8].mxu0 }
 0x11b   : > { %v2462_v34 = vpop.f32.mrb[9].mxu0 }
 0x11c   : > { %v2463_v48 = vadd.f32 %v2462_v34, %v2461_v33  ;;  %v2464_v44 = vpop.f32.mrb[10].mxu0  ;;  %v2489_v49 = vpop.f32.mrb[8].mxu1 }
 0x11d   : > { %v2465_v50 = vpop.f32.mrb[11].mxu0  ;;  %v2490_v51 = vpop.f32.mrb[9].mxu1 }
 0x11e   : > { %v999_v39 = vadd.f32 %v2463_v48, %v725_v23  ;;  %v2466_v52 = vadd.f32 %v2465_v50, %v2464_v44  ;;  %v2491_v42 = vadd.f32 %v2490_v51, %v2489_v49  ;;  %v2492_v53 = vpop.f32.mrb[10].mxu1 }
 0x11f   : > { %v2493_v55 = vpop.f32.mrb[11].mxu1 }
 0x120   : > { %v1002_v54 = vadd.f32 %v2466_v52, %v728_v26  ;;  %v1047_v56 = vadd.f32 %v2491_v42, %v999_v39  ;;  %v2494_v57 = vadd.f32 %v2493_v55, %v2492_v53  ;;  %v2374_v39 = vld [vmem:[%s3333_s2] ss:$0 sm:$0xff]  ;;  %v1930_v53 = vpop.permute.xlu0 %1929 }
 0x122   : > { %v2467_v58 = vpop.f32.mrb[12].mxu0  ;;  %v1050_v59 = vadd.f32 %v2494_v57, %v1002_v54 }
 0x123   : > { %v2468_v60 = vpop.f32.mrb[13].mxu0 }
 0x124   : > { %v2469_v61 = vadd.f32 %v2468_v60, %v2467_v58  ;;  %v2470_v62 = vpop.f32.mrb[14].mxu0  ;;  %v2495_v63 = vpop.f32.mrb[12].mxu1 }
 0x125   : > { %v2471_v0 = vpop.f32.mrb[15].mxu0  ;;  %v2496_v2 = vpop.f32.mrb[13].mxu1 }
 0x126   : > { %v1007_v1 = vadd.f32 %v2469_v61, %v733_v45  ;;  %v2497_v36 = vadd.f32 %v2496_v2, %v2495_v63  ;;  %v2498_v3 = vpop.f32.mrb[14].mxu1 }
 0x127   : > { %v2499_v4 = vpop.f32.mrb[15].mxu1  ;;  %v1935_v3 = vpop.permute.xlu0 %1934 }
 0x128   : > { %v1055_v40 = vadd.f32 %v2497_v36, %v1007_v1 }
 0x13a   : > { %v2517_v5 = vpop.f32.mrb[16].mxu0 }
 0x13b   : > { %v2518_v6 = vpop.f32.mrb[17].mxu0 }
 0x13c   : > { %v2519_v37 = vadd.f32 %v2518_v6, %v2517_v5  ;;  %v2520_v7 = vpop.f32.mrb[18].mxu0  ;;  %v2545_v46 = vpop.f32.mrb[16].mxu1 }
 0x13d   : > { %v2521_v8 = vpop.f32.mrb[19].mxu0  ;;  %v2546_v9 = vpop.f32.mrb[17].mxu1 }
 0x13e   : > { %v2522_v10 = vadd.f32 %v2521_v8, %v2520_v7  ;;  %v2547_v35 = vadd.f32 %v2546_v9, %v2545_v46  ;;  %v2548_v11 = vpop.f32.mrb[18].mxu1  ;;  %v1940_v8 = vpop.permute.xlu1 %1939 }
 0x13f   : > { %v2549_v12 = vpop.f32.mrb[19].mxu1 }
 0x140   : > { %v1501_v13 = vadd.f32 %v2547_v35, %v2519_v37  ;;  %v2550_v14 = vadd.f32 %v2549_v12, %v2548_v11 }
 0x142   : > { %v2523_v15 = vpop.f32.mrb[20].mxu0  ;;  %v1514_v16 = vadd.f32 %v1501_v13, %v1047_v56  ;;  %v1504_v47 = vadd.f32 %v2550_v14, %v2522_v10 }
 0x143   : > { %v2524_v17 = vpop.f32.mrb[21].mxu0 }
 0x144   : > { %v2525_v18 = vadd.f32 %v2524_v17, %v2523_v15  ;;  %v2526_v19 = vpop.f32.mrb[22].mxu0  ;;  %v1515_v20 = vadd.f32 %v1504_v47, %v1050_v59  ;;  %v2551_v21 = vpop.f32.mrb[20].mxu1 }
 0x145   : > { %v2527_v22 = vpop.f32.mrb[23].mxu0  ;;  %v2552_v23 = vpop.f32.mrb[21].mxu1 }
 0x146   : > { %v2553_v24 = vadd.f32 %v2552_v23, %v2551_v21  ;;  %v2554_v25 = vpop.f32.mrb[22].mxu1 }
 0x147   : > { %v2555_v26 = vpop.f32.mrb[23].mxu1 }
 0x148   : > { %v1509_v27 = vadd.f32 %v2553_v24, %v2525_v18 }
 0x14a   : > { %v1516_v28 = vadd.f32 %v1509_v27, %v1055_v40 }
 0x15a   : > { %v2573_v29 = vpop.f32.mrb[24].mxu0 }
 0x15b   : > { %v2574_v30 = vpop.f32.mrb[25].mxu0 }
 0x15c   : > { %v2575_v31 = vadd.f32 %v2574_v30, %v2573_v29  ;;  %v2576_v32 = vpop.f32.mrb[26].mxu0  ;;  %v2601_v38 = vpop.f32.mrb[24].mxu1 }
 0x15d   : > { %v2577_v41 = vpop.f32.mrb[27].mxu0  ;;  %v2602_v43 = vpop.f32.mrb[25].mxu1 }
 0x15e   : > { %v2578_v45 = vadd.f32 %v2577_v41, %v2576_v32  ;;  %v2603_v33 = vadd.f32 %v2602_v43, %v2601_v38  ;;  %v2604_v34 = vpop.f32.mrb[26].mxu1 }
 0x15f   : > { %v2605_v48 = vpop.f32.mrb[27].mxu1 }
 0x160   : > { %v1890_v44 = vadd.f32 %v2603_v33, %v2575_v31  ;;  %v2606_v49 = vadd.f32 %v2605_v48, %v2604_v34 }
 0x162   : > { %v2579_v50 = vpop.f32.mrb[28].mxu0  ;;  %v1903_v51 = vadd.f32 %v1890_v44, %v1514_v16  ;;  %v1893_v52 = vadd.f32 %v2606_v49, %v2578_v45 }
 0x163   : > { %v2580_v42 = vpop.f32.mrb[29].mxu0 }
 0x164   : > { %v2581_v54 = vadd.f32 %v2580_v42, %v2579_v50  ;;  %v2582_v55 = vpop.f32.mrb[30].mxu0  ;;  %v1904_v56 = vadd.f32 %v1893_v52, %v1515_v20  ;;  %v2607_v57 = vpop.f32.mrb[28].mxu1  ;;  %v1912_v58 = vadd.f32 %v2374_v39, %v1903_v51 }
 0x165   : > { %v2583_v59 = vpop.f32.mrb[31].mxu0  ;;  %v2608_v60 = vpop.f32.mrb[29].mxu1 }
 0x166   : > { %v2609_v61 = vadd.f32 %v2608_v60, %v2607_v57  ;;  %vm1915_vm3 = vcmp.ge.f32.partialorder %v1912_v58, 0.0  ;;  %v1918_v62 = vmul.f32 0.2, %v1912_v58  ;;  %v2610_v63 = vpop.f32.mrb[30].mxu1  ;;  %v1913_v0 = vadd.f32 %v2374_v39, %v1904_v56 }
 0x167   : > { %v2611_v1 = vpop.f32.mrb[31].mxu1 }
 0x168   : > { %v1898_v2 = vadd.f32 %v2609_v61, %v2581_v54  ;;  %v1921_v36 = vsel %vm1915_vm3, %v1912_v58, %v1918_v62  ;;  %vm1916_vm4 = vcmp.ge.f32.partialorder %v1913_v0, 0.0  ;;  %v1919_v4 = vmul.f32 0.2, %v1913_v0 }
 0x169   : > { %v1942_v6 = vmul.f32 %v1930_v53, %v1921_v36 }
 0x16a   : > { %v1905_v40 = vadd.f32 %v1898_v2, %v1516_v28  ;;  %v1922_v5 = vsel %vm1916_vm4, %v1913_v0, %v1919_v4 }
 0x16b   : > { %v1943_v37 = vmul.f32 %v1935_v3, %v1922_v5 }
 0x16c   : > { %v1914_v7 = vadd.f32 %v2374_v39, %v1905_v40 }
 0x16d   : > { %v2387_v46 = vpack.c.bf16 %v1943_v37, %v1942_v6 }
 0x16e   : > { %vm1917_vm5 = vcmp.ge.f32.partialorder %v1914_v7, 0.0  ;;  %v1920_v9 = vmul.f32 0.2, %v1914_v7 }
 0x16f   : > { %2388 = vst [vmem:[%s202_s7] sm:$0xff] %v2387_v46  }
 0x170   : > { %v1923_v10 = vsel %vm1917_vm5, %v1914_v7, %v1920_v9 }
 0x171   : > { %v1944_v35 = vmul.f32 %v1940_v8, %v1923_v10 }
 0x173   : > { %v2383_v11 = vpack.c.bf16 %v1944_v35, %v1944_v35 }
 0x175   : > { %1960 = vst [vmem:[%s202_s7 + $0x8] sm:$0xf] %v2383_v11 }
 0x176 PF: > { %s14_s15 = sadd.s32 1, %s2784_s15  }
 0x177   : > { %p11_p5 = scmp.ge.s32.totalorder %s14_s15, 4  }
 0x179   :  { %13 = sbr.rel (!%p11_p5) target bundleno = 1 (0x1), region = 69 }

// kernel: dcgan_discriminator.7
= control target key start
LH: loop header
LB: loop body
LE: loop exit
PB: predicated region body
PF: predicated region fallthrough
CT: control target
= control target key end

     0   :  { %s2481_s15 = smov 0   ;;  %s2933_s0 = inlined_call_operand.vmem [shape: bf16[32,512], index: 0, kind: input, shape index: {}]   ;;  %s2934_s1 = inlined_call_operand.vmem [shape: bf16[4,512,128], index: 1, kind: input, shape index: {}]   ;;  %s2935_s2 = inlined_call_operand.vmem [shape: f32[1,128], index: 2, kind: input, shape index: {}]   ;;  %s2936_s3 = inlined_call_operand.vmem [shape: f32[8,1], index: 3, kind: input, shape index: {}]   ;;  %s2937_s4 = inlined_call_operand.vmem [shape: bf16[16,128], index: 4, kind: output, shape index: {}]  }
   0x1 LB: > { %s2487_s16 = sadd.s32 4294967295, %s2453_s15   ;;  %p1772_p0 = scmp.ge.s32.totalorder %s2453_s15, 1  ;;  %s2453_s15 = sphi %s2481_s15, %s14_s15  }
   0x2   : > { %p164_p1 = scmp.lt.s32.totalorder %s2453_s15, 3 }
   0x4   : > { %p165_p2 = pnand %p1772_p0, %p164_p1 }
   0x5   : > { %v2303_v0 = vld [vmem:[%s2934_s1 + $0x140] sm:$0xff] (!%p165_p2)   ;;  %v2307_v4 = vld [vmem:[%s2934_s1 + $0x148] sm:$0xff] (!%p165_p2)   ;;  %v2311_v8 = vld [vmem:[%s2934_s1 + $0x150] sm:$0xff] (!%p165_p2)   ;;  %s1773_s25 = sshll.u32 (!%p165_p2), %s2487_s16, 1  ;;  %v2455_v16 = vmov (!%p165_p2), 0   ;;  %p197_p4 = scmp.lt.s32.totalorder (!%p165_p2), %s2487_s16, 1 }
   0x6   : > { %168 = sbr.rel (%p165_p2) target bundleno = 365 (0x16d), region = 36  ;;  %v2304_v1 = vld [vmem:[%s2934_s1 + $0x1c0] sm:$0xff] (!%p165_p2)   ;;  %2117 = vmatprep.subr.bf16.mxu0 (!%p165_p2), %v2303_v0  ;;  %v2308_v5 = vld [vmem:[%s2934_s1 + $0x1c8] sm:$0xff] (!%p165_p2)   ;;  %v2312_v9 = vld [vmem:[%s2934_s1 + $0x1d0] sm:$0xff] (!%p165_p2)   ;;  %2302 = vset.pattern.permute.xlu0 (!%p165_p2), %v2455_v16  ;;  %p191_p3 = scmp.lt.s32.totalorder (!%p165_p2), %s1773_s25, 3 }
   0x7   : > { %v2305_v2 = vld [vmem:[%s2934_s1 + $0x100] sm:$0xff] (!%p165_p2)   ;;  %2139 = vmatprep.subr.bf16.mxu1 (!%p165_p2), %v2304_v1  ;;  %v2309_v6 = vld [vmem:[%s2934_s1 + $0x108] sm:$0xff] (!%p165_p2)   ;;  %v2313_v10 = vld [vmem:[%s2934_s1 + $0x110] sm:$0xff] (!%p165_p2)  }
   0x8   : > { %v2306_v3 = vld [vmem:[%s2934_s1 + $0x180] sm:$0xff] (!%p165_p2)   ;;  %2118 = vmatpush3.bf16.msra.mxu0 (!%p165_p2), %v2305_v2  ;;  %v2310_v7 = vld [vmem:[%s2934_s1 + $0x188] sm:$0xff] (!%p165_p2)   ;;  %v2314_v11 = vld [vmem:[%s2934_s1 + $0x190] sm:$0xff] (!%p165_p2)  }
   0x9   : > { %2140 = vmatpush3.bf16.msra.mxu1 (!%p165_p2), %v2306_v3  ;;  %2119 = vmatprep.subr.bf16.mxu0 (!%p165_p2), %v2307_v4  ;;  %v2315_v12 = vld [vmem:[%s2934_s1 + $0x158] sm:$0xff] (!%p165_p2)   ;;  %v2319_v17 = vld [vmem:[%s2934_s1 + $0x160] sm:$0xff] (!%p165_p2)   ;;  %v2323_v21 = vld [vmem:[%s2934_s1 + $0x168] sm:$0xff] (!%p165_p2)  }
   0xa   : > { %2141 = vmatprep.subr.bf16.mxu1 (!%p165_p2), %v2308_v5  ;;  %v2316_v13 = vld [vmem:[%s2934_s1 + $0x1d8] sm:$0xff] (!%p165_p2)   ;;  %v2320_v18 = vld [vmem:[%s2934_s1 + $0x1e0] sm:$0xff] (!%p165_p2)   ;;  %v2324_v22 = vld [vmem:[%s2934_s1 + $0x1e8] sm:$0xff] (!%p165_p2)  }
   0xb   : > { %v2317_v14 = vld [vmem:[%s2934_s1 + $0x118] sm:$0xff] (!%p165_p2)   ;;  %v2321_v19 = vld [vmem:[%s2934_s1 + $0x120] sm:$0xff] (!%p165_p2)   ;;  %v2325_v23 = vld [vmem:[%s2934_s1 + $0x128] sm:$0xff] (!%p165_p2)  }
   0xc   : > { %2120 = vmatpush3.bf16.msra.mxu0 (!%p165_p2), %v2309_v6  ;;  %v2318_v15 = vld [vmem:[%s2934_s1 + $0x198] sm:$0xff] (!%p165_p2)   ;;  %v2322_v20 = vld [vmem:[%s2934_s1 + $0x1a0] sm:$0xff] (!%p165_p2)   ;;  %v2326_v24 = vld [vmem:[%s2934_s1 + $0x1a8] sm:$0xff] (!%p165_p2)  }
   0xd   : > { %2142 = vmatpush3.bf16.msra.mxu1 %v2310_v7  ;;  %2121 = vmatprep.subr.bf16.mxu0 %v2311_v8  ;;  %s2939_s25 = smov (!%p191_p3, %s1773_s25), 3  ;;  %v2327_v25 = vld [vmem:[%s2934_s1 + $0x170] sm:$0xff]   ;;  %v2331_v29 = vld [vmem:[%s2934_s1 + $0x178] sm:$0xff]   ;;  %v2339_v41 = vld [vmem:[%s2934_s1 + $0x40] sm:$0xff]   ;;  %s2941_s16 = smov (!%p197_p4, %s2487_s16), 1 }
   0xe   : > { %2143 = vmatprep.subr.bf16.mxu1 %v2312_v9  ;;  %v2328_v26 = vld [vmem:[%s2934_s1 + $0x1f0] sm:$0xff]   ;;  %s2116_s24 = sshll.u32 %s2939_s25, 4  ;;  %v2332_v30 = vld [vmem:[%s2934_s1 + $0x1f8] sm:$0xff]   ;;  %v2340_v46 = vld [vmem:[%s2934_s1 + $0xc0] sm:$0xff]   ;;  %s1776_s26 = sshll.u32 %s2941_s16, 2 }
   0xf   : > { %v2329_v27 = vld [vmem:[%s2934_s1 + $0x130] sm:$0xff]   ;;  %s2585_s8 = scalar_lea.vmem %s2933_s0, %s2116_s24  ;;  %v2333_v31 = vld [vmem:[%s2934_s1 + $0x138] sm:$0xff]   ;;  %v2341_v53 = vld [vmem:[%s2934_s1] sm:$0xff]   ;;  %s200_s29 = scalar_lea.vmem %s2937_s4, %s1776_s26 }
  0x10   : > { %2122 = vmatpush3.bf16.msra.mxu0 %v2313_v10  ;;  %v2330_v28 = vld [vmem:[%s2934_s1 + $0x1b0] sm:$0xff]   ;;  %v2334_v32 = vld [vmem:[%s2934_s1 + $0x1b8] sm:$0xff]   ;;  %v2594_v33 = vld [vmem:[%s2585_s8] sm:$0xff] }
  0x11   : > { %2144 = vmatpush3.bf16.msra.mxu1 %v2314_v11  ;;  %2123 = vmatprep.subr.bf16.mxu0 %v2315_v12  ;;  %v271_v34 = vld [vmem:[%s2585_s8 + $0x10] sm:$0x11]  ;;  %v2598_v35 = vld [vmem:[%s2585_s8 + $0x8] sm:$0xff]  ;;  %v272_v38 = vld [vmem:[%s2585_s8 + $0x18] sm:$0x11]  ;;  %v1878_v0 = vcombine.high %v2594_v33, %v2594_v33 }
  0x12   : > { %2145 = vmatprep.subr.bf16.mxu1 %v2316_v13  ;;  %v1841_v36 = vcombine.low %v2594_v33, %v271_v34  ;;  %v1842_v37 = vcombine.high %v2594_v33, %v271_v34  ;;  %v1843_v39 = vcombine.low %v2598_v35, %v272_v38  ;;  %v1844_v40 = vcombine.high %v2598_v35, %v272_v38  ;;  %v2342_v56 = vld [vmem:[%s2934_s1 + $0x80] sm:$0xff]   ;;  %v2343_v57 = vld [vmem:[%s2934_s1 + $0x48] sm:$0xff]   ;;  %v2347_v3 = vld [vmem:[%s2934_s1 + $0x50] sm:$0xff]  }
  0x13   : > { %v2344_v62 = vld [vmem:[%s2934_s1 + $0xc8] sm:$0xff]   ;;  %v1880_v2 = vcombine.high %v2598_v35, %v2598_v35  ;;  %v2348_v4 = vld [vmem:[%s2934_s1 + $0xd0] sm:$0xff]   ;;  %v2351_v7 = vld [vmem:[%s2934_s1 + $0x58] sm:$0xff]  }
  0x14   : > { %2124 = vmatpush3.bf16.msra.mxu0 %v2317_v14  ;;  %v362_v42 = vshrl.u32 %v1842_v37, 16  ;;  %v364_v43 = vshll.u32 %v1842_v37, 16  ;;  %v355_v44 = vshrl.u32 %v1841_v36, 16  ;;  %v357_v45 = vshll.u32 %v1841_v36, 16  ;;  %v2345_v63 = vld [vmem:[%s2934_s1 + $0x8] sm:$0xff]   ;;  %v2349_v5 = vld [vmem:[%s2934_s1 + $0x10] sm:$0xff]  }
  0x15   : > { %2146 = vmatpush3.bf16.msra.mxu1 %v2318_v15  ;;  %2125 = vmatprep.subr.bf16.mxu0 %v2319_v17  ;;  %v376_v47 = vshrl.u32 %v1844_v40, 16  ;;  %v378_v48 = vshll.u32 %v1844_v40, 16  ;;  %v369_v49 = vshrl.u32 %v1843_v39, 16  ;;  %v371_v50 = vshll.u32 %v1843_v39, 16  ;;  %v2346_v1 = vld [vmem:[%s2934_s1 + $0x88] sm:$0xff]   ;;  %v2350_v6 = vld [vmem:[%s2934_s1 + $0x90] sm:$0xff]  }
  0x16   : > { %2147 = vmatprep.subr.bf16.mxu1 %v2320_v18  ;;  %v366_v51 = vrot.slane %v364_v43, 1  ;;  %v359_v52 = vrot.slane %v357_v45, 1  ;;  %v2352_v8 = vld [vmem:[%s2934_s1 + $0xd8] sm:$0xff]   ;;  %v2355_v11 = vld [vmem:[%s2934_s1 + $0x60] sm:$0xff]   ;;  %v2359_v15 = vld [vmem:[%s2934_s1 + $0x68] sm:$0xff]  }
  0x17   : > { %v380_v54 = vrot.slane %v378_v48, 1  ;;  %v373_v55 = vrot.slane %v371_v50, 1  ;;  %v2353_v9 = vld [vmem:[%s2934_s1 + $0x18] sm:$0xff]   ;;  %v2356_v12 = vld [vmem:[%s2934_s1 + $0xe0] sm:$0xff]   ;;  %v2360_v16 = vld [vmem:[%s2934_s1 + $0xe8] sm:$0xff]  }
  0x18   : > { %2126 = vmatpush3.bf16.msra.mxu0 %v2321_v19  ;;  %v367_v58 = vor.u32 %v366_v51, %v362_v42  ;;  %v360_v59 = vor.u32 %v359_v52, %v355_v44  ;;  %v2354_v10 = vld [vmem:[%s2934_s1 + $0x98] sm:$0xff]   ;;  %v2357_v13 = vld [vmem:[%s2934_s1 + $0x20] sm:$0xff]   ;;  %v2361_v17 = vld [vmem:[%s2934_s1 + $0x28] sm:$0xff]  }
  0x19   : > { %2148 = vmatpush3.bf16.msra.mxu1 %v2322_v20  ;;  %2127 = vmatprep.subr.bf16.mxu0 %v2323_v21  ;;  %v381_v60 = vor.u32 %v380_v54, %v376_v47  ;;  %v374_v61 = vor.u32 %v373_v55, %v369_v49  ;;  %v2358_v14 = vld [vmem:[%s2934_s1 + $0xa0] sm:$0xff]   ;;  %v2362_v18 = vld [vmem:[%s2934_s1 + $0xa8] sm:$0xff]   ;;  %v2363_v19 = vld [vmem:[%s2934_s1 + $0x70] sm:$0xff]  }
  0x1a   : > { %2149 = vmatprep.subr.bf16.mxu1 %v2324_v22  ;;  %610 = vmatprep.mubr.bf16.mxu0 %v367_v58  ;;  %v2364_v20 = vld [vmem:[%s2934_s1 + $0xf0] sm:$0xff]   ;;  %v2379_v34 = vld [vmem:[%s2934_s1 + $0x248] sm:$0xff]   ;;  %v2388_v42 = vld [vmem:[%s2934_s1 + $0x2d8] sm:$0xff]  }
  0x1b   : > { %650 = vmatprep.mubr.bf16.mxu1 %v381_v60  ;;  %v2365_v21 = vld [vmem:[%s2934_s1 + $0x30] sm:$0xff]   ;;  %v2380_v36 = vld [vmem:[%s2934_s1 + $0x2c8] sm:$0xff]   ;;  %v2389_v43 = vld [vmem:[%s2934_s1 + $0x218] sm:$0xff]  }
  0x1c   : > { %2128 = vmatpush3.bf16.msra.mxu0 %v2325_v23  ;;  %v2366_v22 = vld [vmem:[%s2934_s1 + $0xb0] sm:$0xff]   ;;  %v2367_v23 = vld [vmem:[%s2934_s1 + $0x78] sm:$0xff]   ;;  %v2391_v45 = vld [vmem:[%s2934_s1 + $0x260] sm:$0xff]  }
  0x1d   : > { %2150 = vmatpush3.bf16.msra.mxu1 %v2326_v24  ;;  %2129 = vmatprep.subr.bf16.mxu0 %v2327_v25  ;;  %v2368_v24 = vld [vmem:[%s2934_s1 + $0xf8] sm:$0xff]   ;;  %v2383_v37 = vld [vmem:[%s2934_s1 + $0x250] sm:$0xff]   ;;  %v2393_v47 = vld [vmem:[%s2934_s1 + $0x220] sm:$0xff]  }
  0x1e   : > { %2151 = vmatprep.subr.bf16.mxu1 %v2328_v26  ;;  %v2369_v25 = vld [vmem:[%s2934_s1 + $0x38] sm:$0xff]   ;;  %v2384_v38 = vld [vmem:[%s2934_s1 + $0x2d0] sm:$0xff]   ;;  %v2394_v48 = vld [vmem:[%s2934_s1 + $0x2a0] sm:$0xff]  }
  0x1f   : > { %v2370_v26 = vld [vmem:[%s2934_s1 + $0xb8] sm:$0xff]   ;;  %v2385_v39 = vld [vmem:[%s2934_s1 + $0x210] sm:$0xff]   ;;  %v2395_v49 = vld [vmem:[%s2934_s1 + $0x268] sm:$0xff]  }
  0x20   : > { %2130 = vmatpush3.bf16.msra.mxu0 %v2329_v27  ;;  %v2375_v27 = vld [vmem:[%s2934_s1 + $0x240] sm:$0xff]   ;;  %v2386_v40 = vld [vmem:[%s2934_s1 + $0x290] sm:$0xff]   ;;  %v2390_v44 = vld [vmem:[%s2934_s1 + $0x298] sm:$0xff]  }
  0x21   : > { %2152 = vmatpush3.bf16.msra.mxu1 %v2330_v28  ;;  %2131 = vmatprep.subr.bf16.mxu0 %v2331_v29  ;;  %v2376_v28 = vld [vmem:[%s2934_s1 + $0x2c0] sm:$0xff]   ;;  %v2396_v50 = vld [vmem:[%s2934_s1 + $0x2e8] sm:$0xff]   ;;  %v2400_v54 = vld [vmem:[%s2934_s1 + $0x2f0] sm:$0xff]  }
  0x22   : > { %2153 = vmatprep.subr.bf16.mxu1 %v2332_v30  ;;  %v2377_v29 = vld [vmem:[%s2934_s1 + $0x200] sm:$0xff]   ;;  %v1877_v30 = vcombine.low %v2594_v33, %v2594_v33  ;;  %v2381_v33 = vld [vmem:[%s2934_s1 + $0x208] sm:$0xff]   ;;  %v2401_v55 = vld [vmem:[%s2934_s1 + $0x230] sm:$0xff]  }
  0x23   : > { %v2397_v51 = vld [vmem:[%s2934_s1 + $0x228] sm:$0xff]   ;;  %v2404_v58 = vld [vmem:[%s2934_s1 + $0x2f8] sm:$0xff]  }
  0x24   : > { %2132 = vmatpush3.bf16.msra.mxu0 %v2333_v31  ;;  %v2378_v31 = vld [vmem:[%s2934_s1 + $0x280] sm:$0xff]   ;;  %v2398_v52 = vld [vmem:[%s2934_s1 + $0x2a8] sm:$0xff]   ;;  %v2406_v60 = vld [vmem:[%s2934_s1 + $0x2b8] sm:$0xff]  }
  0x25   : > { %2154 = vmatpush3.bf16.msra.mxu1 %v2334_v32  ;;  %2161 = vmatprep.subr.bf16.mxu0 %v2339_v41  ;;  %v1879_v32 = vcombine.low %v2598_v35, %v2598_v35  ;;  %v2382_v35 = vld [vmem:[%s2934_s1 + $0x288] sm:$0xff]   ;;  %v2387_v41 = vld [vmem:[%s2934_s1 + $0x258] sm:$0xff]  }
  0x26   : > { %2183 = vmatprep.subr.bf16.mxu1 %v2340_v46  ;;  %v2392_v46 = vld [vmem:[%s2934_s1 + $0x2e0] sm:$0xff]  }
  0x27   : > { %611 = vmatmul.mubr.bf16.vlgmr.msra.gmra.mrb[0].mxu0 %v360_v59  ;;  %v2405_v59 = vld [vmem:[%s2934_s1 + $0x238] sm:$0xff]  }
  0x28   : > { %651 = vmatmul.mubr.bf16.vlgmr.msra.gmra.mrb[0].mxu1 %v374_v61  ;;  %2162 = vmatpush3.bf16.msra.mxu0 %v2341_v53  ;;  %v2399_v53 = vld [vmem:[%s2934_s1 + $0x270] sm:$0xff]   ;;  %v944_v61 = vld [vmem:[%s2585_s8] sm:$0xee] }
  0x29   : > { %2184 = vmatpush3.bf16.msra.mxu1 %v2342_v56  ;;  %2163 = vmatprep.subr.bf16.mxu0 %v2343_v57  ;;  %v2402_v56 = vld [vmem:[%s2934_s1 + $0x2b0] sm:$0xff]   ;;  %v2403_v57 = vld [vmem:[%s2934_s1 + $0x278] sm:$0xff]  }
  0x2a   : > { %2185 = vmatprep.subr.bf16.mxu1 %v2344_v62  ;;  %896 = vmatprep.mubr.bf16.mxu0 %v1878_v0  ;;  %v2807_v62 = vld [vmem:[%s2585_s8 + $0x10] sm:$0x33]  ;;  %v2811_v0 = vld [vmem:[%s2585_s8 + $0x18] sm:$0x33] }
  0x2b   : > { %936 = vmatprep.mubr.bf16.mxu1 %v1880_v2  ;;  %v1978_v2 = vcombine.high %v944_v61, %v2807_v62 }
  0x2c   : > { %2164 = vmatpush3.bf16.msra.mxu0 %v2345_v63  ;;  %v945_v63 = vld [vmem:[%s2585_s8 + $0x8] sm:$0xee] }
  0x2d   : > { %2186 = vmatpush3.bf16.msra.mxu1 %v2346_v1  ;;  %2165 = vmatprep.subr.bf16.mxu0 %v2347_v3  ;;  %v1977_v1 = vcombine.low %v944_v61, %v2807_v62  ;;  %v1979_v3 = vcombine.low %v945_v63, %v2811_v0 }
  0x2e   : > { %2187 = vmatprep.subr.bf16.mxu1 %v2348_v4  ;;  %v2411_v4 = vld [vmem:[%s2934_s1 + $0x340] sm:$0xff]  }
  0x30   : > { %2166 = vmatpush3.bf16.msra.mxu0 %v2349_v5  ;;  %v1980_v5 = vcombine.high %v945_v63, %v2811_v0  ;;  %v1706_v63 = vld [vmem:[%s2936_s3] sm:$0xff] }
  0x31   : > { %2188 = vmatpush3.bf16.msra.mxu1 %v2350_v6  ;;  %2167 = vmatprep.subr.bf16.mxu0 %v2351_v7  ;;  %v2412_v6 = vld [vmem:[%s2934_s1 + $0x3c0] sm:$0xff]   ;;  %v1038_v7 = vshrl.u32 %v1978_v2, 16 }
  0x32   : > { %2189 = vmatprep.subr.bf16.mxu1 %v2352_v8  ;;  %v1041_v8 = vshll.u32 %v1978_v2, 16  ;;  %1709 = vperm.xlu0 %2302, %v1706_v63  }
  0x34   : > { %2168 = vmatpush3.bf16.msra.mxu0 %v2353_v9  ;;  %v1030_v9 = vshrl.u32 %v1977_v1, 16 }
  0x35   : > { %2190 = vmatpush3.bf16.msra.mxu1 %v2354_v10  ;;  %2169 = vmatprep.subr.bf16.mxu0 %v2355_v11  ;;  %v1033_v10 = vshll.u32 %v1977_v1, 16  ;;  %v1054_v11 = vshrl.u32 %v1980_v5, 16 }
  0x36   : > { %2191 = vmatprep.subr.bf16.mxu1 %v2356_v12  ;;  %v1057_v12 = vshll.u32 %v1980_v5, 16 }
  0x38   : > { %2170 = vmatpush3.bf16.msra.mxu0 %v2357_v13  ;;  %v1046_v13 = vshrl.u32 %v1979_v3, 16 }
  0x39   : > { %2192 = vmatpush3.bf16.msra.mxu1 %v2358_v14  ;;  %2171 = vmatprep.subr.bf16.mxu0 %v2359_v15  ;;  %v1049_v14 = vshll.u32 %v1979_v3, 16  ;;  %v1040_v15 = vrot.slane %v1038_v7, 1 }
  0x3a   : > { %2193 = vmatprep.subr.bf16.mxu1 %v2360_v16  ;;  %v1043_v16 = vrot.slane %v1041_v8, 2 }
  0x3c   : > { %2172 = vmatpush3.bf16.msra.mxu0 %v2361_v17  ;;  %v1032_v17 = vrot.slane %v1030_v9, 1 }
  0x3d   : > { %2194 = vmatpush3.bf16.msra.mxu1 %v2362_v18  ;;  %2173 = vmatprep.subr.bf16.mxu0 %v2363_v19  ;;  %v1035_v18 = vrot.slane %v1033_v10, 2  ;;  %v2413_v19 = vld [vmem:[%s2934_s1 + $0x300] sm:$0xff]  }
  0x3e   : > { %2195 = vmatprep.subr.bf16.mxu1 %v2364_v20  ;;  %v1056_v20 = vrot.slane %v1054_v11, 1 }
  0x40   : > { %2174 = vmatpush3.bf16.msra.mxu0 %v2365_v21  ;;  %v1059_v21 = vrot.slane %v1057_v12, 2 }
  0x41   : > { %2196 = vmatpush3.bf16.msra.mxu1 %v2366_v22  ;;  %2175 = vmatprep.subr.bf16.mxu0 %v2367_v23  ;;  %v1048_v22 = vrot.slane %v1046_v13, 1  ;;  %v1051_v23 = vrot.slane %v1049_v14, 2 }
  0x42   : > { %2197 = vmatprep.subr.bf16.mxu1 %v2368_v24  ;;  %v2414_v24 = vld [vmem:[%s2934_s1 + $0x380] sm:$0xff]  }
  0x44   : > { %2176 = vmatpush3.bf16.msra.mxu0 %v2369_v25  ;;  %v1044_v25 = vor.u32 %v1043_v16, %v1040_v15 }
  0x45   : > { %2198 = vmatpush3.bf16.msra.mxu1 %v2370_v26  ;;  %2205 = vmatprep.subr.bf16.mxu0 %v2375_v27  ;;  %v1036_v26 = vor.u32 %v1035_v18, %v1032_v17  ;;  %v1060_v27 = vor.u32 %v1059_v21, %v1056_v20 }
  0x46   : > { %2227 = vmatprep.subr.bf16.mxu1 %v2376_v28  ;;  %v1052_v28 = vor.u32 %v1051_v23, %v1048_v22 }
  0x47   : > { %897 = vmatmul.mubr.bf16.vlgmr.msra.gmra.mrb[4].mxu0 %v1877_v30  ;;  %v2416_v30 = vld [vmem:[%s2934_s1 + $0x3c8] sm:$0xff]  }
  0x48   : > { %937 = vmatmul.mubr.bf16.vlgmr.msra.gmra.mrb[4].mxu1 %v1879_v32  ;;  %2206 = vmatpush3.bf16.msra.mxu0 %v2377_v29  ;;  %v2415_v29 = vld [vmem:[%s2934_s1 + $0x348] sm:$0xff]  }
  0x49   : > { %2228 = vmatpush3.bf16.msra.mxu1 %v2378_v31  ;;  %2207 = vmatprep.subr.bf16.mxu0 %v2379_v34  ;;  %v2417_v31 = vld [vmem:[%s2934_s1 + $0x308] sm:$0xff]   ;;  %v2419_v34 = vld [vmem:[%s2934_s1 + $0x350] sm:$0xff]  }
  0x4a   : > { %2229 = vmatprep.subr.bf16.mxu1 %v2380_v36  ;;  %1289 = vmatprep.mubr.bf16.mxu0 %v1044_v25  ;;  %v2418_v32 = vld [vmem:[%s2934_s1 + $0x388] sm:$0xff]   ;;  %v2420_v36 = vld [vmem:[%s2934_s1 + $0x3d0] sm:$0xff]  }
  0x4b   : > { %1329 = vmatprep.mubr.bf16.mxu1 %v1060_v27 }
  0x4c   : > { %2208 = vmatpush3.bf16.msra.mxu0 %v2381_v33  ;;  %v2421_v33 = vld [vmem:[%s2934_s1 + $0x310] sm:$0xff]  }
  0x4d   : > { %2230 = vmatpush3.bf16.msra.mxu1 %v2382_v35  ;;  %2209 = vmatprep.subr.bf16.mxu0 %v2383_v37  ;;  %v2422_v35 = vld [vmem:[%s2934_s1 + $0x390] sm:$0xff]   ;;  %v2423_v37 = vld [vmem:[%s2934_s1 + $0x358] sm:$0xff]  }
  0x4e   : > { %2231 = vmatprep.subr.bf16.mxu1 %v2384_v38  ;;  %v2424_v38 = vld [vmem:[%s2934_s1 + $0x3d8] sm:$0xff]  }
  0x50   : > { %2210 = vmatpush3.bf16.msra.mxu0 %v2385_v39  ;;  %v2425_v39 = vld [vmem:[%s2934_s1 + $0x318] sm:$0xff]  }
  0x51   : > { %2232 = vmatpush3.bf16.msra.mxu1 %v2386_v40  ;;  %2211 = vmatprep.subr.bf16.mxu0 %v2387_v41  ;;  %v2426_v40 = vld [vmem:[%s2934_s1 + $0x398] sm:$0xff]   ;;  %v2427_v41 = vld [vmem:[%s2934_s1 + $0x360] sm:$0xff]  }
  0x52   : > { %2233 = vmatprep.subr.bf16.mxu1 %v2388_v42  ;;  %v2428_v42 = vld [vmem:[%s2934_s1 + $0x3e0] sm:$0xff]  }
  0x54   : > { %2212 = vmatpush3.bf16.msra.mxu0 %v2389_v43  ;;  %v2429_v43 = vld [vmem:[%s2934_s1 + $0x320] sm:$0xff]  }
  0x55   : > { %2234 = vmatpush3.bf16.msra.mxu1 %v2390_v44  ;;  %2213 = vmatprep.subr.bf16.mxu0 %v2391_v45  ;;  %v2430_v44 = vld [vmem:[%s2934_s1 + $0x3a0] sm:$0xff]   ;;  %v2431_v45 = vld [vmem:[%s2934_s1 + $0x368] sm:$0xff]  }
  0x56   : > { %2235 = vmatprep.subr.bf16.mxu1 %v2392_v46  ;;  %v2432_v46 = vld [vmem:[%s2934_s1 + $0x3e8] sm:$0xff]  }
  0x58   : > { %2214 = vmatpush3.bf16.msra.mxu0 %v2393_v47  ;;  %v2433_v47 = vld [vmem:[%s2934_s1 + $0x328] sm:$0xff]  }
  0x59   : > { %2236 = vmatpush3.bf16.msra.mxu1 %v2394_v48  ;;  %2215 = vmatprep.subr.bf16.mxu0 %v2395_v49  ;;  %v2434_v48 = vld [vmem:[%s2934_s1 + $0x3a8] sm:$0xff]   ;;  %v2435_v49 = vld [vmem:[%s2934_s1 + $0x370] sm:$0xff]  }
  0x5a   : > { %2237 = vmatprep.subr.bf16.mxu1 %v2396_v50  ;;  %v2436_v50 = vld [vmem:[%s2934_s1 + $0x3f0] sm:$0xff]  }
  0x5c   : > { %2216 = vmatpush3.bf16.msra.mxu0 %v2397_v51  ;;  %v2437_v51 = vld [vmem:[%s2934_s1 + $0x330] sm:$0xff]  }
  0x5d   : > { %2238 = vmatpush3.bf16.msra.mxu1 %v2398_v52  ;;  %2217 = vmatprep.subr.bf16.mxu0 %v2399_v53  ;;  %v2438_v52 = vld [vmem:[%s2934_s1 + $0x3b0] sm:$0xff]   ;;  %v2439_v53 = vld [vmem:[%s2934_s1 + $0x378] sm:$0xff]  }
  0x5e   : > { %2239 = vmatprep.subr.bf16.mxu1 %v2400_v54  ;;  %v2440_v54 = vld [vmem:[%s2934_s1 + $0x3f8] sm:$0xff]  }
  0x60   : > { %2218 = vmatpush3.bf16.msra.mxu0 %v2401_v55  ;;  %v2441_v55 = vld [vmem:[%s2934_s1 + $0x338] sm:$0xff]  }
  0x61   : > { %2240 = vmatpush3.bf16.msra.mxu1 %v2402_v56  ;;  %2219 = vmatprep.subr.bf16.mxu0 %v2403_v57  ;;  %v1338_v56 = vld [vmem:[%s2585_s8] sm:$0xcc]  ;;  %v1339_v57 = vld [vmem:[%s2585_s8 + $0x8] sm:$0xcc] }
  0x62   : > { %2241 = vmatprep.subr.bf16.mxu1 %v2404_v58  ;;  %v2442_v58 = vld [vmem:[%s2934_s1 + $0x3b8] sm:$0xff]   ;;  %v2079_v61 = vcombine.low %v1339_v57, %v2811_v0  ;;  %v2080_v1 = vcombine.high %v1339_v57, %v2811_v0 }
  0x64   : > { %2220 = vmatpush3.bf16.msra.mxu0 %v2405_v59  ;;  %v2077_v59 = vcombine.low %v1338_v56, %v2807_v62  ;;  %v1418_v5 = vrot.slane %v2080_v1, 2 }
  0x65   : > { %2242 = vmatpush3.bf16.msra.mxu1 %v2406_v60  ;;  %2249 = vmatprep.subr.bf16.mxu0 %v2411_v4  ;;  %v2078_v60 = vcombine.high %v1338_v56, %v2807_v62  ;;  %v1417_v4 = vrot.slane %v2079_v61, 2 }
  0x66   : > { %2271 = vmatprep.subr.bf16.mxu1 %v2412_v6  ;;  %v1415_v2 = vrot.slane %v2077_v59, 2 }
  0x67   : > { %1290 = vmatmul.mubr.bf16.vlgmr.msra.gmra.mrb[8].mxu0 %v1036_v26  ;;  %v1416_v3 = vrot.slane %v2078_v60, 2 }
  0x68   : > { %1330 = vmatmul.mubr.bf16.vlgmr.msra.gmra.mrb[8].mxu1 %v1052_v28  ;;  %2250 = vmatpush3.bf16.msra.mxu0 %v2413_v19 }
  0x69   : > { %2272 = vmatpush3.bf16.msra.mxu1 %v2414_v24  ;;  %2251 = vmatprep.subr.bf16.mxu0 %v2415_v29 }
  0x6a   : > { %2273 = vmatprep.subr.bf16.mxu1 %v2416_v30  ;;  %1647 = vmatprep.mubr.bf16.mxu0 %v1416_v3 }
  0x6b   : > { %1687 = vmatprep.mubr.bf16.mxu1 %v1418_v5 }
  0x6c   : > { %2252 = vmatpush3.bf16.msra.mxu0 %v2417_v31 }
  0x6d   : > { %2274 = vmatpush3.bf16.msra.mxu1 %v2418_v32  ;;  %2253 = vmatprep.subr.bf16.mxu0 %v2419_v34 }
  0x6e   : > { %2275 = vmatprep.subr.bf16.mxu1 %v2420_v36 }
  0x70   : > { %2254 = vmatpush3.bf16.msra.mxu0 %v2421_v33 }
  0x71   : > { %2276 = vmatpush3.bf16.msra.mxu1 %v2422_v35  ;;  %2255 = vmatprep.subr.bf16.mxu0 %v2423_v37 }
  0x72   : > { %2277 = vmatprep.subr.bf16.mxu1 %v2424_v38 }
  0x74   : > { %2256 = vmatpush3.bf16.msra.mxu0 %v2425_v39 }
  0x75   : > { %2278 = vmatpush3.bf16.msra.mxu1 %v2426_v40  ;;  %2257 = vmatprep.subr.bf16.mxu0 %v2427_v41 }
  0x76   : > { %2279 = vmatprep.subr.bf16.mxu1 %v2428_v42 }
  0x78   : > { %2258 = vmatpush3.bf16.msra.mxu0 %v2429_v43 }
  0x79   : > { %2280 = vmatpush3.bf16.msra.mxu1 %v2430_v44  ;;  %2259 = vmatprep.subr.bf16.mxu0 %v2431_v45 }
  0x7a   : > { %2281 = vmatprep.subr.bf16.mxu1 %v2432_v46 }
  0x7c   : > { %2260 = vmatpush3.bf16.msra.mxu0 %v2433_v47 }
  0x7d   : > { %2282 = vmatpush3.bf16.msra.mxu1 %v2434_v48  ;;  %2261 = vmatprep.subr.bf16.mxu0 %v2435_v49 }
  0x7e   : > { %2283 = vmatprep.subr.bf16.mxu1 %v2436_v50  ;;  %v2113_v50 = vld [vmem:[%s2935_s2] ss:$0 sm:$0xff] }
  0x80   : > { %2262 = vmatpush3.bf16.msra.mxu0 %v2437_v51 }
  0x81   : > { %2284 = vmatpush3.bf16.msra.mxu1 %v2438_v52  ;;  %2263 = vmatprep.subr.bf16.mxu0 %v2439_v53 }
  0x82   : > { %2285 = vmatprep.subr.bf16.mxu1 %v2440_v54 }
  0x84   : > { %2264 = vmatpush3.bf16.msra.mxu0 %v2441_v55 }
  0x85   : > { %2286 = vmatpush3.bf16.msra.mxu1 %v2442_v58 }
  0x87   : > { %1648 = vmatmul.mubr.bf16.vlgmr.msra.gmra.mrb[12].mxu0 %v1415_v2 }
  0x88   : > { %1688 = vmatmul.mubr.bf16.vlgmr.msra.gmra.mrb[12].mxu1 %v1417_v4 }
  0xb1   : > { %v1710_v53 = vpop.permute.xlu0 %1709 }
  0xfa   : > { %v2133_v62 = vpop.f32.mrb[0].mxu0 }
  0xfb   : > { %v2155_v6 = vpop.f32.mrb[0].mxu1  ;;  %v2134_v7 = vpop.f32.mrb[1].mxu0 }
  0xfc   : > { %v2135_v8 = vadd.f32 %v2134_v7, %v2133_v62  ;;  %v2156_v9 = vpop.f32.mrb[1].mxu1  ;;  %v2136_v10 = vpop.f32.mrb[2].mxu0 }
  0xfd   : > { %v2157_v11 = vadd.f32 %v2156_v9, %v2155_v6  ;;  %v2158_v12 = vpop.f32.mrb[2].mxu1  ;;  %v2137_v0 = vpop.f32.mrb[3].mxu0 }
  0xfe   : > { %v2159_v13 = vpop.f32.mrb[3].mxu1 }
  0xff   : > { %v653_v14 = vadd.f32 %v2157_v11, %v2135_v8 }
 0x11a   : > { %v2177_v15 = vpop.f32.mrb[4].mxu0 }
 0x11b   : > { %v2199_v16 = vpop.f32.mrb[4].mxu1  ;;  %v2178_v17 = vpop.f32.mrb[5].mxu0 }
 0x11c   : > { %v2179_v18 = vadd.f32 %v2178_v17, %v2177_v15  ;;  %v2200_v19 = vpop.f32.mrb[5].mxu1  ;;  %v2180_v20 = vpop.f32.mrb[6].mxu0 }
 0x11d   : > { %v2201_v21 = vadd.f32 %v2200_v19, %v2199_v16  ;;  %v2202_v22 = vpop.f32.mrb[6].mxu1  ;;  %v2181_v23 = vpop.f32.mrb[7].mxu0 }
 0x11e   : > { %v899_v24 = vadd.f32 %v2179_v18, %v653_v14  ;;  %v2203_v25 = vpop.f32.mrb[7].mxu1 }
 0x120   : > { %v939_v26 = vadd.f32 %v2201_v21, %v899_v24 }
 0x13a   : > { %v2221_v27 = vpop.f32.mrb[8].mxu0 }
 0x13b   : > { %v2243_v28 = vpop.f32.mrb[8].mxu1  ;;  %v2222_v29 = vpop.f32.mrb[9].mxu0 }
 0x13c   : > { %v2223_v30 = vadd.f32 %v2222_v29, %v2221_v27  ;;  %v2244_v31 = vpop.f32.mrb[9].mxu1  ;;  %v2224_v32 = vpop.f32.mrb[10].mxu0 }
 0x13d   : > { %v2245_v34 = vadd.f32 %v2244_v31, %v2243_v28  ;;  %v2246_v36 = vpop.f32.mrb[10].mxu1  ;;  %v2225_v33 = vpop.f32.mrb[11].mxu0 }
 0x13e   : > { %v2247_v35 = vpop.f32.mrb[11].mxu1 }
 0x13f   : > { %v1332_v37 = vadd.f32 %v2245_v34, %v2223_v30 }
 0x141   : > { %v1337_v38 = vadd.f32 %v1332_v37, %v939_v26 }
 0x15a   : > { %v2265_v39 = vpop.f32.mrb[12].mxu0 }
 0x15b   : > { %v2287_v40 = vpop.f32.mrb[12].mxu1  ;;  %v2266_v41 = vpop.f32.mrb[13].mxu0 }
 0x15c   : > { %v2267_v42 = vadd.f32 %v2266_v41, %v2265_v39  ;;  %v2288_v43 = vpop.f32.mrb[13].mxu1  ;;  %v2268_v44 = vpop.f32.mrb[14].mxu0 }
 0x15d   : > { %v2289_v45 = vadd.f32 %v2288_v43, %v2287_v40  ;;  %v2290_v46 = vpop.f32.mrb[14].mxu1  ;;  %v2269_v47 = vpop.f32.mrb[15].mxu0 }
 0x15e   : > { %v2291_v48 = vpop.f32.mrb[15].mxu1 }
 0x15f   : > { %v1690_v49 = vadd.f32 %v2289_v45, %v2267_v42 }
 0x161   : > { %v1695_v51 = vadd.f32 %v1690_v49, %v1337_v38 }
 0x163   : > { %v1702_v52 = vadd.f32 %v2113_v50, %v1695_v51 }
 0x165   : > { %vm1703_vm0 = vcmp.ge.f32.partialorder %v1702_v52, 0.0  ;;  %v1704_v54 = vmul.f32 0.2, %v1702_v52 }
 0x167   : > { %v1705_v55 = vsel %vm1703_vm0, %v1702_v52, %v1704_v54 }
 0x168   : > { %v1712_v56 = vmul.f32 %v1710_v53, %v1705_v55 }
 0x16a   : > { %v1713_v57 = vpack.c.bf16 %v1712_v56, %v1712_v56 }
 0x16c   : > { %1714 = vst [vmem:[%s200_s29] sm:$0xf] %v1713_v57 }
 0x16d PF: > { %s14_s15 = sadd.s32 1, %s2453_s15  }
 0x16e   : > { %p11_p5 = scmp.ge.s32.totalorder %s14_s15, 4  }
 0x170   :  { %13 = sbr.rel (!%p11_p5) target bundleno = 1 (0x1), region = 69 }

</bundles_post_ra>
